<compile_context>
chip_gen: v6e
topology: v6e:2x2x1
jax: 0.10.0
libtpu: 0.0.40
codegen_flags: <defaults>
</compile_context>

<pallas_src>
import math

import jax
import jax.numpy as jnp
from jax import lax
from jax.experimental import pallas as pl
from jax.experimental.pallas import tpu as pltpu

VMEM_SPEC = pl.BlockSpec(memory_space=pltpu.MemorySpace.VMEM)


# ----------------------------------------------------------------------------
# Fused forward kernel (built per static shape configuration)
# ----------------------------------------------------------------------------
def _make_fused_kernel(T, B, BP, D, H, num_layers):
    """Activation layout: time-major flat 2D, row = t*BP + b (b < B valid,
    b >= B zero padding so each timestep slab is one aligned 8-row tile).
    Fused gate columns: [i_f, f_f, o_f, g_f | i_b, f_b, o_b, g_b], each H wide."""
    TBP = T * BP
    H2, H4, H8 = 2 * H, 4 * H, 8 * H
    f32 = jnp.float32

    def kernel(*refs):
        it = iter(refs)
        x_ref = next(it)                         # (TBP, D) layernorm input, padded rows = 0
        ln_g, ln_b = next(it), next(it)          # (1, D)
        lstm_w = [(next(it), next(it), next(it)) for _ in range(num_layers)]
        #   per layer: wih_fused (Din, 8H), whh_blockdiag (2H, 8H), bias_fused (1, 8H)
        aw1, ab1, aw2, ab2 = next(it), next(it), next(it), next(it)
        fw1, fb1, g1, be1 = next(it), next(it), next(it), next(it)
        fw2, fb2, g2, be2 = next(it), next(it), next(it), next(it)
        fw3, fb3 = next(it), next(it)
        pred_ref, attn_ref = next(it), next(it)  # outputs: (BP,1), (TBP,1)
        seq_ref, gx_ref = next(it), next(it)     # VMEM scratch: (TBP,2H), (TBP,8H)

        def layernorm_rows(v, gamma, beta):
            mu = jnp.mean(v, axis=-1, keepdims=True)
            var = jnp.mean(jnp.square(v - mu), axis=-1, keepdims=True)
            return (v - mu) * lax.rsqrt(var + 1e-5) * gamma[...] + beta[...]

        # ---- input LayerNorm over the feature axis --------------------------
        x_in = layernorm_rows(x_ref[...], ln_g, ln_b)            # (TBP, D)

        # ---- stacked bidirectional LSTM (both directions fused per step) ----
        for layer in range(num_layers):
            wih, whh_bd, bias = lstm_w[layer]
            # Hoisted, time-parallel FUSED input projection (both directions, bias folded).
            gx_ref[...] = (jnp.dot(x_in, wih[...], preferred_element_type=f32)
                           + bias[...])                          # (TBP, 8H)
            whh = whh_bd[...]                                    # (2H, 8H) block-diagonal
            h = jnp.zeros((BP, H2), f32)                         # [h_fwd | h_bwd]
            c_f = jnp.zeros((BP, H), f32)
            c_b = jnp.zeros((BP, H), f32)
            # TODO(synk): for long sequences replace this static unroll with
            # lax.fori_loop(..., unroll=4..8) and time-chunk gx_ref to bound VMEM/vregs.
            for step in range(T):                                # static unrolled (T=8)
                rf = step * BP                                   # forward timestep rows
                rb = (T - 1 - step) * BP                         # backward timestep rows
                # ONE 256-lane-wide recurrent matmul for both directions.
                hw = jnp.dot(h, whh, preferred_element_type=f32)               # (BP, 8H)
                gates = jnp.concatenate(
                    [gx_ref[rf:rf + BP, 0:H4], gx_ref[rb:rb + BP, H4:H8]],
                    axis=-1) + hw                                              # (BP, 8H)
                sig = jax.nn.sigmoid(gates)                      # full width (i,f,o cols used)
                g_f = jnp.tanh(gates[:, 3 * H:4 * H])
                g_b = jnp.tanh(gates[:, 7 * H:8 * H])
                c_f = sig[:, 1 * H:2 * H] * c_f + sig[:, 0 * H:1 * H] * g_f
                c_b = sig[:, 5 * H:6 * H] * c_b + sig[:, 4 * H:5 * H] * g_b
                h_f = sig[:, 2 * H:3 * H] * jnp.tanh(c_f)
                h_b = sig[:, 6 * H:7 * H] * jnp.tanh(c_b)
                seq_ref[rf:rf + BP, 0:H] = h_f                   # single shared sequence scratch
                seq_ref[rb:rb + BP, H:H2] = h_b
                h = jnp.concatenate([h_f, h_b], axis=-1)
            x_in = seq_ref[...]                                  # (TBP, 2H) next layer input
            # inter-layer dropout: identity (eval)

        lstm_out = x_in                                          # (TBP, 2H)

        # ---- attention pooling over time (whole batch at once) --------------
        r = lax.broadcasted_iota(jnp.int32, (TBP, 1), 0)
        row_valid = (r % BP) < B                                 # mask padded batch rows
        ah = jnp.tanh(jnp.dot(lstm_out, aw1[...], preferred_element_type=f32) + ab1[...])
        s = jnp.dot(ah, aw2[...], preferred_element_type=f32) + ab2[...]       # (TBP, 1)
        s = jnp.where(row_valid, s, -1e30)                       # exclude padded rows from max
        m = jnp.max(s, axis=0, keepdims=True)                    # (1, 1)
        e = jnp.exp(s - m)                                       # 0 on padded rows

        # segment-indicator matrices built in-kernel (no HBM traffic)
        cmod = lax.broadcasted_iota(jnp.int32, (BP, TBP), 1) % BP
        ridx = lax.broadcasted_iota(jnp.int32, (BP, TBP), 0)
        p_bt = (cmod == ridx).astype(f32)                        # (BP, TBP)
        rmod = lax.broadcasted_iota(jnp.int32, (TBP, BP), 0) % BP
        cidx = lax.broadcasted_iota(jnp.int32, (TBP, BP), 1)
        p_tb = (rmod == cidx).astype(f32)                        # (TBP, BP)

        denom = jnp.dot(p_bt, e, preferred_element_type=f32)     # (BP, 1)
        bvalid = lax.broadcasted_iota(jnp.int32, (BP, 1), 0) < B
        denom = jnp.where(bvalid, denom, 1.0)                    # padded batches: avoid 1/0
        inv = pl.reciprocal(denom, approx=True)                  # EUP slot
        inv = inv * (2.0 - denom * inv)                          # one Newton step -> f32 accurate
        ctx = jnp.dot(p_bt, e * lstm_out, preferred_element_type=f32) * inv    # (BP, 2H)
        attn_ref[...] = e * jnp.dot(p_tb, inv, preferred_element_type=f32)     # (TBP, 1)

        # ---- MLP head (BP=8-row aligned operands; sliced to B in wrapper) ---
        o1 = jnp.dot(ctx, fw1[...], preferred_element_type=f32) + fb1[...]
        o1 = jnp.maximum(layernorm_rows(o1, g1, be1), 0.0)       # dropout1 = identity
        o2 = jnp.dot(o1, fw2[...], preferred_element_type=f32) + fb2[...]
        o2 = jnp.maximum(layernorm_rows(o2, g2, be2), 0.0)       # dropout2 = identity
        o2 = o2 + o1[:, :o2.shape[1]]                            # truncated residual (matches PyTorch)
        pred_ref[...] = jnp.dot(o2, fw3[...], preferred_element_type=f32) + fb3[...]

    return kernel


# ----------------------------------------------------------------------------
# Wrapper: single pallas_call for the whole forward pass
# ----------------------------------------------------------------------------
@jax.jit
def lstm_model_forward(params, x):
    """x: (B, T, D) batch-first. Returns (predictions (B,1), attention_weights (B,T,1))."""
    B, T, D = x.shape
    num_layers = len(params["lstm"])
    H = params["lstm"][0]["fwd"][1].shape[0]      # W_hh is (H, 4H)
    BP = ((B + 7) // 8) * 8                       # pad batch rows per timestep to one sublane tile
    TBP = T * BP

    # time-major flat layout, row = t*BP + b; padded rows zero-filled
    x_tm = jnp.transpose(x, (1, 0, 2))                            # (T, B, D)
    x_tm = jnp.pad(x_tm, ((0, 0), (0, BP - B), (0, 0)))
    x_flat = x_tm.reshape(TBP, D)

    inputs = [x_flat, params["ln_in_g"], params["ln_in_b"]]
    for layer_p in params["lstm"]:
        wih_f, whh_f, b_f = layer_p["fwd"]
        wih_b, whh_b, b_b = layer_p["bwd"]
        # fused input projection weight / bias: columns [fwd 4H | bwd 4H]
        wih_fused = jnp.concatenate([wih_f, wih_b], axis=1)                    # (Din, 8H)
        bias_fused = jnp.concatenate([b_f, b_b], axis=1)                       # (1, 8H)
        # block-diagonal recurrent weight: h_fwd rows feed fwd gate cols only, same for bwd
        whh_bd = jnp.zeros((2 * H, 8 * H), jnp.float32)
        whh_bd = whh_bd.at[:H, :4 * H].set(whh_f)
        whh_bd = whh_bd.at[H:, 4 * H:].set(whh_b)                              # (2H, 8H)
        inputs += [wih_fused, whh_bd, bias_fused]
    inputs += [params["attn_w1"], params["attn_b1"], params["attn_w2"], params["attn_b2"],
               params["fc1_w"], params["fc1_b"], params["ln1_g"], params["ln1_b"],
               params["fc2_w"], params["fc2_b"], params["ln2_g"], params["ln2_b"],
               params["fc3_w"], params["fc3_b"]]

    kernel = _make_fused_kernel(T, B, BP, D, H, num_layers)

    # VMEM limit from the actual static footprint (inputs + outputs + scratch), with margin.
    vmem_bytes = sum(int(a.size) * a.dtype.itemsize for a in inputs)
    vmem_bytes += (TBP * (8 * H + 2 * H) + TBP + BP) * 4          # scratch + outputs (f32)
    vmem_limit = int(min(max(2 * vmem_bytes + (4 << 20), 16 << 20), 64 << 20))

    pred_pad, attn_flat = pl.pallas_call(
        kernel,
        out_shape=(jax.ShapeDtypeStruct((BP, 1), jnp.float32),
                   jax.ShapeDtypeStruct((TBP, 1), jnp.float32)),
        in_specs=[VMEM_SPEC] * len(inputs),
        out_specs=(VMEM_SPEC, VMEM_SPEC),
        scratch_shapes=[pltpu.VMEM((TBP, 2 * H), jnp.float32),    # bidirectional hidden sequence
                        pltpu.VMEM((TBP, 8 * H), jnp.float32)],   # fused hoisted gate projections
        compiler_params=pltpu.CompilerParams(vmem_limit_bytes=vmem_limit),
    )(*inputs)

    pred = pred_pad[:B, :]
    # (TBP, 1) -> (B, T, 1): drop padded batch rows, back to batch-major
    attn_w = jnp.transpose(attn_flat.reshape(T, BP, 1)[:, :B, :], (1, 0, 2))
    return pred, attn_w


# ----------------------------------------------------------------------------
# Deterministic parameter initialization (synthetic; mirrors module shapes)
# ----------------------------------------------------------------------------
def init_params(key, input_size=5, hidden=32, num_layers=3):
    keys = iter(jax.random.split(key, 64))

    def uni(shape, k):
        return jax.random.uniform(next(keys), shape, jnp.float32, -k, k)

    p = {
        "ln_in_g": jnp.ones((1, input_size), jnp.float32),
        "ln_in_b": jnp.zeros((1, input_size), jnp.float32),
    }
    k = 1.0 / math.sqrt(hidden)
    lstm = []
    for layer in range(num_layers):
        din = input_size if layer == 0 else 2 * hidden
        layer_p = {}
        for d in ("fwd", "bwd"):
            # Weights stored transposed (Din, 4H)/(H, 4H); gate columns ordered
            # [i, f, o, g] (PyTorch's [i, f, g, o] with g/o swapped). Any loader of
            # real PyTorch weights must apply that column permutation.
            wih = uni((din, 4 * hidden), k)
            whh = uni((hidden, 4 * hidden), k)
            b = uni((1, 4 * hidden), k) + uni((1, 4 * hidden), k)   # b_ih + b_hh
            layer_p[d] = (wih, whh, b)
        lstm.append(layer_p)
    p["lstm"] = lstm

    A = 2 * hidden
    H2, H4 = A // 2, A // 4
    p["attn_w1"] = uni((A, H2), 1.0 / math.sqrt(A)); p["attn_b1"] = uni((1, H2), 1.0 / math.sqrt(A))
    p["attn_w2"] = uni((H2, 1), 1.0 / math.sqrt(H2)); p["attn_b2"] = uni((1, 1), 1.0 / math.sqrt(H2))
    p["fc1_w"] = uni((A, H2), 1.0 / math.sqrt(A)); p["fc1_b"] = uni((1, H2), 1.0 / math.sqrt(A))
    p["ln1_g"] = jnp.ones((1, H2), jnp.float32); p["ln1_b"] = jnp.zeros((1, H2), jnp.float32)
    p["fc2_w"] = uni((H2, H4), 1.0 / math.sqrt(H2)); p["fc2_b"] = uni((1, H4), 1.0 / math.sqrt(H2))
    p["ln2_g"] = jnp.ones((1, H4), jnp.float32); p["ln2_b"] = jnp.zeros((1, H4), jnp.float32)
    p["fc3_w"] = uni((H4, 1), 1.0 / math.sqrt(H4)); p["fc3_b"] = uni((1, 1), 1.0 / math.sqrt(H4))
    return p


if __name__ == "__main__":
    BATCH, SEQ, INPUT, HIDDEN, LAYERS = 2, 8, 5, 32, 3
    key = jax.random.PRNGKey(0)
    kp, kx = jax.random.split(key)
    params = init_params(kp, input_size=INPUT, hidden=HIDDEN, num_layers=LAYERS)
    x = jax.random.normal(kx, (BATCH, SEQ, INPUT), jnp.float32)

    preds, attn_w = lstm_model_forward(params, x)
    preds = jax.block_until_ready(preds)
    attn_w = jax.block_until_ready(attn_w)

    assert preds.shape == (BATCH, 1)
    assert attn_w.shape == (BATCH, SEQ, 1)
    assert jnp.all(jnp.isfinite(preds)) and jnp.all(jnp.isfinite(attn_w))
    # attention weights should sum to 1 over the sequence axis
    assert jnp.allclose(jnp.sum(attn_w, axis=1), 1.0, atol=1e-4)
    print("KERNEL_OK")
</pallas_src>

<mosaic_0001>
module attributes {stable_mosaic.version = 11 : i64} {
  func.func @kernel(%arg0: memref<64x5xf32, #tpu.memory_space<vmem>>, %arg1: memref<1x5xf32, #tpu.memory_space<vmem>>, %arg2: memref<1x5xf32, #tpu.memory_space<vmem>>, %arg3: memref<5x256xf32, #tpu.memory_space<vmem>>, %arg4: memref<64x256xf32, #tpu.memory_space<vmem>>, %arg5: memref<1x256xf32, #tpu.memory_space<vmem>>, %arg6: memref<64x256xf32, #tpu.memory_space<vmem>>, %arg7: memref<64x256xf32, #tpu.memory_space<vmem>>, %arg8: memref<1x256xf32, #tpu.memory_space<vmem>>, %arg9: memref<64x256xf32, #tpu.memory_space<vmem>>, %arg10: memref<64x256xf32, #tpu.memory_space<vmem>>, %arg11: memref<1x256xf32, #tpu.memory_space<vmem>>, %arg12: memref<64x32xf32, #tpu.memory_space<vmem>>, %arg13: memref<1x32xf32, #tpu.memory_space<vmem>>, %arg14: memref<32x1xf32, #tpu.memory_space<vmem>>, %arg15: memref<1x1xf32, #tpu.memory_space<vmem>>, %arg16: memref<64x32xf32, #tpu.memory_space<vmem>>, %arg17: memref<1x32xf32, #tpu.memory_space<vmem>>, %arg18: memref<1x32xf32, #tpu.memory_space<vmem>>, %arg19: memref<1x32xf32, #tpu.memory_space<vmem>>, %arg20: memref<32x16xf32, #tpu.memory_space<vmem>>, %arg21: memref<1x16xf32, #tpu.memory_space<vmem>>, %arg22: memref<1x16xf32, #tpu.memory_space<vmem>>, %arg23: memref<1x16xf32, #tpu.memory_space<vmem>>, %arg24: memref<16x1xf32, #tpu.memory_space<vmem>>, %arg25: memref<1x1xf32, #tpu.memory_space<vmem>>, %arg26: memref<8x1xf32, #tpu.memory_space<vmem>>, %arg27: memref<64x1xf32, #tpu.memory_space<vmem>>, %arg28: memref<64x64xf32, #tpu.memory_space<vmem>>, %arg29: memref<64x256xf32, #tpu.memory_space<vmem>>) attributes {dimension_semantics = [], scalar_prefetch = 0 : i64, scratch_operands = 2 : i64, tpu.core_type = #tpu.core_type<tc>} {
    %c0 = arith.constant 0 : index
    %c0_0 = arith.constant 0 : index
    %0 = vector.load %arg0[%c0, %c0_0] : memref<64x5xf32, #tpu.memory_space<vmem>>, vector<64x5xf32>
    %cst = arith.constant dense<0.000000e+00> : vector<64xf32>
    %1 = vector.multi_reduction <add>, %0, %cst [1] : vector<64x5xf32> to vector<64xf32>
    %2 = vector.shape_cast %1 : vector<64xf32> to vector<64x1xf32>
    %cst_1 = arith.constant 5.000000e+00 : f32
    %3 = vector.broadcast %cst_1 : f32 to vector<64x1xf32>
    %4 = arith.divf %2, %3 : vector<64x1xf32>
    %5 = vector.broadcast %4 : vector<64x1xf32> to vector<64x5xf32>
    %6 = arith.subf %0, %5 : vector<64x5xf32>
    %7 = arith.mulf %6, %6 : vector<64x5xf32>
    %cst_2 = arith.constant dense<0.000000e+00> : vector<64xf32>
    %8 = vector.multi_reduction <add>, %7, %cst_2 [1] : vector<64x5xf32> to vector<64xf32>
    %9 = vector.shape_cast %8 : vector<64xf32> to vector<64x1xf32>
    %cst_3 = arith.constant 5.000000e+00 : f32
    %10 = vector.broadcast %cst_3 : f32 to vector<64x1xf32>
    %11 = arith.divf %9, %10 : vector<64x1xf32>
    %12 = vector.broadcast %4 : vector<64x1xf32> to vector<64x5xf32>
    %13 = arith.subf %0, %12 : vector<64x5xf32>
    %cst_4 = arith.constant 9.99999974E-6 : f32
    %14 = vector.broadcast %cst_4 : f32 to vector<64x1xf32>
    %15 = arith.addf %11, %14 : vector<64x1xf32>
    %16 = math.rsqrt %15 : vector<64x1xf32>
    %17 = vector.broadcast %16 : vector<64x1xf32> to vector<64x5xf32>
    %18 = arith.mulf %13, %17 : vector<64x5xf32>
    %c0_5 = arith.constant 0 : index
    %c0_6 = arith.constant 0 : index
    %19 = vector.load %arg1[%c0_5, %c0_6] : memref<1x5xf32, #tpu.memory_space<vmem>>, vector<1x5xf32>
    %20 = vector.broadcast %19 : vector<1x5xf32> to vector<64x5xf32>
    %21 = arith.mulf %18, %20 : vector<64x5xf32>
    %c0_7 = arith.constant 0 : index
    %c0_8 = arith.constant 0 : index
    %22 = vector.load %arg2[%c0_7, %c0_8] : memref<1x5xf32, #tpu.memory_space<vmem>>, vector<1x5xf32>
    %23 = vector.broadcast %22 : vector<1x5xf32> to vector<64x5xf32>
    %24 = arith.addf %21, %23 : vector<64x5xf32>
    %c0_9 = arith.constant 0 : index
    %c0_10 = arith.constant 0 : index
    %25 = vector.load %arg3[%c0_9, %c0_10] : memref<5x256xf32, #tpu.memory_space<vmem>>, vector<5x256xf32>
    %cst_11 = arith.constant dense<0.000000e+00> : vector<64x256xf32>
    %26 = tpu.matmul %24, %25, %cst_11 {dimension_numbers = #tpu.dot_dimension_numbers<[1], [0], [0], [1], [0, 0, 1, 1], [], []>} : vector<64x5xf32>, vector<5x256xf32>, vector<64x256xf32> -> vector<64x256xf32>
    %c0_12 = arith.constant 0 : index
    %c0_13 = arith.constant 0 : index
    %27 = vector.load %arg5[%c0_12, %c0_13] : memref<1x256xf32, #tpu.memory_space<vmem>>, vector<1x256xf32>
    %28 = vector.broadcast %27 : vector<1x256xf32> to vector<64x256xf32>
    %29 = arith.addf %26, %28 : vector<64x256xf32>
    %c0_14 = arith.constant 0 : index
    %c0_15 = arith.constant 0 : index
    %30 = vector.load %arg29[%c0_14, %c0_15] : memref<64x256xf32, #tpu.memory_space<vmem>>, vector<64x256xf32>
    tpu.vector_store %arg29[%c0_14, %c0_15], %29 {strides = array<i32>} : memref<64x256xf32, #tpu.memory_space<vmem>>, vector<64x256xf32>,
    %c0_16 = arith.constant 0 : index
    %c0_17 = arith.constant 0 : index
    %31 = vector.load %arg4[%c0_16, %c0_17] : memref<64x256xf32, #tpu.memory_space<vmem>>, vector<64x256xf32>
    %cst_18 = arith.constant 0.000000e+00 : f32
    %32 = vector.broadcast %cst_18 : f32 to vector<8x64xf32>
    %cst_19 = arith.constant 0.000000e+00 : f32
    %33 = vector.broadcast %cst_19 : f32 to vector<8x32xf32>
    %cst_20 = arith.constant 0.000000e+00 : f32
    %34 = vector.broadcast %cst_20 : f32 to vector<8x32xf32>
    %cst_21 = arith.constant dense<0.000000e+00> : vector<8x256xf32>
    %35 = tpu.matmul %32, %31, %cst_21 {dimension_numbers = #tpu.dot_dimension_numbers<[1], [0], [0], [1], [0, 0, 1, 1], [], []>} : vector<8x64xf32>, vector<64x256xf32>, vector<8x256xf32> -> vector<8x256xf32>
    %c0_22 = arith.constant 0 : index
    %c0_23 = arith.constant 0 : index
    %36 = vector.load %arg29[%c0_22, %c0_23] : memref<64x256xf32, #tpu.memory_space<vmem>>, vector<8x128xf32>
    %c56 = arith.constant 56 : index
    %c128 = arith.constant 128 : index
    %37 = vector.load %arg29[%c56, %c128] : memref<64x256xf32, #tpu.memory_space<vmem>>, vector<8x128xf32>
    %38 = tpu.concatenate %36, %37 in 1 : vector<8x128xf32>, vector<8x128xf32> -> vector<8x256xf32>
    %39 = arith.addf %38, %35 : vector<8x256xf32>
    %40 = arith.negf %39 : vector<8x256xf32>
    %41 = math.exp %40 : vector<8x256xf32>
    %cst_24 = arith.constant 1.000000e+00 : f32
    %42 = vector.broadcast %cst_24 : f32 to vector<8x256xf32>
    %43 = arith.addf %42, %41 : vector<8x256xf32>
    %44 = arith.divf %42, %43 : vector<8x256xf32>
    %45 = vector.extract_strided_slice %39 {offsets = [0, 96], sizes = [8, 32], strides = [1, 1]} : vector<8x256xf32> to vector<8x32xf32>
    %46 = math.tanh %45 : vector<8x32xf32>
    %47 = vector.extract_strided_slice %39 {offsets = [0, 224], sizes = [8, 32], strides = [1, 1]} : vector<8x256xf32> to vector<8x32xf32>
    %48 = math.tanh %47 : vector<8x32xf32>
    %49 = vector.extract_strided_slice %44 {offsets = [0, 32], sizes = [8, 32], strides = [1, 1]} : vector<8x256xf32> to vector<8x32xf32>
    %50 = arith.mulf %49, %33 : vector<8x32xf32>
    %51 = vector.extract_strided_slice %44 {offsets = [0, 0], sizes = [8, 32], strides = [1, 1]} : vector<8x256xf32> to vector<8x32xf32>
    %52 = arith.mulf %51, %46 : vector<8x32xf32>
    %53 = arith.addf %50, %52 : vector<8x32xf32>
    %54 = vector.extract_strided_slice %44 {offsets = [0, 160], sizes = [8, 32], strides = [1, 1]} : vector<8x256xf32> to vector<8x32xf32>
    %55 = arith.mulf %54, %34 : vector<8x32xf32>
    %56 = vector.extract_strided_slice %44 {offsets = [0, 128], sizes = [8, 32], strides = [1, 1]} : vector<8x256xf32> to vector<8x32xf32>
    %57 = arith.mulf %56, %48 : vector<8x32xf32>
    %58 = arith.addf %55, %57 : vector<8x32xf32>
    %59 = vector.extract_strided_slice %44 {offsets = [0, 64], sizes = [8, 32], strides = [1, 1]} : vector<8x256xf32> to vector<8x32xf32>
    %60 = math.tanh %53 : vector<8x32xf32>
    %61 = arith.mulf %59, %60 : vector<8x32xf32>
    %62 = vector.extract_strided_slice %44 {offsets = [0, 192], sizes = [8, 32], strides = [1, 1]} : vector<8x256xf32> to vector<8x32xf32>
    %63 = math.tanh %58 : vector<8x32xf32>
    %64 = arith.mulf %62, %63 : vector<8x32xf32>
    %c0_25 = arith.constant 0 : index
    %c0_26 = arith.constant 0 : index
    %65 = vector.load %arg28[%c0_25, %c0_26] : memref<64x64xf32, #tpu.memory_space<vmem>>, vector<8x32xf32>
    tpu.vector_store %arg28[%c0_25, %c0_26], %61 {strides = array<i32>} : memref<64x64xf32, #tpu.memory_space<vmem>>, vector<8x32xf32>,
    %c56_27 = arith.constant 56 : index
    %c32 = arith.constant 32 : index
    %66 = vector.load %arg28[%c56_27, %c32] : memref<64x64xf32, #tpu.memory_space<vmem>>, vector<8x32xf32>
    tpu.vector_store %arg28[%c56_27, %c32], %64 {strides = array<i32>} : memref<64x64xf32, #tpu.memory_space<vmem>>, vector<8x32xf32>,
    %67 = tpu.concatenate %61, %64 in 1 : vector<8x32xf32>, vector<8x32xf32> -> vector<8x64xf32>
    %cst_28 = arith.constant dense<0.000000e+00> : vector<8x256xf32>
    %68 = tpu.matmul %67, %31, %cst_28 {dimension_numbers = #tpu.dot_dimension_numbers<[1], [0], [0], [1], [0, 0, 1, 1], [], []>} : vector<8x64xf32>, vector<64x256xf32>, vector<8x256xf32> -> vector<8x256xf32>
    %c8 = arith.constant 8 : index
    %c0_29 = arith.constant 0 : index
    %69 = vector.load %arg29[%c8, %c0_29] : memref<64x256xf32, #tpu.memory_space<vmem>>, vector<8x128xf32>
    %c48 = arith.constant 48 : index
    %c128_30 = arith.constant 128 : index
    %70 = vector.load %arg29[%c48, %c128_30] : memref<64x256xf32, #tpu.memory_space<vmem>>, vector<8x128xf32>
    %71 = tpu.concatenate %69, %70 in 1 : vector<8x128xf32>, vector<8x128xf32> -> vector<8x256xf32>
    %72 = arith.addf %71, %68 : vector<8x256xf32>
    %73 = arith.negf %72 : vector<8x256xf32>
    %74 = math.exp %73 : vector<8x256xf32>
    %cst_31 = arith.constant 1.000000e+00 : f32
    %75 = vector.broadcast %cst_31 : f32 to vector<8x256xf32>
    %76 = arith.addf %75, %74 : vector<8x256xf32>
    %77 = arith.divf %75, %76 : vector<8x256xf32>
    %78 = vector.extract_strided_slice %72 {offsets = [0, 96], sizes = [8, 32], strides = [1, 1]} : vector<8x256xf32> to vector<8x32xf32>
    %79 = math.tanh %78 : vector<8x32xf32>
    %80 = vector.extract_strided_slice %72 {offsets = [0, 224], sizes = [8, 32], strides = [1, 1]} : vector<8x256xf32> to vector<8x32xf32>
    %81 = math.tanh %80 : vector<8x32xf32>
    %82 = vector.extract_strided_slice %77 {offsets = [0, 32], sizes = [8, 32], strides = [1, 1]} : vector<8x256xf32> to vector<8x32xf32>
    %83 = arith.mulf %82, %53 : vector<8x32xf32>
    %84 = vector.extract_strided_slice %77 {offsets = [0, 0], sizes = [8, 32], strides = [1, 1]} : vector<8x256xf32> to vector<8x32xf32>
    %85 = arith.mulf %84, %79 : vector<8x32xf32>
    %86 = arith.addf %83, %85 : vector<8x32xf32>
    %87 = vector.extract_strided_slice %77 {offsets = [0, 160], sizes = [8, 32], strides = [1, 1]} : vector<8x256xf32> to vector<8x32xf32>
    %88 = arith.mulf %87, %58 : vector<8x32xf32>
    %89 = vector.extract_strided_slice %77 {offsets = [0, 128], sizes = [8, 32], strides = [1, 1]} : vector<8x256xf32> to vector<8x32xf32>
    %90 = arith.mulf %89, %81 : vector<8x32xf32>
    %91 = arith.addf %88, %90 : vector<8x32xf32>
    %92 = vector.extract_strided_slice %77 {offsets = [0, 64], sizes = [8, 32], strides = [1, 1]} : vector<8x256xf32> to vector<8x32xf32>
    %93 = math.tanh %86 : vector<8x32xf32>
    %94 = arith.mulf %92, %93 : vector<8x32xf32>
    %95 = vector.extract_strided_slice %77 {offsets = [0, 192], sizes = [8, 32], strides = [1, 1]} : vector<8x256xf32> to vector<8x32xf32>
    %96 = math.tanh %91 : vector<8x32xf32>
    %97 = arith.mulf %95, %96 : vector<8x32xf32>
    %c8_32 = arith.constant 8 : index
    %c0_33 = arith.constant 0 : index
    %98 = vector.load %arg28[%c8_32, %c0_33] : memref<64x64xf32, #tpu.memory_space<vmem>>, vector<8x32xf32>
    tpu.vector_store %arg28[%c8_32, %c0_33], %94 {strides = array<i32>} : memref<64x64xf32, #tpu.memory_space<vmem>>, vector<8x32xf32>,
    %c48_34 = arith.constant 48 : index
    %c32_35 = arith.constant 32 : index
    %99 = vector.load %arg28[%c48_34, %c32_35] : memref<64x64xf32, #tpu.memory_space<vmem>>, vector<8x32xf32>
    tpu.vector_store %arg28[%c48_34, %c32_35], %97 {strides = array<i32>} : memref<64x64xf32, #tpu.memory_space<vmem>>, vector<8x32xf32>,
    %100 = tpu.concatenate %94, %97 in 1 : vector<8x32xf32>, vector<8x32xf32> -> vector<8x64xf32>
    %cst_36 = arith.constant dense<0.000000e+00> : vector<8x256xf32>
    %101 = tpu.matmul %100, %31, %cst_36 {dimension_numbers = #tpu.dot_dimension_numbers<[1], [0], [0], [1], [0, 0, 1, 1], [], []>} : vector<8x64xf32>, vector<64x256xf32>, vector<8x256xf32> -> vector<8x256xf32>
    %c16 = arith.constant 16 : index
    %c0_37 = arith.constant 0 : index
    %102 = vector.load %arg29[%c16, %c0_37] : memref<64x256xf32, #tpu.memory_space<vmem>>, vector<8x128xf32>
    %c40 = arith.constant 40 : index
    %c128_38 = arith.constant 128 : index
    %103 = vector.load %arg29[%c40, %c128_38] : memref<64x256xf32, #tpu.memory_space<vmem>>, vector<8x128xf32>
    %104 = tpu.concatenate %102, %103 in 1 : vector<8x128xf32>, vector<8x128xf32> -> vector<8x256xf32>
    %105 = arith.addf %104, %101 : vector<8x256xf32>
    %106 = arith.negf %105 : vector<8x256xf32>
    %107 = math.exp %106 : vector<8x256xf32>
    %cst_39 = arith.constant 1.000000e+00 : f32
    %108 = vector.broadcast %cst_39 : f32 to vector<8x256xf32>
    %109 = arith.addf %108, %107 : vector<8x256xf32>
    %110 = arith.divf %108, %109 : vector<8x256xf32>
    %111 = vector.extract_strided_slice %105 {offsets = [0, 96], sizes = [8, 32], strides = [1, 1]} : vector<8x256xf32> to vector<8x32xf32>
    %112 = math.tanh %111 : vector<8x32xf32>
    %113 = vector.extract_strided_slice %105 {offsets = [0, 224], sizes = [8, 32], strides = [1, 1]} : vector<8x256xf32> to vector<8x32xf32>
    %114 = math.tanh %113 : vector<8x32xf32>
    %115 = vector.extract_strided_slice %110 {offsets = [0, 32], sizes = [8, 32], strides = [1, 1]} : vector<8x256xf32> to vector<8x32xf32>
    %116 = arith.mulf %115, %86 : vector<8x32xf32>
    %117 = vector.extract_strided_slice %110 {offsets = [0, 0], sizes = [8, 32], strides = [1, 1]} : vector<8x256xf32> to vector<8x32xf32>
    %118 = arith.mulf %117, %112 : vector<8x32xf32>
    %119 = arith.addf %116, %118 : vector<8x32xf32>
    %120 = vector.extract_strided_slice %110 {offsets = [0, 160], sizes = [8, 32], strides = [1, 1]} : vector<8x256xf32> to vector<8x32xf32>
    %121 = arith.mulf %120, %91 : vector<8x32xf32>
    %122 = vector.extract_strided_slice %110 {offsets = [0, 128], sizes = [8, 32], strides = [1, 1]} : vector<8x256xf32> to vector<8x32xf32>
    %123 = arith.mulf %122, %114 : vector<8x32xf32>
    %124 = arith.addf %121, %123 : vector<8x32xf32>
    %125 = vector.extract_strided_slice %110 {offsets = [0, 64], sizes = [8, 32], strides = [1, 1]} : vector<8x256xf32> to vector<8x32xf32>
    %126 = math.tanh %119 : vector<8x32xf32>
    %127 = arith.mulf %125, %126 : vector<8x32xf32>
    %128 = vector.extract_strided_slice %110 {offsets = [0, 192], sizes = [8, 32], strides = [1, 1]} : vector<8x256xf32> to vector<8x32xf32>
    %129 = math.tanh %124 : vector<8x32xf32>
    %130 = arith.mulf %128, %129 : vector<8x32xf32>
    %c16_40 = arith.constant 16 : index
    %c0_41 = arith.constant 0 : index
    %131 = vector.load %arg28[%c16_40, %c0_41] : memref<64x64xf32, #tpu.memory_space<vmem>>, vector<8x32xf32>
    tpu.vector_store %arg28[%c16_40, %c0_41], %127 {strides = array<i32>} : memref<64x64xf32, #tpu.memory_space<vmem>>, vector<8x32xf32>,
    %c40_42 = arith.constant 40 : index
    %c32_43 = arith.constant 32 : index
    %132 = vector.load %arg28[%c40_42, %c32_43] : memref<64x64xf32, #tpu.memory_space<vmem>>, vector<8x32xf32>
    tpu.vector_store %arg28[%c40_42, %c32_43], %130 {strides = array<i32>} : memref<64x64xf32, #tpu.memory_space<vmem>>, vector<8x32xf32>,
    %133 = tpu.concatenate %127, %130 in 1 : vector<8x32xf32>, vector<8x32xf32> -> vector<8x64xf32>
    %cst_44 = arith.constant dense<0.000000e+00> : vector<8x256xf32>
    %134 = tpu.matmul %133, %31, %cst_44 {dimension_numbers = #tpu.dot_dimension_numbers<[1], [0], [0], [1], [0, 0, 1, 1], [], []>} : vector<8x64xf32>, vector<64x256xf32>, vector<8x256xf32> -> vector<8x256xf32>
    %c24 = arith.constant 24 : index
    %c0_45 = arith.constant 0 : index
    %135 = vector.load %arg29[%c24, %c0_45] : memref<64x256xf32, #tpu.memory_space<vmem>>, vector<8x128xf32>
    %c32_46 = arith.constant 32 : index
    %c128_47 = arith.constant 128 : index
    %136 = vector.load %arg29[%c32_46, %c128_47] : memref<64x256xf32, #tpu.memory_space<vmem>>, vector<8x128xf32>
    %137 = tpu.concatenate %135, %136 in 1 : vector<8x128xf32>, vector<8x128xf32> -> vector<8x256xf32>
    %138 = arith.addf %137, %134 : vector<8x256xf32>
    %139 = arith.negf %138 : vector<8x256xf32>
    %140 = math.exp %139 : vector<8x256xf32>
    %cst_48 = arith.constant 1.000000e+00 : f32
    %141 = vector.broadcast %cst_48 : f32 to vector<8x256xf32>
    %142 = arith.addf %141, %140 : vector<8x256xf32>
    %143 = arith.divf %141, %142 : vector<8x256xf32>
    %144 = vector.extract_strided_slice %138 {offsets = [0, 96], sizes = [8, 32], strides = [1, 1]} : vector<8x256xf32> to vector<8x32xf32>
    %145 = math.tanh %144 : vector<8x32xf32>
    %146 = vector.extract_strided_slice %138 {offsets = [0, 224], sizes = [8, 32], strides = [1, 1]} : vector<8x256xf32> to vector<8x32xf32>
    %147 = math.tanh %146 : vector<8x32xf32>
    %148 = vector.extract_strided_slice %143 {offsets = [0, 32], sizes = [8, 32], strides = [1, 1]} : vector<8x256xf32> to vector<8x32xf32>
    %149 = arith.mulf %148, %119 : vector<8x32xf32>
    %150 = vector.extract_strided_slice %143 {offsets = [0, 0], sizes = [8, 32], strides = [1, 1]} : vector<8x256xf32> to vector<8x32xf32>
    %151 = arith.mulf %150, %145 : vector<8x32xf32>
    %152 = arith.addf %149, %151 : vector<8x32xf32>
    %153 = vector.extract_strided_slice %143 {offsets = [0, 160], sizes = [8, 32], strides = [1, 1]} : vector<8x256xf32> to vector<8x32xf32>
    %154 = arith.mulf %153, %124 : vector<8x32xf32>
    %155 = vector.extract_strided_slice %143 {offsets = [0, 128], sizes = [8, 32], strides = [1, 1]} : vector<8x256xf32> to vector<8x32xf32>
    %156 = arith.mulf %155, %147 : vector<8x32xf32>
    %157 = arith.addf %154, %156 : vector<8x32xf32>
    %158 = vector.extract_strided_slice %143 {offsets = [0, 64], sizes = [8, 32], strides = [1, 1]} : vector<8x256xf32> to vector<8x32xf32>
    %159 = math.tanh %152 : vector<8x32xf32>
    %160 = arith.mulf %158, %159 : vector<8x32xf32>
    %161 = vector.extract_strided_slice %143 {offsets = [0, 192], sizes = [8, 32], strides = [1, 1]} : vector<8x256xf32> to vector<8x32xf32>
    %162 = math.tanh %157 : vector<8x32xf32>
    %163 = arith.mulf %161, %162 : vector<8x32xf32>
    %c24_49 = arith.constant 24 : index
    %c0_50 = arith.constant 0 : index
    %164 = vector.load %arg28[%c24_49, %c0_50] : memref<64x64xf32, #tpu.memory_space<vmem>>, vector<8x32xf32>
    tpu.vector_store %arg28[%c24_49, %c0_50], %160 {strides = array<i32>} : memref<64x64xf32, #tpu.memory_space<vmem>>, vector<8x32xf32>,
    %c32_51 = arith.constant 32 : index
    %c32_52 = arith.constant 32 : index
    %165 = vector.load %arg28[%c32_51, %c32_52] : memref<64x64xf32, #tpu.memory_space<vmem>>, vector<8x32xf32>
    tpu.vector_store %arg28[%c32_51, %c32_52], %163 {strides = array<i32>} : memref<64x64xf32, #tpu.memory_space<vmem>>, vector<8x32xf32>,
    %166 = tpu.concatenate %160, %163 in 1 : vector<8x32xf32>, vector<8x32xf32> -> vector<8x64xf32>
    %cst_53 = arith.constant dense<0.000000e+00> : vector<8x256xf32>
    %167 = tpu.matmul %166, %31, %cst_53 {dimension_numbers = #tpu.dot_dimension_numbers<[1], [0], [0], [1], [0, 0, 1, 1], [], []>} : vector<8x64xf32>, vector<64x256xf32>, vector<8x256xf32> -> vector<8x256xf32>
    %c32_54 = arith.constant 32 : index
    %c0_55 = arith.constant 0 : index
    %168 = vector.load %arg29[%c32_54, %c0_55] : memref<64x256xf32, #tpu.memory_space<vmem>>, vector<8x128xf32>
    %c24_56 = arith.constant 24 : index
    %c128_57 = arith.constant 128 : index
    %169 = vector.load %arg29[%c24_56, %c128_57] : memref<64x256xf32, #tpu.memory_space<vmem>>, vector<8x128xf32>
    %170 = tpu.concatenate %168, %169 in 1 : vector<8x128xf32>, vector<8x128xf32> -> vector<8x256xf32>
    %171 = arith.addf %170, %167 : vector<8x256xf32>
    %172 = arith.negf %171 : vector<8x256xf32>
    %173 = math.exp %172 : vector<8x256xf32>
    %cst_58 = arith.constant 1.000000e+00 : f32
    %174 = vector.broadcast %cst_58 : f32 to vector<8x256xf32>
    %175 = arith.addf %174, %173 : vector<8x256xf32>
    %176 = arith.divf %174, %175 : vector<8x256xf32>
    %177 = vector.extract_strided_slice %171 {offsets = [0, 96], sizes = [8, 32], strides = [1, 1]} : vector<8x256xf32> to vector<8x32xf32>
    %178 = math.tanh %177 : vector<8x32xf32>
    %179 = vector.extract_strided_slice %171 {offsets = [0, 224], sizes = [8, 32], strides = [1, 1]} : vector<8x256xf32> to vector<8x32xf32>
    %180 = math.tanh %179 : vector<8x32xf32>
    %181 = vector.extract_strided_slice %176 {offsets = [0, 32], sizes = [8, 32], strides = [1, 1]} : vector<8x256xf32> to vector<8x32xf32>
    %182 = arith.mulf %181, %152 : vector<8x32xf32>
    %183 = vector.extract_strided_slice %176 {offsets = [0, 0], sizes = [8, 32], strides = [1, 1]} : vector<8x256xf32> to vector<8x32xf32>
    %184 = arith.mulf %183, %178 : vector<8x32xf32>
    %185 = arith.addf %182, %184 : vector<8x32xf32>
    %186 = vector.extract_strided_slice %176 {offsets = [0, 160], sizes = [8, 32], strides = [1, 1]} : vector<8x256xf32> to vector<8x32xf32>
    %187 = arith.mulf %186, %157 : vector<8x32xf32>
    %188 = vector.extract_strided_slice %176 {offsets = [0, 128], sizes = [8, 32], strides = [1, 1]} : vector<8x256xf32> to vector<8x32xf32>
    %189 = arith.mulf %188, %180 : vector<8x32xf32>
    %190 = arith.addf %187, %189 : vector<8x32xf32>
    %191 = vector.extract_strided_slice %176 {offsets = [0, 64], sizes = [8, 32], strides = [1, 1]} : vector<8x256xf32> to vector<8x32xf32>
    %192 = math.tanh %185 : vector<8x32xf32>
    %193 = arith.mulf %191, %192 : vector<8x32xf32>
    %194 = vector.extract_strided_slice %176 {offsets = [0, 192], sizes = [8, 32], strides = [1, 1]} : vector<8x256xf32> to vector<8x32xf32>
    %195 = math.tanh %190 : vector<8x32xf32>
    %196 = arith.mulf %194, %195 : vector<8x32xf32>
    %c32_59 = arith.constant 32 : index
    %c0_60 = arith.constant 0 : index
    %197 = vector.load %arg28[%c32_59, %c0_60] : memref<64x64xf32, #tpu.memory_space<vmem>>, vector<8x32xf32>
    tpu.vector_store %arg28[%c32_59, %c0_60], %193 {strides = array<i32>} : memref<64x64xf32, #tpu.memory_space<vmem>>, vector<8x32xf32>,
    %c24_61 = arith.constant 24 : index
    %c32_62 = arith.constant 32 : index
    %198 = vector.load %arg28[%c24_61, %c32_62] : memref<64x64xf32, #tpu.memory_space<vmem>>, vector<8x32xf32>
    tpu.vector_store %arg28[%c24_61, %c32_62], %196 {strides = array<i32>} : memref<64x64xf32, #tpu.memory_space<vmem>>, vector<8x32xf32>,
    %199 = tpu.concatenate %193, %196 in 1 : vector<8x32xf32>, vector<8x32xf32> -> vector<8x64xf32>
    %cst_63 = arith.constant dense<0.000000e+00> : vector<8x256xf32>
    %200 = tpu.matmul %199, %31, %cst_63 {dimension_numbers = #tpu.dot_dimension_numbers<[1], [0], [0], [1], [0, 0, 1, 1], [], []>} : vector<8x64xf32>, vector<64x256xf32>, vector<8x256xf32> -> vector<8x256xf32>
    %c40_64 = arith.constant 40 : index
    %c0_65 = arith.constant 0 : index
    %201 = vector.load %arg29[%c40_64, %c0_65] : memref<64x256xf32, #tpu.memory_space<vmem>>, vector<8x128xf32>
    %c16_66 = arith.constant 16 : index
    %c128_67 = arith.constant 128 : index
    %202 = vector.load %arg29[%c16_66, %c128_67] : memref<64x256xf32, #tpu.memory_space<vmem>>, vector<8x128xf32>
    %203 = tpu.concatenate %201, %202 in 1 : vector<8x128xf32>, vector<8x128xf32> -> vector<8x256xf32>
    %204 = arith.addf %203, %200 : vector<8x256xf32>
    %205 = arith.negf %204 : vector<8x256xf32>
    %206 = math.exp %205 : vector<8x256xf32>
    %cst_68 = arith.constant 1.000000e+00 : f32
    %207 = vector.broadcast %cst_68 : f32 to vector<8x256xf32>
    %208 = arith.addf %207, %206 : vector<8x256xf32>
    %209 = arith.divf %207, %208 : vector<8x256xf32>
    %210 = vector.extract_strided_slice %204 {offsets = [0, 96], sizes = [8, 32], strides = [1, 1]} : vector<8x256xf32> to vector<8x32xf32>
    %211 = math.tanh %210 : vector<8x32xf32>
    %212 = vector.extract_strided_slice %204 {offsets = [0, 224], sizes = [8, 32], strides = [1, 1]} : vector<8x256xf32> to vector<8x32xf32>
    %213 = math.tanh %212 : vector<8x32xf32>
    %214 = vector.extract_strided_slice %209 {offsets = [0, 32], sizes = [8, 32], strides = [1, 1]} : vector<8x256xf32> to vector<8x32xf32>
    %215 = arith.mulf %214, %185 : vector<8x32xf32>
    %216 = vector.extract_strided_slice %209 {offsets = [0, 0], sizes = [8, 32], strides = [1, 1]} : vector<8x256xf32> to vector<8x32xf32>
    %217 = arith.mulf %216, %211 : vector<8x32xf32>
    %218 = arith.addf %215, %217 : vector<8x32xf32>
    %219 = vector.extract_strided_slice %209 {offsets = [0, 160], sizes = [8, 32], strides = [1, 1]} : vector<8x256xf32> to vector<8x32xf32>
    %220 = arith.mulf %219, %190 : vector<8x32xf32>
    %221 = vector.extract_strided_slice %209 {offsets = [0, 128], sizes = [8, 32], strides = [1, 1]} : vector<8x256xf32> to vector<8x32xf32>
    %222 = arith.mulf %221, %213 : vector<8x32xf32>
    %223 = arith.addf %220, %222 : vector<8x32xf32>
    %224 = vector.extract_strided_slice %209 {offsets = [0, 64], sizes = [8, 32], strides = [1, 1]} : vector<8x256xf32> to vector<8x32xf32>
    %225 = math.tanh %218 : vector<8x32xf32>
    %226 = arith.mulf %224, %225 : vector<8x32xf32>
    %227 = vector.extract_strided_slice %209 {offsets = [0, 192], sizes = [8, 32], strides = [1, 1]} : vector<8x256xf32> to vector<8x32xf32>
    %228 = math.tanh %223 : vector<8x32xf32>
    %229 = arith.mulf %227, %228 : vector<8x32xf32>
    %c40_69 = arith.constant 40 : index
    %c0_70 = arith.constant 0 : index
    %230 = vector.load %arg28[%c40_69, %c0_70] : memref<64x64xf32, #tpu.memory_space<vmem>>, vector<8x32xf32>
    tpu.vector_store %arg28[%c40_69, %c0_70], %226 {strides = array<i32>} : memref<64x64xf32, #tpu.memory_space<vmem>>, vector<8x32xf32>,
    %c16_71 = arith.constant 16 : index
    %c32_72 = arith.constant 32 : index
    %231 = vector.load %arg28[%c16_71, %c32_72] : memref<64x64xf32, #tpu.memory_space<vmem>>, vector<8x32xf32>
    tpu.vector_store %arg28[%c16_71, %c32_72], %229 {strides = array<i32>} : memref<64x64xf32, #tpu.memory_space<vmem>>, vector<8x32xf32>,
    %232 = tpu.concatenate %226, %229 in 1 : vector<8x32xf32>, vector<8x32xf32> -> vector<8x64xf32>
    %cst_73 = arith.constant dense<0.000000e+00> : vector<8x256xf32>
    %233 = tpu.matmul %232, %31, %cst_73 {dimension_numbers = #tpu.dot_dimension_numbers<[1], [0], [0], [1], [0, 0, 1, 1], [], []>} : vector<8x64xf32>, vector<64x256xf32>, vector<8x256xf32> -> vector<8x256xf32>
    %c48_74 = arith.constant 48 : index
    %c0_75 = arith.constant 0 : index
    %234 = vector.load %arg29[%c48_74, %c0_75] : memref<64x256xf32, #tpu.memory_space<vmem>>, vector<8x128xf32>
    %c8_76 = arith.constant 8 : index
    %c128_77 = arith.constant 128 : index
    %235 = vector.load %arg29[%c8_76, %c128_77] : memref<64x256xf32, #tpu.memory_space<vmem>>, vector<8x128xf32>
    %236 = tpu.concatenate %234, %235 in 1 : vector<8x128xf32>, vector<8x128xf32> -> vector<8x256xf32>
    %237 = arith.addf %236, %233 : vector<8x256xf32>
    %238 = arith.negf %237 : vector<8x256xf32>
    %239 = math.exp %238 : vector<8x256xf32>
    %cst_78 = arith.constant 1.000000e+00 : f32
    %240 = vector.broadcast %cst_78 : f32 to vector<8x256xf32>
    %241 = arith.addf %240, %239 : vector<8x256xf32>
    %242 = arith.divf %240, %241 : vector<8x256xf32>
    %243 = vector.extract_strided_slice %237 {offsets = [0, 96], sizes = [8, 32], strides = [1, 1]} : vector<8x256xf32> to vector<8x32xf32>
    %244 = math.tanh %243 : vector<8x32xf32>
    %245 = vector.extract_strided_slice %237 {offsets = [0, 224], sizes = [8, 32], strides = [1, 1]} : vector<8x256xf32> to vector<8x32xf32>
    %246 = math.tanh %245 : vector<8x32xf32>
    %247 = vector.extract_strided_slice %242 {offsets = [0, 32], sizes = [8, 32], strides = [1, 1]} : vector<8x256xf32> to vector<8x32xf32>
    %248 = arith.mulf %247, %218 : vector<8x32xf32>
    %249 = vector.extract_strided_slice %242 {offsets = [0, 0], sizes = [8, 32], strides = [1, 1]} : vector<8x256xf32> to vector<8x32xf32>
    %250 = arith.mulf %249, %244 : vector<8x32xf32>
    %251 = arith.addf %248, %250 : vector<8x32xf32>
    %252 = vector.extract_strided_slice %242 {offsets = [0, 160], sizes = [8, 32], strides = [1, 1]} : vector<8x256xf32> to vector<8x32xf32>
    %253 = arith.mulf %252, %223 : vector<8x32xf32>
    %254 = vector.extract_strided_slice %242 {offsets = [0, 128], sizes = [8, 32], strides = [1, 1]} : vector<8x256xf32> to vector<8x32xf32>
    %255 = arith.mulf %254, %246 : vector<8x32xf32>
    %256 = arith.addf %253, %255 : vector<8x32xf32>
    %257 = vector.extract_strided_slice %242 {offsets = [0, 64], sizes = [8, 32], strides = [1, 1]} : vector<8x256xf32> to vector<8x32xf32>
    %258 = math.tanh %251 : vector<8x32xf32>
    %259 = arith.mulf %257, %258 : vector<8x32xf32>
    %260 = vector.extract_strided_slice %242 {offsets = [0, 192], sizes = [8, 32], strides = [1, 1]} : vector<8x256xf32> to vector<8x32xf32>
    %261 = math.tanh %256 : vector<8x32xf32>
    %262 = arith.mulf %260, %261 : vector<8x32xf32>
    %c48_79 = arith.constant 48 : index
    %c0_80 = arith.constant 0 : index
    %263 = vector.load %arg28[%c48_79, %c0_80] : memref<64x64xf32, #tpu.memory_space<vmem>>, vector<8x32xf32>
    tpu.vector_store %arg28[%c48_79, %c0_80], %259 {strides = array<i32>} : memref<64x64xf32, #tpu.memory_space<vmem>>, vector<8x32xf32>,
    %c8_81 = arith.constant 8 : index
    %c32_82 = arith.constant 32 : index
    %264 = vector.load %arg28[%c8_81, %c32_82] : memref<64x64xf32, #tpu.memory_space<vmem>>, vector<8x32xf32>
    tpu.vector_store %arg28[%c8_81, %c32_82], %262 {strides = array<i32>} : memref<64x64xf32, #tpu.memory_space<vmem>>, vector<8x32xf32>,
    %265 = tpu.concatenate %259, %262 in 1 : vector<8x32xf32>, vector<8x32xf32> -> vector<8x64xf32>
    %cst_83 = arith.constant dense<0.000000e+00> : vector<8x256xf32>
    %266 = tpu.matmul %265, %31, %cst_83 {dimension_numbers = #tpu.dot_dimension_numbers<[1], [0], [0], [1], [0, 0, 1, 1], [], []>} : vector<8x64xf32>, vector<64x256xf32>, vector<8x256xf32> -> vector<8x256xf32>
    %c56_84 = arith.constant 56 : index
    %c0_85 = arith.constant 0 : index
    %267 = vector.load %arg29[%c56_84, %c0_85] : memref<64x256xf32, #tpu.memory_space<vmem>>, vector<8x128xf32>
    %c0_86 = arith.constant 0 : index
    %c128_87 = arith.constant 128 : index
    %268 = vector.load %arg29[%c0_86, %c128_87] : memref<64x256xf32, #tpu.memory_space<vmem>>, vector<8x128xf32>
    %269 = tpu.concatenate %267, %268 in 1 : vector<8x128xf32>, vector<8x128xf32> -> vector<8x256xf32>
    %270 = arith.addf %269, %266 : vector<8x256xf32>
    %271 = arith.negf %270 : vector<8x256xf32>
    %272 = math.exp %271 : vector<8x256xf32>
    %cst_88 = arith.constant 1.000000e+00 : f32
    %273 = vector.broadcast %cst_88 : f32 to vector<8x256xf32>
    %274 = arith.addf %273, %272 : vector<8x256xf32>
    %275 = arith.divf %273, %274 : vector<8x256xf32>
    %276 = vector.extract_strided_slice %270 {offsets = [0, 96], sizes = [8, 32], strides = [1, 1]} : vector<8x256xf32> to vector<8x32xf32>
    %277 = math.tanh %276 : vector<8x32xf32>
    %278 = vector.extract_strided_slice %270 {offsets = [0, 224], sizes = [8, 32], strides = [1, 1]} : vector<8x256xf32> to vector<8x32xf32>
    %279 = math.tanh %278 : vector<8x32xf32>
    %280 = vector.extract_strided_slice %275 {offsets = [0, 32], sizes = [8, 32], strides = [1, 1]} : vector<8x256xf32> to vector<8x32xf32>
    %281 = arith.mulf %280, %251 : vector<8x32xf32>
    %282 = vector.extract_strided_slice %275 {offsets = [0, 0], sizes = [8, 32], strides = [1, 1]} : vector<8x256xf32> to vector<8x32xf32>
    %283 = arith.mulf %282, %277 : vector<8x32xf32>
    %284 = arith.addf %281, %283 : vector<8x32xf32>
    %285 = vector.extract_strided_slice %275 {offsets = [0, 160], sizes = [8, 32], strides = [1, 1]} : vector<8x256xf32> to vector<8x32xf32>
    %286 = arith.mulf %285, %256 : vector<8x32xf32>
    %287 = vector.extract_strided_slice %275 {offsets = [0, 128], sizes = [8, 32], strides = [1, 1]} : vector<8x256xf32> to vector<8x32xf32>
    %288 = arith.mulf %287, %279 : vector<8x32xf32>
    %289 = arith.addf %286, %288 : vector<8x32xf32>
    %290 = vector.extract_strided_slice %275 {offsets = [0, 64], sizes = [8, 32], strides = [1, 1]} : vector<8x256xf32> to vector<8x32xf32>
    %291 = math.tanh %284 : vector<8x32xf32>
    %292 = arith.mulf %290, %291 : vector<8x32xf32>
    %293 = vector.extract_strided_slice %275 {offsets = [0, 192], sizes = [8, 32], strides = [1, 1]} : vector<8x256xf32> to vector<8x32xf32>
    %294 = math.tanh %289 : vector<8x32xf32>
    %295 = arith.mulf %293, %294 : vector<8x32xf32>
    %c56_89 = arith.constant 56 : index
    %c0_90 = arith.constant 0 : index
    %296 = vector.load %arg28[%c56_89, %c0_90] : memref<64x64xf32, #tpu.memory_space<vmem>>, vector<8x32xf32>
    tpu.vector_store %arg28[%c56_89, %c0_90], %292 {strides = array<i32>} : memref<64x64xf32, #tpu.memory_space<vmem>>, vector<8x32xf32>,
    %c0_91 = arith.constant 0 : index
    %c32_92 = arith.constant 32 : index
    %297 = vector.load %arg28[%c0_91, %c32_92] : memref<64x64xf32, #tpu.memory_space<vmem>>, vector<8x32xf32>
    tpu.vector_store %arg28[%c0_91, %c32_92], %295 {strides = array<i32>} : memref<64x64xf32, #tpu.memory_space<vmem>>, vector<8x32xf32>,
    %c0_93 = arith.constant 0 : index
    %c0_94 = arith.constant 0 : index
    %298 = vector.load %arg28[%c0_93, %c0_94] : memref<64x64xf32, #tpu.memory_space<vmem>>, vector<64x64xf32>
    %c0_95 = arith.constant 0 : index
    %c0_96 = arith.constant 0 : index
    %299 = vector.load %arg6[%c0_95, %c0_96] : memref<64x256xf32, #tpu.memory_space<vmem>>, vector<64x256xf32>
    %cst_97 = arith.constant dense<0.000000e+00> : vector<64x256xf32>
    %300 = tpu.matmul %298, %299, %cst_97 {dimension_numbers = #tpu.dot_dimension_numbers<[1], [0], [0], [1], [0, 0, 1, 1], [], []>} : vector<64x64xf32>, vector<64x256xf32>, vector<64x256xf32> -> vector<64x256xf32>
    %c0_98 = arith.constant 0 : index
    %c0_99 = arith.constant 0 : index
    %301 = vector.load %arg8[%c0_98, %c0_99] : memref<1x256xf32, #tpu.memory_space<vmem>>, vector<1x256xf32>
    %302 = vector.broadcast %301 : vector<1x256xf32> to vector<64x256xf32>
    %303 = arith.addf %300, %302 : vector<64x256xf32>
    %c0_100 = arith.constant 0 : index
    %c0_101 = arith.constant 0 : index
    %304 = vector.load %arg29[%c0_100, %c0_101] : memref<64x256xf32, #tpu.memory_space<vmem>>, vector<64x256xf32>
    tpu.vector_store %arg29[%c0_100, %c0_101], %303 {strides = array<i32>} : memref<64x256xf32, #tpu.memory_space<vmem>>, vector<64x256xf32>,
    %c0_102 = arith.constant 0 : index
    %c0_103 = arith.constant 0 : index
    %305 = vector.load %arg7[%c0_102, %c0_103] : memref<64x256xf32, #tpu.memory_space<vmem>>, vector<64x256xf32>
    %cst_104 = arith.constant 0.000000e+00 : f32
    %306 = vector.broadcast %cst_104 : f32 to vector<8x64xf32>
    %cst_105 = arith.constant 0.000000e+00 : f32
    %307 = vector.broadcast %cst_105 : f32 to vector<8x32xf32>
    %cst_106 = arith.constant 0.000000e+00 : f32
    %308 = vector.broadcast %cst_106 : f32 to vector<8x32xf32>
    %cst_107 = arith.constant dense<0.000000e+00> : vector<8x256xf32>
    %309 = tpu.matmul %306, %305, %cst_107 {dimension_numbers = #tpu.dot_dimension_numbers<[1], [0], [0], [1], [0, 0, 1, 1], [], []>} : vector<8x64xf32>, vector<64x256xf32>, vector<8x256xf32> -> vector<8x256xf32>
    %c0_108 = arith.constant 0 : index
    %c0_109 = arith.constant 0 : index
    %310 = vector.load %arg29[%c0_108, %c0_109] : memref<64x256xf32, #tpu.memory_space<vmem>>, vector<8x128xf32>
    %c56_110 = arith.constant 56 : index
    %c128_111 = arith.constant 128 : index
    %311 = vector.load %arg29[%c56_110, %c128_111] : memref<64x256xf32, #tpu.memory_space<vmem>>, vector<8x128xf32>
    %312 = tpu.concatenate %310, %311 in 1 : vector<8x128xf32>, vector<8x128xf32> -> vector<8x256xf32>
    %313 = arith.addf %312, %309 : vector<8x256xf32>
    %314 = arith.negf %313 : vector<8x256xf32>
    %315 = math.exp %314 : vector<8x256xf32>
    %cst_112 = arith.constant 1.000000e+00 : f32
    %316 = vector.broadcast %cst_112 : f32 to vector<8x256xf32>
    %317 = arith.addf %316, %315 : vector<8x256xf32>
    %318 = arith.divf %316, %317 : vector<8x256xf32>
    %319 = vector.extract_strided_slice %313 {offsets = [0, 96], sizes = [8, 32], strides = [1, 1]} : vector<8x256xf32> to vector<8x32xf32>
    %320 = math.tanh %319 : vector<8x32xf32>
    %321 = vector.extract_strided_slice %313 {offsets = [0, 224], sizes = [8, 32], strides = [1, 1]} : vector<8x256xf32> to vector<8x32xf32>
    %322 = math.tanh %321 : vector<8x32xf32>
    %323 = vector.extract_strided_slice %318 {offsets = [0, 32], sizes = [8, 32], strides = [1, 1]} : vector<8x256xf32> to vector<8x32xf32>
    %324 = arith.mulf %323, %307 : vector<8x32xf32>
    %325 = vector.extract_strided_slice %318 {offsets = [0, 0], sizes = [8, 32], strides = [1, 1]} : vector<8x256xf32> to vector<8x32xf32>
    %326 = arith.mulf %325, %320 : vector<8x32xf32>
    %327 = arith.addf %324, %326 : vector<8x32xf32>
    %328 = vector.extract_strided_slice %318 {offsets = [0, 160], sizes = [8, 32], strides = [1, 1]} : vector<8x256xf32> to vector<8x32xf32>
    %329 = arith.mulf %328, %308 : vector<8x32xf32>
    %330 = vector.extract_strided_slice %318 {offsets = [0, 128], sizes = [8, 32], strides = [1, 1]} : vector<8x256xf32> to vector<8x32xf32>
    %331 = arith.mulf %330, %322 : vector<8x32xf32>
    %332 = arith.addf %329, %331 : vector<8x32xf32>
    %333 = vector.extract_strided_slice %318 {offsets = [0, 64], sizes = [8, 32], strides = [1, 1]} : vector<8x256xf32> to vector<8x32xf32>
    %334 = math.tanh %327 : vector<8x32xf32>
    %335 = arith.mulf %333, %334 : vector<8x32xf32>
    %336 = vector.extract_strided_slice %318 {offsets = [0, 192], sizes = [8, 32], strides = [1, 1]} : vector<8x256xf32> to vector<8x32xf32>
    %337 = math.tanh %332 : vector<8x32xf32>
    %338 = arith.mulf %336, %337 : vector<8x32xf32>
    %c0_113 = arith.constant 0 : index
    %c0_114 = arith.constant 0 : index
    %339 = vector.load %arg28[%c0_113, %c0_114] : memref<64x64xf32, #tpu.memory_space<vmem>>, vector<8x32xf32>
    tpu.vector_store %arg28[%c0_113, %c0_114], %335 {strides = array<i32>} : memref<64x64xf32, #tpu.memory_space<vmem>>, vector<8x32xf32>,
    %c56_115 = arith.constant 56 : index
    %c32_116 = arith.constant 32 : index
    %340 = vector.load %arg28[%c56_115, %c32_116] : memref<64x64xf32, #tpu.memory_space<vmem>>, vector<8x32xf32>
    tpu.vector_store %arg28[%c56_115, %c32_116], %338 {strides = array<i32>} : memref<64x64xf32, #tpu.memory_space<vmem>>, vector<8x32xf32>,
    %341 = tpu.concatenate %335, %338 in 1 : vector<8x32xf32>, vector<8x32xf32> -> vector<8x64xf32>
    %cst_117 = arith.constant dense<0.000000e+00> : vector<8x256xf32>
    %342 = tpu.matmul %341, %305, %cst_117 {dimension_numbers = #tpu.dot_dimension_numbers<[1], [0], [0], [1], [0, 0, 1, 1], [], []>} : vector<8x64xf32>, vector<64x256xf32>, vector<8x256xf32> -> vector<8x256xf32>
    %c8_118 = arith.constant 8 : index
    %c0_119 = arith.constant 0 : index
    %343 = vector.load %arg29[%c8_118, %c0_119] : memref<64x256xf32, #tpu.memory_space<vmem>>, vector<8x128xf32>
    %c48_120 = arith.constant 48 : index
    %c128_121 = arith.constant 128 : index
    %344 = vector.load %arg29[%c48_120, %c128_121] : memref<64x256xf32, #tpu.memory_space<vmem>>, vector<8x128xf32>
    %345 = tpu.concatenate %343, %344 in 1 : vector<8x128xf32>, vector<8x128xf32> -> vector<8x256xf32>
    %346 = arith.addf %345, %342 : vector<8x256xf32>
    %347 = arith.negf %346 : vector<8x256xf32>
    %348 = math.exp %347 : vector<8x256xf32>
    %cst_122 = arith.constant 1.000000e+00 : f32
    %349 = vector.broadcast %cst_122 : f32 to vector<8x256xf32>
    %350 = arith.addf %349, %348 : vector<8x256xf32>
    %351 = arith.divf %349, %350 : vector<8x256xf32>
    %352 = vector.extract_strided_slice %346 {offsets = [0, 96], sizes = [8, 32], strides = [1, 1]} : vector<8x256xf32> to vector<8x32xf32>
    %353 = math.tanh %352 : vector<8x32xf32>
    %354 = vector.extract_strided_slice %346 {offsets = [0, 224], sizes = [8, 32], strides = [1, 1]} : vector<8x256xf32> to vector<8x32xf32>
    %355 = math.tanh %354 : vector<8x32xf32>
    %356 = vector.extract_strided_slice %351 {offsets = [0, 32], sizes = [8, 32], strides = [1, 1]} : vector<8x256xf32> to vector<8x32xf32>
    %357 = arith.mulf %356, %327 : vector<8x32xf32>
    %358 = vector.extract_strided_slice %351 {offsets = [0, 0], sizes = [8, 32], strides = [1, 1]} : vector<8x256xf32> to vector<8x32xf32>
    %359 = arith.mulf %358, %353 : vector<8x32xf32>
    %360 = arith.addf %357, %359 : vector<8x32xf32>
    %361 = vector.extract_strided_slice %351 {offsets = [0, 160], sizes = [8, 32], strides = [1, 1]} : vector<8x256xf32> to vector<8x32xf32>
    %362 = arith.mulf %361, %332 : vector<8x32xf32>
    %363 = vector.extract_strided_slice %351 {offsets = [0, 128], sizes = [8, 32], strides = [1, 1]} : vector<8x256xf32> to vector<8x32xf32>
    %364 = arith.mulf %363, %355 : vector<8x32xf32>
    %365 = arith.addf %362, %364 : vector<8x32xf32>
    %366 = vector.extract_strided_slice %351 {offsets = [0, 64], sizes = [8, 32], strides = [1, 1]} : vector<8x256xf32> to vector<8x32xf32>
    %367 = math.tanh %360 : vector<8x32xf32>
    %368 = arith.mulf %366, %367 : vector<8x32xf32>
    %369 = vector.extract_strided_slice %351 {offsets = [0, 192], sizes = [8, 32], strides = [1, 1]} : vector<8x256xf32> to vector<8x32xf32>
    %370 = math.tanh %365 : vector<8x32xf32>
    %371 = arith.mulf %369, %370 : vector<8x32xf32>
    %c8_123 = arith.constant 8 : index
    %c0_124 = arith.constant 0 : index
    %372 = vector.load %arg28[%c8_123, %c0_124] : memref<64x64xf32, #tpu.memory_space<vmem>>, vector<8x32xf32>
    tpu.vector_store %arg28[%c8_123, %c0_124], %368 {strides = array<i32>} : memref<64x64xf32, #tpu.memory_space<vmem>>, vector<8x32xf32>,
    %c48_125 = arith.constant 48 : index
    %c32_126 = arith.constant 32 : index
    %373 = vector.load %arg28[%c48_125, %c32_126] : memref<64x64xf32, #tpu.memory_space<vmem>>, vector<8x32xf32>
    tpu.vector_store %arg28[%c48_125, %c32_126], %371 {strides = array<i32>} : memref<64x64xf32, #tpu.memory_space<vmem>>, vector<8x32xf32>,
    %374 = tpu.concatenate %368, %371 in 1 : vector<8x32xf32>, vector<8x32xf32> -> vector<8x64xf32>
    %cst_127 = arith.constant dense<0.000000e+00> : vector<8x256xf32>
    %375 = tpu.matmul %374, %305, %cst_127 {dimension_numbers = #tpu.dot_dimension_numbers<[1], [0], [0], [1], [0, 0, 1, 1], [], []>} : vector<8x64xf32>, vector<64x256xf32>, vector<8x256xf32> -> vector<8x256xf32>
    %c16_128 = arith.constant 16 : index
    %c0_129 = arith.constant 0 : index
    %376 = vector.load %arg29[%c16_128, %c0_129] : memref<64x256xf32, #tpu.memory_space<vmem>>, vector<8x128xf32>
    %c40_130 = arith.constant 40 : index
    %c128_131 = arith.constant 128 : index
    %377 = vector.load %arg29[%c40_130, %c128_131] : memref<64x256xf32, #tpu.memory_space<vmem>>, vector<8x128xf32>
    %378 = tpu.concatenate %376, %377 in 1 : vector<8x128xf32>, vector<8x128xf32> -> vector<8x256xf32>
    %379 = arith.addf %378, %375 : vector<8x256xf32>
    %380 = arith.negf %379 : vector<8x256xf32>
    %381 = math.exp %380 : vector<8x256xf32>
    %cst_132 = arith.constant 1.000000e+00 : f32
    %382 = vector.broadcast %cst_132 : f32 to vector<8x256xf32>
    %383 = arith.addf %382, %381 : vector<8x256xf32>
    %384 = arith.divf %382, %383 : vector<8x256xf32>
    %385 = vector.extract_strided_slice %379 {offsets = [0, 96], sizes = [8, 32], strides = [1, 1]} : vector<8x256xf32> to vector<8x32xf32>
    %386 = math.tanh %385 : vector<8x32xf32>
    %387 = vector.extract_strided_slice %379 {offsets = [0, 224], sizes = [8, 32], strides = [1, 1]} : vector<8x256xf32> to vector<8x32xf32>
    %388 = math.tanh %387 : vector<8x32xf32>
    %389 = vector.extract_strided_slice %384 {offsets = [0, 32], sizes = [8, 32], strides = [1, 1]} : vector<8x256xf32> to vector<8x32xf32>
    %390 = arith.mulf %389, %360 : vector<8x32xf32>
    %391 = vector.extract_strided_slice %384 {offsets = [0, 0], sizes = [8, 32], strides = [1, 1]} : vector<8x256xf32> to vector<8x32xf32>
    %392 = arith.mulf %391, %386 : vector<8x32xf32>
    %393 = arith.addf %390, %392 : vector<8x32xf32>
    %394 = vector.extract_strided_slice %384 {offsets = [0, 160], sizes = [8, 32], strides = [1, 1]} : vector<8x256xf32> to vector<8x32xf32>
    %395 = arith.mulf %394, %365 : vector<8x32xf32>
    %396 = vector.extract_strided_slice %384 {offsets = [0, 128], sizes = [8, 32], strides = [1, 1]} : vector<8x256xf32> to vector<8x32xf32>
    %397 = arith.mulf %396, %388 : vector<8x32xf32>
    %398 = arith.addf %395, %397 : vector<8x32xf32>
    %399 = vector.extract_strided_slice %384 {offsets = [0, 64], sizes = [8, 32], strides = [1, 1]} : vector<8x256xf32> to vector<8x32xf32>
    %400 = math.tanh %393 : vector<8x32xf32>
    %401 = arith.mulf %399, %400 : vector<8x32xf32>
    %402 = vector.extract_strided_slice %384 {offsets = [0, 192], sizes = [8, 32], strides = [1, 1]} : vector<8x256xf32> to vector<8x32xf32>
    %403 = math.tanh %398 : vector<8x32xf32>
    %404 = arith.mulf %402, %403 : vector<8x32xf32>
    %c16_133 = arith.constant 16 : index
    %c0_134 = arith.constant 0 : index
    %405 = vector.load %arg28[%c16_133, %c0_134] : memref<64x64xf32, #tpu.memory_space<vmem>>, vector<8x32xf32>
    tpu.vector_store %arg28[%c16_133, %c0_134], %401 {strides = array<i32>} : memref<64x64xf32, #tpu.memory_space<vmem>>, vector<8x32xf32>,
    %c40_135 = arith.constant 40 : index
    %c32_136 = arith.constant 32 : index
    %406 = vector.load %arg28[%c40_135, %c32_136] : memref<64x64xf32, #tpu.memory_space<vmem>>, vector<8x32xf32>
    tpu.vector_store %arg28[%c40_135, %c32_136], %404 {strides = array<i32>} : memref<64x64xf32, #tpu.memory_space<vmem>>, vector<8x32xf32>,
    %407 = tpu.concatenate %401, %404 in 1 : vector<8x32xf32>, vector<8x32xf32> -> vector<8x64xf32>
    %cst_137 = arith.constant dense<0.000000e+00> : vector<8x256xf32>
    %408 = tpu.matmul %407, %305, %cst_137 {dimension_numbers = #tpu.dot_dimension_numbers<[1], [0], [0], [1], [0, 0, 1, 1], [], []>} : vector<8x64xf32>, vector<64x256xf32>, vector<8x256xf32> -> vector<8x256xf32>
    %c24_138 = arith.constant 24 : index
    %c0_139 = arith.constant 0 : index
    %409 = vector.load %arg29[%c24_138, %c0_139] : memref<64x256xf32, #tpu.memory_space<vmem>>, vector<8x128xf32>
    %c32_140 = arith.constant 32 : index
    %c128_141 = arith.constant 128 : index
    %410 = vector.load %arg29[%c32_140, %c128_141] : memref<64x256xf32, #tpu.memory_space<vmem>>, vector<8x128xf32>
    %411 = tpu.concatenate %409, %410 in 1 : vector<8x128xf32>, vector<8x128xf32> -> vector<8x256xf32>
    %412 = arith.addf %411, %408 : vector<8x256xf32>
    %413 = arith.negf %412 : vector<8x256xf32>
    %414 = math.exp %413 : vector<8x256xf32>
    %cst_142 = arith.constant 1.000000e+00 : f32
    %415 = vector.broadcast %cst_142 : f32 to vector<8x256xf32>
    %416 = arith.addf %415, %414 : vector<8x256xf32>
    %417 = arith.divf %415, %416 : vector<8x256xf32>
    %418 = vector.extract_strided_slice %412 {offsets = [0, 96], sizes = [8, 32], strides = [1, 1]} : vector<8x256xf32> to vector<8x32xf32>
    %419 = math.tanh %418 : vector<8x32xf32>
    %420 = vector.extract_strided_slice %412 {offsets = [0, 224], sizes = [8, 32], strides = [1, 1]} : vector<8x256xf32> to vector<8x32xf32>
    %421 = math.tanh %420 : vector<8x32xf32>
    %422 = vector.extract_strided_slice %417 {offsets = [0, 32], sizes = [8, 32], strides = [1, 1]} : vector<8x256xf32> to vector<8x32xf32>
    %423 = arith.mulf %422, %393 : vector<8x32xf32>
    %424 = vector.extract_strided_slice %417 {offsets = [0, 0], sizes = [8, 32], strides = [1, 1]} : vector<8x256xf32> to vector<8x32xf32>
    %425 = arith.mulf %424, %419 : vector<8x32xf32>
    %426 = arith.addf %423, %425 : vector<8x32xf32>
    %427 = vector.extract_strided_slice %417 {offsets = [0, 160], sizes = [8, 32], strides = [1, 1]} : vector<8x256xf32> to vector<8x32xf32>
    %428 = arith.mulf %427, %398 : vector<8x32xf32>
    %429 = vector.extract_strided_slice %417 {offsets = [0, 128], sizes = [8, 32], strides = [1, 1]} : vector<8x256xf32> to vector<8x32xf32>
    %430 = arith.mulf %429, %421 : vector<8x32xf32>
    %431 = arith.addf %428, %430 : vector<8x32xf32>
    %432 = vector.extract_strided_slice %417 {offsets = [0, 64], sizes = [8, 32], strides = [1, 1]} : vector<8x256xf32> to vector<8x32xf32>
    %433 = math.tanh %426 : vector<8x32xf32>
    %434 = arith.mulf %432, %433 : vector<8x32xf32>
    %435 = vector.extract_strided_slice %417 {offsets = [0, 192], sizes = [8, 32], strides = [1, 1]} : vector<8x256xf32> to vector<8x32xf32>
    %436 = math.tanh %431 : vector<8x32xf32>
    %437 = arith.mulf %435, %436 : vector<8x32xf32>
    %c24_143 = arith.constant 24 : index
    %c0_144 = arith.constant 0 : index
    %438 = vector.load %arg28[%c24_143, %c0_144] : memref<64x64xf32, #tpu.memory_space<vmem>>, vector<8x32xf32>
    tpu.vector_store %arg28[%c24_143, %c0_144], %434 {strides = array<i32>} : memref<64x64xf32, #tpu.memory_space<vmem>>, vector<8x32xf32>,
    %c32_145 = arith.constant 32 : index
    %c32_146 = arith.constant 32 : index
    %439 = vector.load %arg28[%c32_145, %c32_146] : memref<64x64xf32, #tpu.memory_space<vmem>>, vector<8x32xf32>
    tpu.vector_store %arg28[%c32_145, %c32_146], %437 {strides = array<i32>} : memref<64x64xf32, #tpu.memory_space<vmem>>, vector<8x32xf32>,
    %440 = tpu.concatenate %434, %437 in 1 : vector<8x32xf32>, vector<8x32xf32> -> vector<8x64xf32>
    %cst_147 = arith.constant dense<0.000000e+00> : vector<8x256xf32>
    %441 = tpu.matmul %440, %305, %cst_147 {dimension_numbers = #tpu.dot_dimension_numbers<[1], [0], [0], [1], [0, 0, 1, 1], [], []>} : vector<8x64xf32>, vector<64x256xf32>, vector<8x256xf32> -> vector<8x256xf32>
    %c32_148 = arith.constant 32 : index
    %c0_149 = arith.constant 0 : index
    %442 = vector.load %arg29[%c32_148, %c0_149] : memref<64x256xf32, #tpu.memory_space<vmem>>, vector<8x128xf32>
    %c24_150 = arith.constant 24 : index
    %c128_151 = arith.constant 128 : index
    %443 = vector.load %arg29[%c24_150, %c128_151] : memref<64x256xf32, #tpu.memory_space<vmem>>, vector<8x128xf32>
    %444 = tpu.concatenate %442, %443 in 1 : vector<8x128xf32>, vector<8x128xf32> -> vector<8x256xf32>
    %445 = arith.addf %444, %441 : vector<8x256xf32>
    %446 = arith.negf %445 : vector<8x256xf32>
    %447 = math.exp %446 : vector<8x256xf32>
    %cst_152 = arith.constant 1.000000e+00 : f32
    %448 = vector.broadcast %cst_152 : f32 to vector<8x256xf32>
    %449 = arith.addf %448, %447 : vector<8x256xf32>
    %450 = arith.divf %448, %449 : vector<8x256xf32>
    %451 = vector.extract_strided_slice %445 {offsets = [0, 96], sizes = [8, 32], strides = [1, 1]} : vector<8x256xf32> to vector<8x32xf32>
    %452 = math.tanh %451 : vector<8x32xf32>
    %453 = vector.extract_strided_slice %445 {offsets = [0, 224], sizes = [8, 32], strides = [1, 1]} : vector<8x256xf32> to vector<8x32xf32>
    %454 = math.tanh %453 : vector<8x32xf32>
    %455 = vector.extract_strided_slice %450 {offsets = [0, 32], sizes = [8, 32], strides = [1, 1]} : vector<8x256xf32> to vector<8x32xf32>
    %456 = arith.mulf %455, %426 : vector<8x32xf32>
    %457 = vector.extract_strided_slice %450 {offsets = [0, 0], sizes = [8, 32], strides = [1, 1]} : vector<8x256xf32> to vector<8x32xf32>
    %458 = arith.mulf %457, %452 : vector<8x32xf32>
    %459 = arith.addf %456, %458 : vector<8x32xf32>
    %460 = vector.extract_strided_slice %450 {offsets = [0, 160], sizes = [8, 32], strides = [1, 1]} : vector<8x256xf32> to vector<8x32xf32>
    %461 = arith.mulf %460, %431 : vector<8x32xf32>
    %462 = vector.extract_strided_slice %450 {offsets = [0, 128], sizes = [8, 32], strides = [1, 1]} : vector<8x256xf32> to vector<8x32xf32>
    %463 = arith.mulf %462, %454 : vector<8x32xf32>
    %464 = arith.addf %461, %463 : vector<8x32xf32>
    %465 = vector.extract_strided_slice %450 {offsets = [0, 64], sizes = [8, 32], strides = [1, 1]} : vector<8x256xf32> to vector<8x32xf32>
    %466 = math.tanh %459 : vector<8x32xf32>
    %467 = arith.mulf %465, %466 : vector<8x32xf32>
    %468 = vector.extract_strided_slice %450 {offsets = [0, 192], sizes = [8, 32], strides = [1, 1]} : vector<8x256xf32> to vector<8x32xf32>
    %469 = math.tanh %464 : vector<8x32xf32>
    %470 = arith.mulf %468, %469 : vector<8x32xf32>
    %c32_153 = arith.constant 32 : index
    %c0_154 = arith.constant 0 : index
    %471 = vector.load %arg28[%c32_153, %c0_154] : memref<64x64xf32, #tpu.memory_space<vmem>>, vector<8x32xf32>
    tpu.vector_store %arg28[%c32_153, %c0_154], %467 {strides = array<i32>} : memref<64x64xf32, #tpu.memory_space<vmem>>, vector<8x32xf32>,
    %c24_155 = arith.constant 24 : index
    %c32_156 = arith.constant 32 : index
    %472 = vector.load %arg28[%c24_155, %c32_156] : memref<64x64xf32, #tpu.memory_space<vmem>>, vector<8x32xf32>
    tpu.vector_store %arg28[%c24_155, %c32_156], %470 {strides = array<i32>} : memref<64x64xf32, #tpu.memory_space<vmem>>, vector<8x32xf32>,
    %473 = tpu.concatenate %467, %470 in 1 : vector<8x32xf32>, vector<8x32xf32> -> vector<8x64xf32>
    %cst_157 = arith.constant dense<0.000000e+00> : vector<8x256xf32>
    %474 = tpu.matmul %473, %305, %cst_157 {dimension_numbers = #tpu.dot_dimension_numbers<[1], [0], [0], [1], [0, 0, 1, 1], [], []>} : vector<8x64xf32>, vector<64x256xf32>, vector<8x256xf32> -> vector<8x256xf32>
    %c40_158 = arith.constant 40 : index
    %c0_159 = arith.constant 0 : index
    %475 = vector.load %arg29[%c40_158, %c0_159] : memref<64x256xf32, #tpu.memory_space<vmem>>, vector<8x128xf32>
    %c16_160 = arith.constant 16 : index
    %c128_161 = arith.constant 128 : index
    %476 = vector.load %arg29[%c16_160, %c128_161] : memref<64x256xf32, #tpu.memory_space<vmem>>, vector<8x128xf32>
    %477 = tpu.concatenate %475, %476 in 1 : vector<8x128xf32>, vector<8x128xf32> -> vector<8x256xf32>
    %478 = arith.addf %477, %474 : vector<8x256xf32>
    %479 = arith.negf %478 : vector<8x256xf32>
    %480 = math.exp %479 : vector<8x256xf32>
    %cst_162 = arith.constant 1.000000e+00 : f32
    %481 = vector.broadcast %cst_162 : f32 to vector<8x256xf32>
    %482 = arith.addf %481, %480 : vector<8x256xf32>
    %483 = arith.divf %481, %482 : vector<8x256xf32>
    %484 = vector.extract_strided_slice %478 {offsets = [0, 96], sizes = [8, 32], strides = [1, 1]} : vector<8x256xf32> to vector<8x32xf32>
    %485 = math.tanh %484 : vector<8x32xf32>
    %486 = vector.extract_strided_slice %478 {offsets = [0, 224], sizes = [8, 32], strides = [1, 1]} : vector<8x256xf32> to vector<8x32xf32>
    %487 = math.tanh %486 : vector<8x32xf32>
    %488 = vector.extract_strided_slice %483 {offsets = [0, 32], sizes = [8, 32], strides = [1, 1]} : vector<8x256xf32> to vector<8x32xf32>
    %489 = arith.mulf %488, %459 : vector<8x32xf32>
    %490 = vector.extract_strided_slice %483 {offsets = [0, 0], sizes = [8, 32], strides = [1, 1]} : vector<8x256xf32> to vector<8x32xf32>
    %491 = arith.mulf %490, %485 : vector<8x32xf32>
    %492 = arith.addf %489, %491 : vector<8x32xf32>
    %493 = vector.extract_strided_slice %483 {offsets = [0, 160], sizes = [8, 32], strides = [1, 1]} : vector<8x256xf32> to vector<8x32xf32>
    %494 = arith.mulf %493, %464 : vector<8x32xf32>
    %495 = vector.extract_strided_slice %483 {offsets = [0, 128], sizes = [8, 32], strides = [1, 1]} : vector<8x256xf32> to vector<8x32xf32>
    %496 = arith.mulf %495, %487 : vector<8x32xf32>
    %497 = arith.addf %494, %496 : vector<8x32xf32>
    %498 = vector.extract_strided_slice %483 {offsets = [0, 64], sizes = [8, 32], strides = [1, 1]} : vector<8x256xf32> to vector<8x32xf32>
    %499 = math.tanh %492 : vector<8x32xf32>
    %500 = arith.mulf %498, %499 : vector<8x32xf32>
    %501 = vector.extract_strided_slice %483 {offsets = [0, 192], sizes = [8, 32], strides = [1, 1]} : vector<8x256xf32> to vector<8x32xf32>
    %502 = math.tanh %497 : vector<8x32xf32>
    %503 = arith.mulf %501, %502 : vector<8x32xf32>
    %c40_163 = arith.constant 40 : index
    %c0_164 = arith.constant 0 : index
    %504 = vector.load %arg28[%c40_163, %c0_164] : memref<64x64xf32, #tpu.memory_space<vmem>>, vector<8x32xf32>
    tpu.vector_store %arg28[%c40_163, %c0_164], %500 {strides = array<i32>} : memref<64x64xf32, #tpu.memory_space<vmem>>, vector<8x32xf32>,
    %c16_165 = arith.constant 16 : index
    %c32_166 = arith.constant 32 : index
    %505 = vector.load %arg28[%c16_165, %c32_166] : memref<64x64xf32, #tpu.memory_space<vmem>>, vector<8x32xf32>
    tpu.vector_store %arg28[%c16_165, %c32_166], %503 {strides = array<i32>} : memref<64x64xf32, #tpu.memory_space<vmem>>, vector<8x32xf32>,
    %506 = tpu.concatenate %500, %503 in 1 : vector<8x32xf32>, vector<8x32xf32> -> vector<8x64xf32>
    %cst_167 = arith.constant dense<0.000000e+00> : vector<8x256xf32>
    %507 = tpu.matmul %506, %305, %cst_167 {dimension_numbers = #tpu.dot_dimension_numbers<[1], [0], [0], [1], [0, 0, 1, 1], [], []>} : vector<8x64xf32>, vector<64x256xf32>, vector<8x256xf32> -> vector<8x256xf32>
    %c48_168 = arith.constant 48 : index
    %c0_169 = arith.constant 0 : index
    %508 = vector.load %arg29[%c48_168, %c0_169] : memref<64x256xf32, #tpu.memory_space<vmem>>, vector<8x128xf32>
    %c8_170 = arith.constant 8 : index
    %c128_171 = arith.constant 128 : index
    %509 = vector.load %arg29[%c8_170, %c128_171] : memref<64x256xf32, #tpu.memory_space<vmem>>, vector<8x128xf32>
    %510 = tpu.concatenate %508, %509 in 1 : vector<8x128xf32>, vector<8x128xf32> -> vector<8x256xf32>
    %511 = arith.addf %510, %507 : vector<8x256xf32>
    %512 = arith.negf %511 : vector<8x256xf32>
    %513 = math.exp %512 : vector<8x256xf32>
    %cst_172 = arith.constant 1.000000e+00 : f32
    %514 = vector.broadcast %cst_172 : f32 to vector<8x256xf32>
    %515 = arith.addf %514, %513 : vector<8x256xf32>
    %516 = arith.divf %514, %515 : vector<8x256xf32>
    %517 = vector.extract_strided_slice %511 {offsets = [0, 96], sizes = [8, 32], strides = [1, 1]} : vector<8x256xf32> to vector<8x32xf32>
    %518 = math.tanh %517 : vector<8x32xf32>
    %519 = vector.extract_strided_slice %511 {offsets = [0, 224], sizes = [8, 32], strides = [1, 1]} : vector<8x256xf32> to vector<8x32xf32>
    %520 = math.tanh %519 : vector<8x32xf32>
    %521 = vector.extract_strided_slice %516 {offsets = [0, 32], sizes = [8, 32], strides = [1, 1]} : vector<8x256xf32> to vector<8x32xf32>
    %522 = arith.mulf %521, %492 : vector<8x32xf32>
    %523 = vector.extract_strided_slice %516 {offsets = [0, 0], sizes = [8, 32], strides = [1, 1]} : vector<8x256xf32> to vector<8x32xf32>
    %524 = arith.mulf %523, %518 : vector<8x32xf32>
    %525 = arith.addf %522, %524 : vector<8x32xf32>
    %526 = vector.extract_strided_slice %516 {offsets = [0, 160], sizes = [8, 32], strides = [1, 1]} : vector<8x256xf32> to vector<8x32xf32>
    %527 = arith.mulf %526, %497 : vector<8x32xf32>
    %528 = vector.extract_strided_slice %516 {offsets = [0, 128], sizes = [8, 32], strides = [1, 1]} : vector<8x256xf32> to vector<8x32xf32>
    %529 = arith.mulf %528, %520 : vector<8x32xf32>
    %530 = arith.addf %527, %529 : vector<8x32xf32>
    %531 = vector.extract_strided_slice %516 {offsets = [0, 64], sizes = [8, 32], strides = [1, 1]} : vector<8x256xf32> to vector<8x32xf32>
    %532 = math.tanh %525 : vector<8x32xf32>
    %533 = arith.mulf %531, %532 : vector<8x32xf32>
    %534 = vector.extract_strided_slice %516 {offsets = [0, 192], sizes = [8, 32], strides = [1, 1]} : vector<8x256xf32> to vector<8x32xf32>
    %535 = math.tanh %530 : vector<8x32xf32>
    %536 = arith.mulf %534, %535 : vector<8x32xf32>
    %c48_173 = arith.constant 48 : index
    %c0_174 = arith.constant 0 : index
    %537 = vector.load %arg28[%c48_173, %c0_174] : memref<64x64xf32, #tpu.memory_space<vmem>>, vector<8x32xf32>
    tpu.vector_store %arg28[%c48_173, %c0_174], %533 {strides = array<i32>} : memref<64x64xf32, #tpu.memory_space<vmem>>, vector<8x32xf32>,
    %c8_175 = arith.constant 8 : index
    %c32_176 = arith.constant 32 : index
    %538 = vector.load %arg28[%c8_175, %c32_176] : memref<64x64xf32, #tpu.memory_space<vmem>>, vector<8x32xf32>
    tpu.vector_store %arg28[%c8_175, %c32_176], %536 {strides = array<i32>} : memref<64x64xf32, #tpu.memory_space<vmem>>, vector<8x32xf32>,
    %539 = tpu.concatenate %533, %536 in 1 : vector<8x32xf32>, vector<8x32xf32> -> vector<8x64xf32>
    %cst_177 = arith.constant dense<0.000000e+00> : vector<8x256xf32>
    %540 = tpu.matmul %539, %305, %cst_177 {dimension_numbers = #tpu.dot_dimension_numbers<[1], [0], [0], [1], [0, 0, 1, 1], [], []>} : vector<8x64xf32>, vector<64x256xf32>, vector<8x256xf32> -> vector<8x256xf32>
    %c56_178 = arith.constant 56 : index
    %c0_179 = arith.constant 0 : index
    %541 = vector.load %arg29[%c56_178, %c0_179] : memref<64x256xf32, #tpu.memory_space<vmem>>, vector<8x128xf32>
    %c0_180 = arith.constant 0 : index
    %c128_181 = arith.constant 128 : index
    %542 = vector.load %arg29[%c0_180, %c128_181] : memref<64x256xf32, #tpu.memory_space<vmem>>, vector<8x128xf32>
    %543 = tpu.concatenate %541, %542 in 1 : vector<8x128xf32>, vector<8x128xf32> -> vector<8x256xf32>
    %544 = arith.addf %543, %540 : vector<8x256xf32>
    %545 = arith.negf %544 : vector<8x256xf32>
    %546 = math.exp %545 : vector<8x256xf32>
    %cst_182 = arith.constant 1.000000e+00 : f32
    %547 = vector.broadcast %cst_182 : f32 to vector<8x256xf32>
    %548 = arith.addf %547, %546 : vector<8x256xf32>
    %549 = arith.divf %547, %548 : vector<8x256xf32>
    %550 = vector.extract_strided_slice %544 {offsets = [0, 96], sizes = [8, 32], strides = [1, 1]} : vector<8x256xf32> to vector<8x32xf32>
    %551 = math.tanh %550 : vector<8x32xf32>
    %552 = vector.extract_strided_slice %544 {offsets = [0, 224], sizes = [8, 32], strides = [1, 1]} : vector<8x256xf32> to vector<8x32xf32>
    %553 = math.tanh %552 : vector<8x32xf32>
    %554 = vector.extract_strided_slice %549 {offsets = [0, 32], sizes = [8, 32], strides = [1, 1]} : vector<8x256xf32> to vector<8x32xf32>
    %555 = arith.mulf %554, %525 : vector<8x32xf32>
    %556 = vector.extract_strided_slice %549 {offsets = [0, 0], sizes = [8, 32], strides = [1, 1]} : vector<8x256xf32> to vector<8x32xf32>
    %557 = arith.mulf %556, %551 : vector<8x32xf32>
    %558 = arith.addf %555, %557 : vector<8x32xf32>
    %559 = vector.extract_strided_slice %549 {offsets = [0, 160], sizes = [8, 32], strides = [1, 1]} : vector<8x256xf32> to vector<8x32xf32>
    %560 = arith.mulf %559, %530 : vector<8x32xf32>
    %561 = vector.extract_strided_slice %549 {offsets = [0, 128], sizes = [8, 32], strides = [1, 1]} : vector<8x256xf32> to vector<8x32xf32>
    %562 = arith.mulf %561, %553 : vector<8x32xf32>
    %563 = arith.addf %560, %562 : vector<8x32xf32>
    %564 = vector.extract_strided_slice %549 {offsets = [0, 64], sizes = [8, 32], strides = [1, 1]} : vector<8x256xf32> to vector<8x32xf32>
    %565 = math.tanh %558 : vector<8x32xf32>
    %566 = arith.mulf %564, %565 : vector<8x32xf32>
    %567 = vector.extract_strided_slice %549 {offsets = [0, 192], sizes = [8, 32], strides = [1, 1]} : vector<8x256xf32> to vector<8x32xf32>
    %568 = math.tanh %563 : vector<8x32xf32>
    %569 = arith.mulf %567, %568 : vector<8x32xf32>
    %c56_183 = arith.constant 56 : index
    %c0_184 = arith.constant 0 : index
    %570 = vector.load %arg28[%c56_183, %c0_184] : memref<64x64xf32, #tpu.memory_space<vmem>>, vector<8x32xf32>
    tpu.vector_store %arg28[%c56_183, %c0_184], %566 {strides = array<i32>} : memref<64x64xf32, #tpu.memory_space<vmem>>, vector<8x32xf32>,
    %c0_185 = arith.constant 0 : index
    %c32_186 = arith.constant 32 : index
    %571 = vector.load %arg28[%c0_185, %c32_186] : memref<64x64xf32, #tpu.memory_space<vmem>>, vector<8x32xf32>
    tpu.vector_store %arg28[%c0_185, %c32_186], %569 {strides = array<i32>} : memref<64x64xf32, #tpu.memory_space<vmem>>, vector<8x32xf32>,
    %c0_187 = arith.constant 0 : index
    %c0_188 = arith.constant 0 : index
    %572 = vector.load %arg28[%c0_187, %c0_188] : memref<64x64xf32, #tpu.memory_space<vmem>>, vector<64x64xf32>
    %c0_189 = arith.constant 0 : index
    %c0_190 = arith.constant 0 : index
    %573 = vector.load %arg9[%c0_189, %c0_190] : memref<64x256xf32, #tpu.memory_space<vmem>>, vector<64x256xf32>
    %cst_191 = arith.constant dense<0.000000e+00> : vector<64x256xf32>
    %574 = tpu.matmul %572, %573, %cst_191 {dimension_numbers = #tpu.dot_dimension_numbers<[1], [0], [0], [1], [0, 0, 1, 1], [], []>} : vector<64x64xf32>, vector<64x256xf32>, vector<64x256xf32> -> vector<64x256xf32>
    %c0_192 = arith.constant 0 : index
    %c0_193 = arith.constant 0 : index
    %575 = vector.load %arg11[%c0_192, %c0_193] : memref<1x256xf32, #tpu.memory_space<vmem>>, vector<1x256xf32>
    %576 = vector.broadcast %575 : vector<1x256xf32> to vector<64x256xf32>
    %577 = arith.addf %574, %576 : vector<64x256xf32>
    %c0_194 = arith.constant 0 : index
    %c0_195 = arith.constant 0 : index
    %578 = vector.load %arg29[%c0_194, %c0_195] : memref<64x256xf32, #tpu.memory_space<vmem>>, vector<64x256xf32>
    tpu.vector_store %arg29[%c0_194, %c0_195], %577 {strides = array<i32>} : memref<64x256xf32, #tpu.memory_space<vmem>>, vector<64x256xf32>,
    %c0_196 = arith.constant 0 : index
    %c0_197 = arith.constant 0 : index
    %579 = vector.load %arg10[%c0_196, %c0_197] : memref<64x256xf32, #tpu.memory_space<vmem>>, vector<64x256xf32>
    %cst_198 = arith.constant 0.000000e+00 : f32
    %580 = vector.broadcast %cst_198 : f32 to vector<8x64xf32>
    %cst_199 = arith.constant 0.000000e+00 : f32
    %581 = vector.broadcast %cst_199 : f32 to vector<8x32xf32>
    %cst_200 = arith.constant 0.000000e+00 : f32
    %582 = vector.broadcast %cst_200 : f32 to vector<8x32xf32>
    %cst_201 = arith.constant dense<0.000000e+00> : vector<8x256xf32>
    %583 = tpu.matmul %580, %579, %cst_201 {dimension_numbers = #tpu.dot_dimension_numbers<[1], [0], [0], [1], [0, 0, 1, 1], [], []>} : vector<8x64xf32>, vector<64x256xf32>, vector<8x256xf32> -> vector<8x256xf32>
    %c0_202 = arith.constant 0 : index
    %c0_203 = arith.constant 0 : index
    %584 = vector.load %arg29[%c0_202, %c0_203] : memref<64x256xf32, #tpu.memory_space<vmem>>, vector<8x128xf32>
    %c56_204 = arith.constant 56 : index
    %c128_205 = arith.constant 128 : index
    %585 = vector.load %arg29[%c56_204, %c128_205] : memref<64x256xf32, #tpu.memory_space<vmem>>, vector<8x128xf32>
    %586 = tpu.concatenate %584, %585 in 1 : vector<8x128xf32>, vector<8x128xf32> -> vector<8x256xf32>
    %587 = arith.addf %586, %583 : vector<8x256xf32>
    %588 = arith.negf %587 : vector<8x256xf32>
    %589 = math.exp %588 : vector<8x256xf32>
    %cst_206 = arith.constant 1.000000e+00 : f32
    %590 = vector.broadcast %cst_206 : f32 to vector<8x256xf32>
    %591 = arith.addf %590, %589 : vector<8x256xf32>
    %592 = arith.divf %590, %591 : vector<8x256xf32>
    %593 = vector.extract_strided_slice %587 {offsets = [0, 96], sizes = [8, 32], strides = [1, 1]} : vector<8x256xf32> to vector<8x32xf32>
    %594 = math.tanh %593 : vector<8x32xf32>
    %595 = vector.extract_strided_slice %587 {offsets = [0, 224], sizes = [8, 32], strides = [1, 1]} : vector<8x256xf32> to vector<8x32xf32>
    %596 = math.tanh %595 : vector<8x32xf32>
    %597 = vector.extract_strided_slice %592 {offsets = [0, 32], sizes = [8, 32], strides = [1, 1]} : vector<8x256xf32> to vector<8x32xf32>
    %598 = arith.mulf %597, %581 : vector<8x32xf32>
    %599 = vector.extract_strided_slice %592 {offsets = [0, 0], sizes = [8, 32], strides = [1, 1]} : vector<8x256xf32> to vector<8x32xf32>
    %600 = arith.mulf %599, %594 : vector<8x32xf32>
    %601 = arith.addf %598, %600 : vector<8x32xf32>
    %602 = vector.extract_strided_slice %592 {offsets = [0, 160], sizes = [8, 32], strides = [1, 1]} : vector<8x256xf32> to vector<8x32xf32>
    %603 = arith.mulf %602, %582 : vector<8x32xf32>
    %604 = vector.extract_strided_slice %592 {offsets = [0, 128], sizes = [8, 32], strides = [1, 1]} : vector<8x256xf32> to vector<8x32xf32>
    %605 = arith.mulf %604, %596 : vector<8x32xf32>
    %606 = arith.addf %603, %605 : vector<8x32xf32>
    %607 = vector.extract_strided_slice %592 {offsets = [0, 64], sizes = [8, 32], strides = [1, 1]} : vector<8x256xf32> to vector<8x32xf32>
    %608 = math.tanh %601 : vector<8x32xf32>
    %609 = arith.mulf %607, %608 : vector<8x32xf32>
    %610 = vector.extract_strided_slice %592 {offsets = [0, 192], sizes = [8, 32], strides = [1, 1]} : vector<8x256xf32> to vector<8x32xf32>
    %611 = math.tanh %606 : vector<8x32xf32>
    %612 = arith.mulf %610, %611 : vector<8x32xf32>
    %c0_207 = arith.constant 0 : index
    %c0_208 = arith.constant 0 : index
    %613 = vector.load %arg28[%c0_207, %c0_208] : memref<64x64xf32, #tpu.memory_space<vmem>>, vector<8x32xf32>
    tpu.vector_store %arg28[%c0_207, %c0_208], %609 {strides = array<i32>} : memref<64x64xf32, #tpu.memory_space<vmem>>, vector<8x32xf32>,
    %c56_209 = arith.constant 56 : index
    %c32_210 = arith.constant 32 : index
    %614 = vector.load %arg28[%c56_209, %c32_210] : memref<64x64xf32, #tpu.memory_space<vmem>>, vector<8x32xf32>
    tpu.vector_store %arg28[%c56_209, %c32_210], %612 {strides = array<i32>} : memref<64x64xf32, #tpu.memory_space<vmem>>, vector<8x32xf32>,
    %615 = tpu.concatenate %609, %612 in 1 : vector<8x32xf32>, vector<8x32xf32> -> vector<8x64xf32>
    %cst_211 = arith.constant dense<0.000000e+00> : vector<8x256xf32>
    %616 = tpu.matmul %615, %579, %cst_211 {dimension_numbers = #tpu.dot_dimension_numbers<[1], [0], [0], [1], [0, 0, 1, 1], [], []>} : vector<8x64xf32>, vector<64x256xf32>, vector<8x256xf32> -> vector<8x256xf32>
    %c8_212 = arith.constant 8 : index
    %c0_213 = arith.constant 0 : index
    %617 = vector.load %arg29[%c8_212, %c0_213] : memref<64x256xf32, #tpu.memory_space<vmem>>, vector<8x128xf32>
    %c48_214 = arith.constant 48 : index
    %c128_215 = arith.constant 128 : index
    %618 = vector.load %arg29[%c48_214, %c128_215] : memref<64x256xf32, #tpu.memory_space<vmem>>, vector<8x128xf32>
    %619 = tpu.concatenate %617, %618 in 1 : vector<8x128xf32>, vector<8x128xf32> -> vector<8x256xf32>
    %620 = arith.addf %619, %616 : vector<8x256xf32>
    %621 = arith.negf %620 : vector<8x256xf32>
    %622 = math.exp %621 : vector<8x256xf32>
    %cst_216 = arith.constant 1.000000e+00 : f32
    %623 = vector.broadcast %cst_216 : f32 to vector<8x256xf32>
    %624 = arith.addf %623, %622 : vector<8x256xf32>
    %625 = arith.divf %623, %624 : vector<8x256xf32>
    %626 = vector.extract_strided_slice %620 {offsets = [0, 96], sizes = [8, 32], strides = [1, 1]} : vector<8x256xf32> to vector<8x32xf32>
    %627 = math.tanh %626 : vector<8x32xf32>
    %628 = vector.extract_strided_slice %620 {offsets = [0, 224], sizes = [8, 32], strides = [1, 1]} : vector<8x256xf32> to vector<8x32xf32>
    %629 = math.tanh %628 : vector<8x32xf32>
    %630 = vector.extract_strided_slice %625 {offsets = [0, 32], sizes = [8, 32], strides = [1, 1]} : vector<8x256xf32> to vector<8x32xf32>
    %631 = arith.mulf %630, %601 : vector<8x32xf32>
    %632 = vector.extract_strided_slice %625 {offsets = [0, 0], sizes = [8, 32], strides = [1, 1]} : vector<8x256xf32> to vector<8x32xf32>
    %633 = arith.mulf %632, %627 : vector<8x32xf32>
    %634 = arith.addf %631, %633 : vector<8x32xf32>
    %635 = vector.extract_strided_slice %625 {offsets = [0, 160], sizes = [8, 32], strides = [1, 1]} : vector<8x256xf32> to vector<8x32xf32>
    %636 = arith.mulf %635, %606 : vector<8x32xf32>
    %637 = vector.extract_strided_slice %625 {offsets = [0, 128], sizes = [8, 32], strides = [1, 1]} : vector<8x256xf32> to vector<8x32xf32>
    %638 = arith.mulf %637, %629 : vector<8x32xf32>
    %639 = arith.addf %636, %638 : vector<8x32xf32>
    %640 = vector.extract_strided_slice %625 {offsets = [0, 64], sizes = [8, 32], strides = [1, 1]} : vector<8x256xf32> to vector<8x32xf32>
    %641 = math.tanh %634 : vector<8x32xf32>
    %642 = arith.mulf %640, %641 : vector<8x32xf32>
    %643 = vector.extract_strided_slice %625 {offsets = [0, 192], sizes = [8, 32], strides = [1, 1]} : vector<8x256xf32> to vector<8x32xf32>
    %644 = math.tanh %639 : vector<8x32xf32>
    %645 = arith.mulf %643, %644 : vector<8x32xf32>
    %c8_217 = arith.constant 8 : index
    %c0_218 = arith.constant 0 : index
    %646 = vector.load %arg28[%c8_217, %c0_218] : memref<64x64xf32, #tpu.memory_space<vmem>>, vector<8x32xf32>
    tpu.vector_store %arg28[%c8_217, %c0_218], %642 {strides = array<i32>} : memref<64x64xf32, #tpu.memory_space<vmem>>, vector<8x32xf32>,
    %c48_219 = arith.constant 48 : index
    %c32_220 = arith.constant 32 : index
    %647 = vector.load %arg28[%c48_219, %c32_220] : memref<64x64xf32, #tpu.memory_space<vmem>>, vector<8x32xf32>
    tpu.vector_store %arg28[%c48_219, %c32_220], %645 {strides = array<i32>} : memref<64x64xf32, #tpu.memory_space<vmem>>, vector<8x32xf32>,
    %648 = tpu.concatenate %642, %645 in 1 : vector<8x32xf32>, vector<8x32xf32> -> vector<8x64xf32>
    %cst_221 = arith.constant dense<0.000000e+00> : vector<8x256xf32>
    %649 = tpu.matmul %648, %579, %cst_221 {dimension_numbers = #tpu.dot_dimension_numbers<[1], [0], [0], [1], [0, 0, 1, 1], [], []>} : vector<8x64xf32>, vector<64x256xf32>, vector<8x256xf32> -> vector<8x256xf32>
    %c16_222 = arith.constant 16 : index
    %c0_223 = arith.constant 0 : index
    %650 = vector.load %arg29[%c16_222, %c0_223] : memref<64x256xf32, #tpu.memory_space<vmem>>, vector<8x128xf32>
    %c40_224 = arith.constant 40 : index
    %c128_225 = arith.constant 128 : index
    %651 = vector.load %arg29[%c40_224, %c128_225] : memref<64x256xf32, #tpu.memory_space<vmem>>, vector<8x128xf32>
    %652 = tpu.concatenate %650, %651 in 1 : vector<8x128xf32>, vector<8x128xf32> -> vector<8x256xf32>
    %653 = arith.addf %652, %649 : vector<8x256xf32>
    %654 = arith.negf %653 : vector<8x256xf32>
    %655 = math.exp %654 : vector<8x256xf32>
    %cst_226 = arith.constant 1.000000e+00 : f32
    %656 = vector.broadcast %cst_226 : f32 to vector<8x256xf32>
    %657 = arith.addf %656, %655 : vector<8x256xf32>
    %658 = arith.divf %656, %657 : vector<8x256xf32>
    %659 = vector.extract_strided_slice %653 {offsets = [0, 96], sizes = [8, 32], strides = [1, 1]} : vector<8x256xf32> to vector<8x32xf32>
    %660 = math.tanh %659 : vector<8x32xf32>
    %661 = vector.extract_strided_slice %653 {offsets = [0, 224], sizes = [8, 32], strides = [1, 1]} : vector<8x256xf32> to vector<8x32xf32>
    %662 = math.tanh %661 : vector<8x32xf32>
    %663 = vector.extract_strided_slice %658 {offsets = [0, 32], sizes = [8, 32], strides = [1, 1]} : vector<8x256xf32> to vector<8x32xf32>
    %664 = arith.mulf %663, %634 : vector<8x32xf32>
    %665 = vector.extract_strided_slice %658 {offsets = [0, 0], sizes = [8, 32], strides = [1, 1]} : vector<8x256xf32> to vector<8x32xf32>
    %666 = arith.mulf %665, %660 : vector<8x32xf32>
    %667 = arith.addf %664, %666 : vector<8x32xf32>
    %668 = vector.extract_strided_slice %658 {offsets = [0, 160], sizes = [8, 32], strides = [1, 1]} : vector<8x256xf32> to vector<8x32xf32>
    %669 = arith.mulf %668, %639 : vector<8x32xf32>
    %670 = vector.extract_strided_slice %658 {offsets = [0, 128], sizes = [8, 32], strides = [1, 1]} : vector<8x256xf32> to vector<8x32xf32>
    %671 = arith.mulf %670, %662 : vector<8x32xf32>
    %672 = arith.addf %669, %671 : vector<8x32xf32>
    %673 = vector.extract_strided_slice %658 {offsets = [0, 64], sizes = [8, 32], strides = [1, 1]} : vector<8x256xf32> to vector<8x32xf32>
    %674 = math.tanh %667 : vector<8x32xf32>
    %675 = arith.mulf %673, %674 : vector<8x32xf32>
    %676 = vector.extract_strided_slice %658 {offsets = [0, 192], sizes = [8, 32], strides = [1, 1]} : vector<8x256xf32> to vector<8x32xf32>
    %677 = math.tanh %672 : vector<8x32xf32>
    %678 = arith.mulf %676, %677 : vector<8x32xf32>
    %c16_227 = arith.constant 16 : index
    %c0_228 = arith.constant 0 : index
    %679 = vector.load %arg28[%c16_227, %c0_228] : memref<64x64xf32, #tpu.memory_space<vmem>>, vector<8x32xf32>
    tpu.vector_store %arg28[%c16_227, %c0_228], %675 {strides = array<i32>} : memref<64x64xf32, #tpu.memory_space<vmem>>, vector<8x32xf32>,
    %c40_229 = arith.constant 40 : index
    %c32_230 = arith.constant 32 : index
    %680 = vector.load %arg28[%c40_229, %c32_230] : memref<64x64xf32, #tpu.memory_space<vmem>>, vector<8x32xf32>
    tpu.vector_store %arg28[%c40_229, %c32_230], %678 {strides = array<i32>} : memref<64x64xf32, #tpu.memory_space<vmem>>, vector<8x32xf32>,
    %681 = tpu.concatenate %675, %678 in 1 : vector<8x32xf32>, vector<8x32xf32> -> vector<8x64xf32>
    %cst_231 = arith.constant dense<0.000000e+00> : vector<8x256xf32>
    %682 = tpu.matmul %681, %579, %cst_231 {dimension_numbers = #tpu.dot_dimension_numbers<[1], [0], [0], [1], [0, 0, 1, 1], [], []>} : vector<8x64xf32>, vector<64x256xf32>, vector<8x256xf32> -> vector<8x256xf32>
    %c24_232 = arith.constant 24 : index
    %c0_233 = arith.constant 0 : index
    %683 = vector.load %arg29[%c24_232, %c0_233] : memref<64x256xf32, #tpu.memory_space<vmem>>, vector<8x128xf32>
    %c32_234 = arith.constant 32 : index
    %c128_235 = arith.constant 128 : index
    %684 = vector.load %arg29[%c32_234, %c128_235] : memref<64x256xf32, #tpu.memory_space<vmem>>, vector<8x128xf32>
    %685 = tpu.concatenate %683, %684 in 1 : vector<8x128xf32>, vector<8x128xf32> -> vector<8x256xf32>
    %686 = arith.addf %685, %682 : vector<8x256xf32>
    %687 = arith.negf %686 : vector<8x256xf32>
    %688 = math.exp %687 : vector<8x256xf32>
    %cst_236 = arith.constant 1.000000e+00 : f32
    %689 = vector.broadcast %cst_236 : f32 to vector<8x256xf32>
    %690 = arith.addf %689, %688 : vector<8x256xf32>
    %691 = arith.divf %689, %690 : vector<8x256xf32>
    %692 = vector.extract_strided_slice %686 {offsets = [0, 96], sizes = [8, 32], strides = [1, 1]} : vector<8x256xf32> to vector<8x32xf32>
    %693 = math.tanh %692 : vector<8x32xf32>
    %694 = vector.extract_strided_slice %686 {offsets = [0, 224], sizes = [8, 32], strides = [1, 1]} : vector<8x256xf32> to vector<8x32xf32>
    %695 = math.tanh %694 : vector<8x32xf32>
    %696 = vector.extract_strided_slice %691 {offsets = [0, 32], sizes = [8, 32], strides = [1, 1]} : vector<8x256xf32> to vector<8x32xf32>
    %697 = arith.mulf %696, %667 : vector<8x32xf32>
    %698 = vector.extract_strided_slice %691 {offsets = [0, 0], sizes = [8, 32], strides = [1, 1]} : vector<8x256xf32> to vector<8x32xf32>
    %699 = arith.mulf %698, %693 : vector<8x32xf32>
    %700 = arith.addf %697, %699 : vector<8x32xf32>
    %701 = vector.extract_strided_slice %691 {offsets = [0, 160], sizes = [8, 32], strides = [1, 1]} : vector<8x256xf32> to vector<8x32xf32>
    %702 = arith.mulf %701, %672 : vector<8x32xf32>
    %703 = vector.extract_strided_slice %691 {offsets = [0, 128], sizes = [8, 32], strides = [1, 1]} : vector<8x256xf32> to vector<8x32xf32>
    %704 = arith.mulf %703, %695 : vector<8x32xf32>
    %705 = arith.addf %702, %704 : vector<8x32xf32>
    %706 = vector.extract_strided_slice %691 {offsets = [0, 64], sizes = [8, 32], strides = [1, 1]} : vector<8x256xf32> to vector<8x32xf32>
    %707 = math.tanh %700 : vector<8x32xf32>
    %708 = arith.mulf %706, %707 : vector<8x32xf32>
    %709 = vector.extract_strided_slice %691 {offsets = [0, 192], sizes = [8, 32], strides = [1, 1]} : vector<8x256xf32> to vector<8x32xf32>
    %710 = math.tanh %705 : vector<8x32xf32>
    %711 = arith.mulf %709, %710 : vector<8x32xf32>
    %c24_237 = arith.constant 24 : index
    %c0_238 = arith.constant 0 : index
    %712 = vector.load %arg28[%c24_237, %c0_238] : memref<64x64xf32, #tpu.memory_space<vmem>>, vector<8x32xf32>
    tpu.vector_store %arg28[%c24_237, %c0_238], %708 {strides = array<i32>} : memref<64x64xf32, #tpu.memory_space<vmem>>, vector<8x32xf32>,
    %c32_239 = arith.constant 32 : index
    %c32_240 = arith.constant 32 : index
    %713 = vector.load %arg28[%c32_239, %c32_240] : memref<64x64xf32, #tpu.memory_space<vmem>>, vector<8x32xf32>
    tpu.vector_store %arg28[%c32_239, %c32_240], %711 {strides = array<i32>} : memref<64x64xf32, #tpu.memory_space<vmem>>, vector<8x32xf32>,
    %714 = tpu.concatenate %708, %711 in 1 : vector<8x32xf32>, vector<8x32xf32> -> vector<8x64xf32>
    %cst_241 = arith.constant dense<0.000000e+00> : vector<8x256xf32>
    %715 = tpu.matmul %714, %579, %cst_241 {dimension_numbers = #tpu.dot_dimension_numbers<[1], [0], [0], [1], [0, 0, 1, 1], [], []>} : vector<8x64xf32>, vector<64x256xf32>, vector<8x256xf32> -> vector<8x256xf32>
    %c32_242 = arith.constant 32 : index
    %c0_243 = arith.constant 0 : index
    %716 = vector.load %arg29[%c32_242, %c0_243] : memref<64x256xf32, #tpu.memory_space<vmem>>, vector<8x128xf32>
    %c24_244 = arith.constant 24 : index
    %c128_245 = arith.constant 128 : index
    %717 = vector.load %arg29[%c24_244, %c128_245] : memref<64x256xf32, #tpu.memory_space<vmem>>, vector<8x128xf32>
    %718 = tpu.concatenate %716, %717 in 1 : vector<8x128xf32>, vector<8x128xf32> -> vector<8x256xf32>
    %719 = arith.addf %718, %715 : vector<8x256xf32>
    %720 = arith.negf %719 : vector<8x256xf32>
    %721 = math.exp %720 : vector<8x256xf32>
    %cst_246 = arith.constant 1.000000e+00 : f32
    %722 = vector.broadcast %cst_246 : f32 to vector<8x256xf32>
    %723 = arith.addf %722, %721 : vector<8x256xf32>
    %724 = arith.divf %722, %723 : vector<8x256xf32>
    %725 = vector.extract_strided_slice %719 {offsets = [0, 96], sizes = [8, 32], strides = [1, 1]} : vector<8x256xf32> to vector<8x32xf32>
    %726 = math.tanh %725 : vector<8x32xf32>
    %727 = vector.extract_strided_slice %719 {offsets = [0, 224], sizes = [8, 32], strides = [1, 1]} : vector<8x256xf32> to vector<8x32xf32>
    %728 = math.tanh %727 : vector<8x32xf32>
    %729 = vector.extract_strided_slice %724 {offsets = [0, 32], sizes = [8, 32], strides = [1, 1]} : vector<8x256xf32> to vector<8x32xf32>
    %730 = arith.mulf %729, %700 : vector<8x32xf32>
    %731 = vector.extract_strided_slice %724 {offsets = [0, 0], sizes = [8, 32], strides = [1, 1]} : vector<8x256xf32> to vector<8x32xf32>
    %732 = arith.mulf %731, %726 : vector<8x32xf32>
    %733 = arith.addf %730, %732 : vector<8x32xf32>
    %734 = vector.extract_strided_slice %724 {offsets = [0, 160], sizes = [8, 32], strides = [1, 1]} : vector<8x256xf32> to vector<8x32xf32>
    %735 = arith.mulf %734, %705 : vector<8x32xf32>
    %736 = vector.extract_strided_slice %724 {offsets = [0, 128], sizes = [8, 32], strides = [1, 1]} : vector<8x256xf32> to vector<8x32xf32>
    %737 = arith.mulf %736, %728 : vector<8x32xf32>
    %738 = arith.addf %735, %737 : vector<8x32xf32>
    %739 = vector.extract_strided_slice %724 {offsets = [0, 64], sizes = [8, 32], strides = [1, 1]} : vector<8x256xf32> to vector<8x32xf32>
    %740 = math.tanh %733 : vector<8x32xf32>
    %741 = arith.mulf %739, %740 : vector<8x32xf32>
    %742 = vector.extract_strided_slice %724 {offsets = [0, 192], sizes = [8, 32], strides = [1, 1]} : vector<8x256xf32> to vector<8x32xf32>
    %743 = math.tanh %738 : vector<8x32xf32>
    %744 = arith.mulf %742, %743 : vector<8x32xf32>
    %c32_247 = arith.constant 32 : index
    %c0_248 = arith.constant 0 : index
    %745 = vector.load %arg28[%c32_247, %c0_248] : memref<64x64xf32, #tpu.memory_space<vmem>>, vector<8x32xf32>
    tpu.vector_store %arg28[%c32_247, %c0_248], %741 {strides = array<i32>} : memref<64x64xf32, #tpu.memory_space<vmem>>, vector<8x32xf32>,
    %c24_249 = arith.constant 24 : index
    %c32_250 = arith.constant 32 : index
    %746 = vector.load %arg28[%c24_249, %c32_250] : memref<64x64xf32, #tpu.memory_space<vmem>>, vector<8x32xf32>
    tpu.vector_store %arg28[%c24_249, %c32_250], %744 {strides = array<i32>} : memref<64x64xf32, #tpu.memory_space<vmem>>, vector<8x32xf32>,
    %747 = tpu.concatenate %741, %744 in 1 : vector<8x32xf32>, vector<8x32xf32> -> vector<8x64xf32>
    %cst_251 = arith.constant dense<0.000000e+00> : vector<8x256xf32>
    %748 = tpu.matmul %747, %579, %cst_251 {dimension_numbers = #tpu.dot_dimension_numbers<[1], [0], [0], [1], [0, 0, 1, 1], [], []>} : vector<8x64xf32>, vector<64x256xf32>, vector<8x256xf32> -> vector<8x256xf32>
    %c40_252 = arith.constant 40 : index
    %c0_253 = arith.constant 0 : index
    %749 = vector.load %arg29[%c40_252, %c0_253] : memref<64x256xf32, #tpu.memory_space<vmem>>, vector<8x128xf32>
    %c16_254 = arith.constant 16 : index
    %c128_255 = arith.constant 128 : index
    %750 = vector.load %arg29[%c16_254, %c128_255] : memref<64x256xf32, #tpu.memory_space<vmem>>, vector<8x128xf32>
    %751 = tpu.concatenate %749, %750 in 1 : vector<8x128xf32>, vector<8x128xf32> -> vector<8x256xf32>
    %752 = arith.addf %751, %748 : vector<8x256xf32>
    %753 = arith.negf %752 : vector<8x256xf32>
    %754 = math.exp %753 : vector<8x256xf32>
    %cst_256 = arith.constant 1.000000e+00 : f32
    %755 = vector.broadcast %cst_256 : f32 to vector<8x256xf32>
    %756 = arith.addf %755, %754 : vector<8x256xf32>
    %757 = arith.divf %755, %756 : vector<8x256xf32>
    %758 = vector.extract_strided_slice %752 {offsets = [0, 96], sizes = [8, 32], strides = [1, 1]} : vector<8x256xf32> to vector<8x32xf32>
    %759 = math.tanh %758 : vector<8x32xf32>
    %760 = vector.extract_strided_slice %752 {offsets = [0, 224], sizes = [8, 32], strides = [1, 1]} : vector<8x256xf32> to vector<8x32xf32>
    %761 = math.tanh %760 : vector<8x32xf32>
    %762 = vector.extract_strided_slice %757 {offsets = [0, 32], sizes = [8, 32], strides = [1, 1]} : vector<8x256xf32> to vector<8x32xf32>
    %763 = arith.mulf %762, %733 : vector<8x32xf32>
    %764 = vector.extract_strided_slice %757 {offsets = [0, 0], sizes = [8, 32], strides = [1, 1]} : vector<8x256xf32> to vector<8x32xf32>
    %765 = arith.mulf %764, %759 : vector<8x32xf32>
    %766 = arith.addf %763, %765 : vector<8x32xf32>
    %767 = vector.extract_strided_slice %757 {offsets = [0, 160], sizes = [8, 32], strides = [1, 1]} : vector<8x256xf32> to vector<8x32xf32>
    %768 = arith.mulf %767, %738 : vector<8x32xf32>
    %769 = vector.extract_strided_slice %757 {offsets = [0, 128], sizes = [8, 32], strides = [1, 1]} : vector<8x256xf32> to vector<8x32xf32>
    %770 = arith.mulf %769, %761 : vector<8x32xf32>
    %771 = arith.addf %768, %770 : vector<8x32xf32>
    %772 = vector.extract_strided_slice %757 {offsets = [0, 64], sizes = [8, 32], strides = [1, 1]} : vector<8x256xf32> to vector<8x32xf32>
    %773 = math.tanh %766 : vector<8x32xf32>
    %774 = arith.mulf %772, %773 : vector<8x32xf32>
    %775 = vector.extract_strided_slice %757 {offsets = [0, 192], sizes = [8, 32], strides = [1, 1]} : vector<8x256xf32> to vector<8x32xf32>
    %776 = math.tanh %771 : vector<8x32xf32>
    %777 = arith.mulf %775, %776 : vector<8x32xf32>
    %c40_257 = arith.constant 40 : index
    %c0_258 = arith.constant 0 : index
    %778 = vector.load %arg28[%c40_257, %c0_258] : memref<64x64xf32, #tpu.memory_space<vmem>>, vector<8x32xf32>
    tpu.vector_store %arg28[%c40_257, %c0_258], %774 {strides = array<i32>} : memref<64x64xf32, #tpu.memory_space<vmem>>, vector<8x32xf32>,
    %c16_259 = arith.constant 16 : index
    %c32_260 = arith.constant 32 : index
    %779 = vector.load %arg28[%c16_259, %c32_260] : memref<64x64xf32, #tpu.memory_space<vmem>>, vector<8x32xf32>
    tpu.vector_store %arg28[%c16_259, %c32_260], %777 {strides = array<i32>} : memref<64x64xf32, #tpu.memory_space<vmem>>, vector<8x32xf32>,
    %780 = tpu.concatenate %774, %777 in 1 : vector<8x32xf32>, vector<8x32xf32> -> vector<8x64xf32>
    %cst_261 = arith.constant dense<0.000000e+00> : vector<8x256xf32>
    %781 = tpu.matmul %780, %579, %cst_261 {dimension_numbers = #tpu.dot_dimension_numbers<[1], [0], [0], [1], [0, 0, 1, 1], [], []>} : vector<8x64xf32>, vector<64x256xf32>, vector<8x256xf32> -> vector<8x256xf32>
    %c48_262 = arith.constant 48 : index
    %c0_263 = arith.constant 0 : index
    %782 = vector.load %arg29[%c48_262, %c0_263] : memref<64x256xf32, #tpu.memory_space<vmem>>, vector<8x128xf32>
    %c8_264 = arith.constant 8 : index
    %c128_265 = arith.constant 128 : index
    %783 = vector.load %arg29[%c8_264, %c128_265] : memref<64x256xf32, #tpu.memory_space<vmem>>, vector<8x128xf32>
    %784 = tpu.concatenate %782, %783 in 1 : vector<8x128xf32>, vector<8x128xf32> -> vector<8x256xf32>
    %785 = arith.addf %784, %781 : vector<8x256xf32>
    %786 = arith.negf %785 : vector<8x256xf32>
    %787 = math.exp %786 : vector<8x256xf32>
    %cst_266 = arith.constant 1.000000e+00 : f32
    %788 = vector.broadcast %cst_266 : f32 to vector<8x256xf32>
    %789 = arith.addf %788, %787 : vector<8x256xf32>
    %790 = arith.divf %788, %789 : vector<8x256xf32>
    %791 = vector.extract_strided_slice %785 {offsets = [0, 96], sizes = [8, 32], strides = [1, 1]} : vector<8x256xf32> to vector<8x32xf32>
    %792 = math.tanh %791 : vector<8x32xf32>
    %793 = vector.extract_strided_slice %785 {offsets = [0, 224], sizes = [8, 32], strides = [1, 1]} : vector<8x256xf32> to vector<8x32xf32>
    %794 = math.tanh %793 : vector<8x32xf32>
    %795 = vector.extract_strided_slice %790 {offsets = [0, 32], sizes = [8, 32], strides = [1, 1]} : vector<8x256xf32> to vector<8x32xf32>
    %796 = arith.mulf %795, %766 : vector<8x32xf32>
    %797 = vector.extract_strided_slice %790 {offsets = [0, 0], sizes = [8, 32], strides = [1, 1]} : vector<8x256xf32> to vector<8x32xf32>
    %798 = arith.mulf %797, %792 : vector<8x32xf32>
    %799 = arith.addf %796, %798 : vector<8x32xf32>
    %800 = vector.extract_strided_slice %790 {offsets = [0, 160], sizes = [8, 32], strides = [1, 1]} : vector<8x256xf32> to vector<8x32xf32>
    %801 = arith.mulf %800, %771 : vector<8x32xf32>
    %802 = vector.extract_strided_slice %790 {offsets = [0, 128], sizes = [8, 32], strides = [1, 1]} : vector<8x256xf32> to vector<8x32xf32>
    %803 = arith.mulf %802, %794 : vector<8x32xf32>
    %804 = arith.addf %801, %803 : vector<8x32xf32>
    %805 = vector.extract_strided_slice %790 {offsets = [0, 64], sizes = [8, 32], strides = [1, 1]} : vector<8x256xf32> to vector<8x32xf32>
    %806 = math.tanh %799 : vector<8x32xf32>
    %807 = arith.mulf %805, %806 : vector<8x32xf32>
    %808 = vector.extract_strided_slice %790 {offsets = [0, 192], sizes = [8, 32], strides = [1, 1]} : vector<8x256xf32> to vector<8x32xf32>
    %809 = math.tanh %804 : vector<8x32xf32>
    %810 = arith.mulf %808, %809 : vector<8x32xf32>
    %c48_267 = arith.constant 48 : index
    %c0_268 = arith.constant 0 : index
    %811 = vector.load %arg28[%c48_267, %c0_268] : memref<64x64xf32, #tpu.memory_space<vmem>>, vector<8x32xf32>
    tpu.vector_store %arg28[%c48_267, %c0_268], %807 {strides = array<i32>} : memref<64x64xf32, #tpu.memory_space<vmem>>, vector<8x32xf32>,
    %c8_269 = arith.constant 8 : index
    %c32_270 = arith.constant 32 : index
    %812 = vector.load %arg28[%c8_269, %c32_270] : memref<64x64xf32, #tpu.memory_space<vmem>>, vector<8x32xf32>
    tpu.vector_store %arg28[%c8_269, %c32_270], %810 {strides = array<i32>} : memref<64x64xf32, #tpu.memory_space<vmem>>, vector<8x32xf32>,
    %813 = tpu.concatenate %807, %810 in 1 : vector<8x32xf32>, vector<8x32xf32> -> vector<8x64xf32>
    %cst_271 = arith.constant dense<0.000000e+00> : vector<8x256xf32>
    %814 = tpu.matmul %813, %579, %cst_271 {dimension_numbers = #tpu.dot_dimension_numbers<[1], [0], [0], [1], [0, 0, 1, 1], [], []>} : vector<8x64xf32>, vector<64x256xf32>, vector<8x256xf32> -> vector<8x256xf32>
    %c56_272 = arith.constant 56 : index
    %c0_273 = arith.constant 0 : index
    %815 = vector.load %arg29[%c56_272, %c0_273] : memref<64x256xf32, #tpu.memory_space<vmem>>, vector<8x128xf32>
    %c0_274 = arith.constant 0 : index
    %c128_275 = arith.constant 128 : index
    %816 = vector.load %arg29[%c0_274, %c128_275] : memref<64x256xf32, #tpu.memory_space<vmem>>, vector<8x128xf32>
    %817 = tpu.concatenate %815, %816 in 1 : vector<8x128xf32>, vector<8x128xf32> -> vector<8x256xf32>
    %818 = arith.addf %817, %814 : vector<8x256xf32>
    %819 = arith.negf %818 : vector<8x256xf32>
    %820 = math.exp %819 : vector<8x256xf32>
    %cst_276 = arith.constant 1.000000e+00 : f32
    %821 = vector.broadcast %cst_276 : f32 to vector<8x256xf32>
    %822 = arith.addf %821, %820 : vector<8x256xf32>
    %823 = arith.divf %821, %822 : vector<8x256xf32>
    %824 = vector.extract_strided_slice %818 {offsets = [0, 96], sizes = [8, 32], strides = [1, 1]} : vector<8x256xf32> to vector<8x32xf32>
    %825 = math.tanh %824 : vector<8x32xf32>
    %826 = vector.extract_strided_slice %818 {offsets = [0, 224], sizes = [8, 32], strides = [1, 1]} : vector<8x256xf32> to vector<8x32xf32>
    %827 = math.tanh %826 : vector<8x32xf32>
    %828 = vector.extract_strided_slice %823 {offsets = [0, 32], sizes = [8, 32], strides = [1, 1]} : vector<8x256xf32> to vector<8x32xf32>
    %829 = arith.mulf %828, %799 : vector<8x32xf32>
    %830 = vector.extract_strided_slice %823 {offsets = [0, 0], sizes = [8, 32], strides = [1, 1]} : vector<8x256xf32> to vector<8x32xf32>
    %831 = arith.mulf %830, %825 : vector<8x32xf32>
    %832 = arith.addf %829, %831 : vector<8x32xf32>
    %833 = vector.extract_strided_slice %823 {offsets = [0, 160], sizes = [8, 32], strides = [1, 1]} : vector<8x256xf32> to vector<8x32xf32>
    %834 = arith.mulf %833, %804 : vector<8x32xf32>
    %835 = vector.extract_strided_slice %823 {offsets = [0, 128], sizes = [8, 32], strides = [1, 1]} : vector<8x256xf32> to vector<8x32xf32>
    %836 = arith.mulf %835, %827 : vector<8x32xf32>
    %837 = arith.addf %834, %836 : vector<8x32xf32>
    %838 = vector.extract_strided_slice %823 {offsets = [0, 64], sizes = [8, 32], strides = [1, 1]} : vector<8x256xf32> to vector<8x32xf32>
    %839 = math.tanh %832 : vector<8x32xf32>
    %840 = arith.mulf %838, %839 : vector<8x32xf32>
    %841 = vector.extract_strided_slice %823 {offsets = [0, 192], sizes = [8, 32], strides = [1, 1]} : vector<8x256xf32> to vector<8x32xf32>
    %842 = math.tanh %837 : vector<8x32xf32>
    %843 = arith.mulf %841, %842 : vector<8x32xf32>
    %c56_277 = arith.constant 56 : index
    %c0_278 = arith.constant 0 : index
    %844 = vector.load %arg28[%c56_277, %c0_278] : memref<64x64xf32, #tpu.memory_space<vmem>>, vector<8x32xf32>
    tpu.vector_store %arg28[%c56_277, %c0_278], %840 {strides = array<i32>} : memref<64x64xf32, #tpu.memory_space<vmem>>, vector<8x32xf32>,
    %c0_279 = arith.constant 0 : index
    %c32_280 = arith.constant 32 : index
    %845 = vector.load %arg28[%c0_279, %c32_280] : memref<64x64xf32, #tpu.memory_space<vmem>>, vector<8x32xf32>
    tpu.vector_store %arg28[%c0_279, %c32_280], %843 {strides = array<i32>} : memref<64x64xf32, #tpu.memory_space<vmem>>, vector<8x32xf32>,
    %c0_281 = arith.constant 0 : index
    %c0_282 = arith.constant 0 : index
    %846 = vector.load %arg28[%c0_281, %c0_282] : memref<64x64xf32, #tpu.memory_space<vmem>>, vector<64x64xf32>
    %847 = tpu.iota {dimensions = array<i32: 0>} : vector<64x1xi32>
    %c8_i32 = arith.constant 8 : i32
    %c0_i32 = arith.constant 0 : i32
    %848 = arith.cmpi eq, %c8_i32, %c0_i32 : i32
    %c1_i32 = arith.constant 1 : i32
    %849 = arith.select %848, %c1_i32, %c8_i32 : i32
    %850 = vector.broadcast %849 : i32 to vector<64x1xi32>
    %851 = arith.remsi %847, %850 : vector<64x1xi32>
    %c0_i32_283 = arith.constant 0 : i32
    %852 = vector.broadcast %c0_i32_283 : i32 to vector<64x1xi32>
    %853 = arith.cmpi ne, %851, %852 : vector<64x1xi32>
    %c0_i32_284 = arith.constant 0 : i32
    %854 = vector.broadcast %c0_i32_284 : i32 to vector<64x1xi32>
    %855 = arith.cmpi slt, %851, %854 : vector<64x1xi32>
    %c0_i32_285 = arith.constant 0 : i32
    %856 = arith.cmpi slt, %849, %c0_i32_285 : i32
    %857 = vector.broadcast %856 : i1 to vector<64x1xi1>
    %858 = vector.broadcast %857 : vector<64x1xi1> to vector<64x1xi1>
    %859 = arith.xori %855, %858 : vector<64x1xi1>
    %860 = arith.andi %859, %853 : vector<64x1xi1>
    %861 = vector.broadcast %849 : i32 to vector<64x1xi32>
    %862 = arith.addi %851, %861 : vector<64x1xi32>
    %863 = arith.select %860, %862, %851 : vector<64x1xi1>, vector<64x1xi32>
    %c2_i32 = arith.constant 2 : i32
    %864 = vector.broadcast %c2_i32 : i32 to vector<64x1xi32>
    %865 = arith.cmpi slt, %863, %864 : vector<64x1xi32>
    %c0_286 = arith.constant 0 : index
    %c0_287 = arith.constant 0 : index
    %866 = vector.load %arg12[%c0_286, %c0_287] : memref<64x32xf32, #tpu.memory_space<vmem>>, vector<64x32xf32>
    %cst_288 = arith.constant dense<0.000000e+00> : vector<64x32xf32>
    %867 = tpu.matmul %846, %866, %cst_288 {dimension_numbers = #tpu.dot_dimension_numbers<[1], [0], [0], [1], [0, 0, 1, 1], [], []>} : vector<64x64xf32>, vector<64x32xf32>, vector<64x32xf32> -> vector<64x32xf32>
    %c0_289 = arith.constant 0 : index
    %c0_290 = arith.constant 0 : index
    %868 = vector.load %arg13[%c0_289, %c0_290] : memref<1x32xf32, #tpu.memory_space<vmem>>, vector<1x32xf32>
    %869 = vector.broadcast %868 : vector<1x32xf32> to vector<64x32xf32>
    %870 = arith.addf %867, %869 : vector<64x32xf32>
    %871 = math.tanh %870 : vector<64x32xf32>
    %c0_291 = arith.constant 0 : index
    %c0_292 = arith.constant 0 : index
    %872 = vector.load %arg14[%c0_291, %c0_292] : memref<32x1xf32, #tpu.memory_space<vmem>>, vector<32x1xf32>
    %cst_293 = arith.constant dense<0.000000e+00> : vector<64x1xf32>
    %873 = tpu.matmul %871, %872, %cst_293 {dimension_numbers = #tpu.dot_dimension_numbers<[1], [0], [0], [1], [0, 0, 1, 1], [], []>} : vector<64x32xf32>, vector<32x1xf32>, vector<64x1xf32> -> vector<64x1xf32>
    %c0_294 = arith.constant 0 : index
    %c0_295 = arith.constant 0 : index
    %874 = vector.load %arg15[%c0_294, %c0_295] : memref<1x1xf32, #tpu.memory_space<vmem>>, vector<1x1xf32>
    %875 = vector.broadcast %874 : vector<1x1xf32> to vector<64x1xf32>
    %876 = arith.addf %873, %875 : vector<64x1xf32>
    %cst_296 = arith.constant -1.000000e+30 : f32
    %877 = vector.broadcast %cst_296 : f32 to vector<64x1xf32>
    %878 = arith.select %865, %876, %877 : vector<64x1xi1>, vector<64x1xf32>
    %cst_297 = arith.constant dense<0xFF800000> : vector<1xf32>
    %879 = vector.multi_reduction <maximumf>, %878, %cst_297 [0] : vector<64x1xf32> to vector<1xf32>
    %880 = vector.shape_cast %879 : vector<1xf32> to vector<1x1xf32>
    %881 = vector.broadcast %880 : vector<1x1xf32> to vector<64x1xf32>
    %882 = arith.subf %878, %881 : vector<64x1xf32>
    %883 = math.exp %882 : vector<64x1xf32>
    %884 = tpu.iota {dimensions = array<i32: 1>} : vector<8x64xi32>
    %c8_i32_298 = arith.constant 8 : i32
    %c0_i32_299 = arith.constant 0 : i32
    %885 = arith.cmpi eq, %c8_i32_298, %c0_i32_299 : i32
    %c1_i32_300 = arith.constant 1 : i32
    %886 = arith.select %885, %c1_i32_300, %c8_i32_298 : i32
    %887 = vector.broadcast %886 : i32 to vector<8x64xi32>
    %888 = arith.remsi %884, %887 : vector<8x64xi32>
    %c0_i32_301 = arith.constant 0 : i32
    %889 = vector.broadcast %c0_i32_301 : i32 to vector<8x64xi32>
    %890 = arith.cmpi ne, %888, %889 : vector<8x64xi32>
    %c0_i32_302 = arith.constant 0 : i32
    %891 = vector.broadcast %c0_i32_302 : i32 to vector<8x64xi32>
    %892 = arith.cmpi slt, %888, %891 : vector<8x64xi32>
    %c0_i32_303 = arith.constant 0 : i32
    %893 = arith.cmpi slt, %886, %c0_i32_303 : i32
    %894 = vector.broadcast %893 : i1 to vector<8x64xi1>
    %895 = vector.broadcast %894 : vector<8x64xi1> to vector<8x64xi1>
    %896 = arith.xori %892, %895 : vector<8x64xi1>
    %897 = arith.andi %896, %890 : vector<8x64xi1>
    %898 = vector.broadcast %886 : i32 to vector<8x64xi32>
    %899 = arith.addi %888, %898 : vector<8x64xi32>
    %900 = arith.select %897, %899, %888 : vector<8x64xi1>, vector<8x64xi32>
    %901 = tpu.iota {dimensions = array<i32: 0>} : vector<8x64xi32>
    %902 = arith.cmpi eq, %900, %901 : vector<8x64xi32>
    %903 = arith.extui %902 : vector<8x64xi1> to vector<8x64xi32>
    %904 = arith.sitofp %903 : vector<8x64xi32> to vector<8x64xf32>
    %905 = tpu.iota {dimensions = array<i32: 0>} : vector<64x8xi32>
    %c8_i32_304 = arith.constant 8 : i32
    %c0_i32_305 = arith.constant 0 : i32
    %906 = arith.cmpi eq, %c8_i32_304, %c0_i32_305 : i32
    %c1_i32_306 = arith.constant 1 : i32
    %907 = arith.select %906, %c1_i32_306, %c8_i32_304 : i32
    %908 = vector.broadcast %907 : i32 to vector<64x8xi32>
    %909 = arith.remsi %905, %908 : vector<64x8xi32>
    %c0_i32_307 = arith.constant 0 : i32
    %910 = vector.broadcast %c0_i32_307 : i32 to vector<64x8xi32>
    %911 = arith.cmpi ne, %909, %910 : vector<64x8xi32>
    %c0_i32_308 = arith.constant 0 : i32
    %912 = vector.broadcast %c0_i32_308 : i32 to vector<64x8xi32>
    %913 = arith.cmpi slt, %909, %912 : vector<64x8xi32>
    %c0_i32_309 = arith.constant 0 : i32
    %914 = arith.cmpi slt, %907, %c0_i32_309 : i32
    %915 = vector.broadcast %914 : i1 to vector<64x8xi1>
    %916 = vector.broadcast %915 : vector<64x8xi1> to vector<64x8xi1>
    %917 = arith.xori %913, %916 : vector<64x8xi1>
    %918 = arith.andi %917, %911 : vector<64x8xi1>
    %919 = vector.broadcast %907 : i32 to vector<64x8xi32>
    %920 = arith.addi %909, %919 : vector<64x8xi32>
    %921 = arith.select %918, %920, %909 : vector<64x8xi1>, vector<64x8xi32>
    %922 = tpu.iota {dimensions = array<i32: 1>} : vector<64x8xi32>
    %923 = arith.cmpi eq, %921, %922 : vector<64x8xi32>
    %924 = arith.extui %923 : vector<64x8xi1> to vector<64x8xi32>
    %925 = arith.sitofp %924 : vector<64x8xi32> to vector<64x8xf32>
    %cst_310 = arith.constant dense<0.000000e+00> : vector<8x1xf32>
    %926 = tpu.matmul %904, %883, %cst_310 {dimension_numbers = #tpu.dot_dimension_numbers<[1], [0], [0], [1], [0, 0, 1, 1], [], []>} : vector<8x64xf32>, vector<64x1xf32>, vector<8x1xf32> -> vector<8x1xf32>
    %927 = tpu.iota {dimensions = array<i32: 0>} : vector<8x1xi32>
    %c2_i32_311 = arith.constant 2 : i32
    %928 = vector.broadcast %c2_i32_311 : i32 to vector<8x1xi32>
    %929 = arith.cmpi slt, %927, %928 : vector<8x1xi32>
    %cst_312 = arith.constant 1.000000e+00 : f32
    %930 = vector.broadcast %cst_312 : f32 to vector<8x1xf32>
    %931 = arith.select %929, %926, %930 : vector<8x1xi1>, vector<8x1xf32>
    %932 = tpu.reciprocal %931 {approx = true} : vector<8x1xf32> -> vector<8x1xf32>
    %933 = arith.mulf %931, %932 : vector<8x1xf32>
    %cst_313 = arith.constant 2.000000e+00 : f32
    %934 = vector.broadcast %cst_313 : f32 to vector<8x1xf32>
    %935 = arith.subf %934, %933 : vector<8x1xf32>
    %936 = arith.mulf %932, %935 : vector<8x1xf32>
    %937 = vector.broadcast %883 : vector<64x1xf32> to vector<64x64xf32>
    %938 = arith.mulf %937, %846 : vector<64x64xf32>
    %cst_314 = arith.constant dense<0.000000e+00> : vector<8x64xf32>
    %939 = tpu.matmul %904, %938, %cst_314 {dimension_numbers = #tpu.dot_dimension_numbers<[1], [0], [0], [1], [0, 0, 1, 1], [], []>} : vector<8x64xf32>, vector<64x64xf32>, vector<8x64xf32> -> vector<8x64xf32>
    %940 = vector.broadcast %936 : vector<8x1xf32> to vector<8x64xf32>
    %941 = arith.mulf %939, %940 : vector<8x64xf32>
    %cst_315 = arith.constant dense<0.000000e+00> : vector<64x1xf32>
    %942 = tpu.matmul %925, %936, %cst_315 {dimension_numbers = #tpu.dot_dimension_numbers<[1], [0], [0], [1], [0, 0, 1, 1], [], []>} : vector<64x8xf32>, vector<8x1xf32>, vector<64x1xf32> -> vector<64x1xf32>
    %943 = arith.mulf %883, %942 : vector<64x1xf32>
    %c0_316 = arith.constant 0 : index
    %c0_317 = arith.constant 0 : index
    %944 = vector.load %arg27[%c0_316, %c0_317] : memref<64x1xf32, #tpu.memory_space<vmem>>, vector<64x1xf32>
    tpu.vector_store %arg27[%c0_316, %c0_317], %943 {strides = array<i32>} : memref<64x1xf32, #tpu.memory_space<vmem>>, vector<64x1xf32>,
    %c0_318 = arith.constant 0 : index
    %c0_319 = arith.constant 0 : index
    %945 = vector.load %arg16[%c0_318, %c0_319] : memref<64x32xf32, #tpu.memory_space<vmem>>, vector<64x32xf32>
    %cst_320 = arith.constant dense<0.000000e+00> : vector<8x32xf32>
    %946 = tpu.matmul %941, %945, %cst_320 {dimension_numbers = #tpu.dot_dimension_numbers<[1], [0], [0], [1], [0, 0, 1, 1], [], []>} : vector<8x64xf32>, vector<64x32xf32>, vector<8x32xf32> -> vector<8x32xf32>
    %c0_321 = arith.constant 0 : index
    %c0_322 = arith.constant 0 : index
    %947 = vector.load %arg17[%c0_321, %c0_322] : memref<1x32xf32, #tpu.memory_space<vmem>>, vector<1x32xf32>
    %948 = vector.broadcast %947 : vector<1x32xf32> to vector<8x32xf32>
    %949 = arith.addf %946, %948 : vector<8x32xf32>
    %cst_323 = arith.constant dense<0.000000e+00> : vector<8xf32>
    %950 = vector.multi_reduction <add>, %949, %cst_323 [1] : vector<8x32xf32> to vector<8xf32>
    %951 = vector.shape_cast %950 : vector<8xf32> to vector<8x1xf32>
    %cst_324 = arith.constant 3.200000e+01 : f32
    %952 = vector.broadcast %cst_324 : f32 to vector<8x1xf32>
    %953 = arith.divf %951, %952 : vector<8x1xf32>
    %954 = vector.broadcast %953 : vector<8x1xf32> to vector<8x32xf32>
    %955 = arith.subf %949, %954 : vector<8x32xf32>
    %956 = arith.mulf %955, %955 : vector<8x32xf32>
    %cst_325 = arith.constant dense<0.000000e+00> : vector<8xf32>
    %957 = vector.multi_reduction <add>, %956, %cst_325 [1] : vector<8x32xf32> to vector<8xf32>
    %958 = vector.shape_cast %957 : vector<8xf32> to vector<8x1xf32>
    %cst_326 = arith.constant 3.200000e+01 : f32
    %959 = vector.broadcast %cst_326 : f32 to vector<8x1xf32>
    %960 = arith.divf %958, %959 : vector<8x1xf32>
    %961 = vector.broadcast %953 : vector<8x1xf32> to vector<8x32xf32>
    %962 = arith.subf %949, %961 : vector<8x32xf32>
    %cst_327 = arith.constant 9.99999974E-6 : f32
    %963 = vector.broadcast %cst_327 : f32 to vector<8x1xf32>
    %964 = arith.addf %960, %963 : vector<8x1xf32>
    %965 = math.rsqrt %964 : vector<8x1xf32>
    %966 = vector.broadcast %965 : vector<8x1xf32> to vector<8x32xf32>
    %967 = arith.mulf %962, %966 : vector<8x32xf32>
    %c0_328 = arith.constant 0 : index
    %c0_329 = arith.constant 0 : index
    %968 = vector.load %arg18[%c0_328, %c0_329] : memref<1x32xf32, #tpu.memory_space<vmem>>, vector<1x32xf32>
    %969 = vector.broadcast %968 : vector<1x32xf32> to vector<8x32xf32>
    %970 = arith.mulf %967, %969 : vector<8x32xf32>
    %c0_330 = arith.constant 0 : index
    %c0_331 = arith.constant 0 : index
    %971 = vector.load %arg19[%c0_330, %c0_331] : memref<1x32xf32, #tpu.memory_space<vmem>>, vector<1x32xf32>
    %972 = vector.broadcast %971 : vector<1x32xf32> to vector<8x32xf32>
    %973 = arith.addf %970, %972 : vector<8x32xf32>
    %cst_332 = arith.constant 0.000000e+00 : f32
    %974 = vector.broadcast %cst_332 : f32 to vector<8x32xf32>
    %975 = arith.maximumf %973, %974 : vector<8x32xf32>
    %c0_333 = arith.constant 0 : index
    %c0_334 = arith.constant 0 : index
    %976 = vector.load %arg20[%c0_333, %c0_334] : memref<32x16xf32, #tpu.memory_space<vmem>>, vector<32x16xf32>
    %cst_335 = arith.constant dense<0.000000e+00> : vector<8x16xf32>
    %977 = tpu.matmul %975, %976, %cst_335 {dimension_numbers = #tpu.dot_dimension_numbers<[1], [0], [0], [1], [0, 0, 1, 1], [], []>} : vector<8x32xf32>, vector<32x16xf32>, vector<8x16xf32> -> vector<8x16xf32>
    %c0_336 = arith.constant 0 : index
    %c0_337 = arith.constant 0 : index
    %978 = vector.load %arg21[%c0_336, %c0_337] : memref<1x16xf32, #tpu.memory_space<vmem>>, vector<1x16xf32>
    %979 = vector.broadcast %978 : vector<1x16xf32> to vector<8x16xf32>
    %980 = arith.addf %977, %979 : vector<8x16xf32>
    %cst_338 = arith.constant dense<0.000000e+00> : vector<8xf32>
    %981 = vector.multi_reduction <add>, %980, %cst_338 [1] : vector<8x16xf32> to vector<8xf32>
    %982 = vector.shape_cast %981 : vector<8xf32> to vector<8x1xf32>
    %cst_339 = arith.constant 1.600000e+01 : f32
    %983 = vector.broadcast %cst_339 : f32 to vector<8x1xf32>
    %984 = arith.divf %982, %983 : vector<8x1xf32>
    %985 = vector.broadcast %984 : vector<8x1xf32> to vector<8x16xf32>
    %986 = arith.subf %980, %985 : vector<8x16xf32>
    %987 = arith.mulf %986, %986 : vector<8x16xf32>
    %cst_340 = arith.constant dense<0.000000e+00> : vector<8xf32>
    %988 = vector.multi_reduction <add>, %987, %cst_340 [1] : vector<8x16xf32> to vector<8xf32>
    %989 = vector.shape_cast %988 : vector<8xf32> to vector<8x1xf32>
    %cst_341 = arith.constant 1.600000e+01 : f32
    %990 = vector.broadcast %cst_341 : f32 to vector<8x1xf32>
    %991 = arith.divf %989, %990 : vector<8x1xf32>
    %992 = vector.broadcast %984 : vector<8x1xf32> to vector<8x16xf32>
    %993 = arith.subf %980, %992 : vector<8x16xf32>
    %cst_342 = arith.constant 9.99999974E-6 : f32
    %994 = vector.broadcast %cst_342 : f32 to vector<8x1xf32>
    %995 = arith.addf %991, %994 : vector<8x1xf32>
    %996 = math.rsqrt %995 : vector<8x1xf32>
    %997 = vector.broadcast %996 : vector<8x1xf32> to vector<8x16xf32>
    %998 = arith.mulf %993, %997 : vector<8x16xf32>
    %c0_343 = arith.constant 0 : index
    %c0_344 = arith.constant 0 : index
    %999 = vector.load %arg22[%c0_343, %c0_344] : memref<1x16xf32, #tpu.memory_space<vmem>>, vector<1x16xf32>
    %1000 = vector.broadcast %999 : vector<1x16xf32> to vector<8x16xf32>
    %1001 = arith.mulf %998, %1000 : vector<8x16xf32>
    %c0_345 = arith.constant 0 : index
    %c0_346 = arith.constant 0 : index
    %1002 = vector.load %arg23[%c0_345, %c0_346] : memref<1x16xf32, #tpu.memory_space<vmem>>, vector<1x16xf32>
    %1003 = vector.broadcast %1002 : vector<1x16xf32> to vector<8x16xf32>
    %1004 = arith.addf %1001, %1003 : vector<8x16xf32>
    %cst_347 = arith.constant 0.000000e+00 : f32
    %1005 = vector.broadcast %cst_347 : f32 to vector<8x16xf32>
    %1006 = arith.maximumf %1004, %1005 : vector<8x16xf32>
    %1007 = vector.extract_strided_slice %975 {offsets = [0, 0], sizes = [8, 16], strides = [1, 1]} : vector<8x32xf32> to vector<8x16xf32>
    %1008 = arith.addf %1006, %1007 : vector<8x16xf32>
    %c0_348 = arith.constant 0 : index
    %c0_349 = arith.constant 0 : index
    %1009 = vector.load %arg24[%c0_348, %c0_349] : memref<16x1xf32, #tpu.memory_space<vmem>>, vector<16x1xf32>
    %cst_350 = arith.constant dense<0.000000e+00> : vector<8x1xf32>
    %1010 = tpu.matmul %1008, %1009, %cst_350 {dimension_numbers = #tpu.dot_dimension_numbers<[1], [0], [0], [1], [0, 0, 1, 1], [], []>} : vector<8x16xf32>, vector<16x1xf32>, vector<8x1xf32> -> vector<8x1xf32>
    %c0_351 = arith.constant 0 : index
    %c0_352 = arith.constant 0 : index
    %1011 = vector.load %arg25[%c0_351, %c0_352] : memref<1x1xf32, #tpu.memory_space<vmem>>, vector<1x1xf32>
    %1012 = vector.broadcast %1011 : vector<1x1xf32> to vector<8x1xf32>
    %1013 = arith.addf %1010, %1012 : vector<8x1xf32>
    %c0_353 = arith.constant 0 : index
    %c0_354 = arith.constant 0 : index
    %1014 = vector.load %arg26[%c0_353, %c0_354] : memref<8x1xf32, #tpu.memory_space<vmem>>, vector<8x1xf32>
    tpu.vector_store %arg26[%c0_353, %c0_354], %1013 {strides = array<i32>} : memref<8x1xf32, #tpu.memory_space<vmem>>, vector<8x1xf32>,
    return
  }
}

</mosaic_0001>

<bundles_post_ra>
// kernel: lstm_model_forward.1
= control target key start
LH: loop header
LB: loop body
LE: loop exit
PB: predicated region body
PF: predicated region fallthrough
CT: control target
= control target key end

     0   :  { %vm97_vm0 = vcmask 39936   ;;  %vm271_vm1 = vcmask 1044480   ;;  %s6116_s29 = smov 96   ;;  %vm554_vm2 = vcmask 261120   ;;  %vm560_vm3 = vcmask 523520   ;;  %s8152_s0 = inlined_call_operand.vmem [shape: f32[64,5], index: 0, kind: input, shape index: {}]   ;;  %s8153_s4 = inlined_call_operand.vmem [shape: f32[64,256], index: 4, kind: input, shape index: {}]   ;;  %s8154_s3 = inlined_call_operand.vmem [shape: f32[5,256], index: 3, kind: input, shape index: {}]   ;;  %s8155_s1 = inlined_call_operand.vmem [shape: f32[1,5], index: 1, kind: input, shape index: {}]   ;;  %s8156_s2 = inlined_call_operand.vmem [shape: f32[1,5], index: 2, kind: input, shape index: {}]   ;;  %s8157_s5 = inlined_call_operand.vmem [shape: f32[1,256], index: 5, kind: input, shape index: {}]   ;;  %s8158_s6 = inlined_call_operand.vmem [shape: f32[64,256], index: 6, kind: input, shape index: {}]   ;;  %s8159_s7 = inlined_call_operand.vmem [shape: f32[64,256], index: 7, kind: input, shape index: {}]   ;;  %s8160_s8 = inlined_call_operand.vmem [shape: f32[1,256], index: 8, kind: input, shape index: {}]   ;;  %s8161_s9 = inlined_call_operand.vmem [shape: f32[64,256], index: 9, kind: input, shape index: {}]   ;;  %s8162_s10 = inlined_call_operand.vmem [shape: f32[64,256], index: 10, kind: input, shape index: {}]   ;;  %s8163_s11 = inlined_call_operand.vmem [shape: f32[1,256], index: 11, kind: input, shape index: {}]   ;;  %s8164_s12 = inlined_call_operand.vmem [shape: f32[64,32], index: 12, kind: input, shape index: {}]   ;;  %s8165_s14 = inlined_call_operand.vmem [shape: f32[32,1], index: 14, kind: input, shape index: {}]   ;;  %s8166_s15 = inlined_call_operand.<no memory space> [shape: f32[1,1], index: 15, kind: input, shape index: {}]   ;;  %s8167_s13 = inlined_call_operand.vmem [shape: f32[1,32], index: 13, kind: input, shape index: {}]   ;;  %s8168_s16 = inlined_call_operand.vmem [shape: f32[64,32], index: 16, kind: input, shape index: {}]   ;;  %s8169_s27 = inlined_call_operand.vmem [shape: f32[64,1], index: 27, kind: output, shape index: {1}]   ;;  %s8170_s17 = inlined_call_operand.vmem [shape: f32[1,32], index: 17, kind: input, shape index: {}]   ;;  %s8171_s20 = inlined_call_operand.vmem [shape: f32[32,16], index: 20, kind: input, shape index: {}]   ;;  %s8172_s18 = inlined_call_operand.vmem [shape: f32[1,32], index: 18, kind: input, shape index: {}]   ;;  %s8173_s19 = inlined_call_operand.vmem [shape: f32[1,32], index: 19, kind: input, shape index: {}]   ;;  %s8174_s21 = inlined_call_operand.vmem [shape: f32[1,16], index: 21, kind: input, shape index: {}]   ;;  %s8175_s24 = inlined_call_operand.vmem [shape: f32[16,1], index: 24, kind: input, shape index: {}]   ;;  %s8176_s25 = inlined_call_operand.<no memory space> [shape: f32[1,1], index: 25, kind: input, shape index: {}]   ;;  %s8177_s22 = inlined_call_operand.vmem [shape: f32[1,16], index: 22, kind: input, shape index: {}]   ;;  %s8178_s23 = inlined_call_operand.vmem [shape: f32[1,16], index: 23, kind: input, shape index: {}]   ;;  %s8179_s26 = inlined_call_operand.vmem [shape: f32[8,1], index: 26, kind: output, shape index: {0}]  }
   0x1   :  { %8187 = sst [smem:[#allocation6_spill]] %s8152_s0  ;;  %s6114_s0 = smov 32   ;;  %vm423_vm4 = vcmask 523264   ;;  %vm6118_vm5 = vmmov 0   ;;  %vm4536_vm10 = vcmask 7168  }
   0x2   :  { %8188 = sst [smem:[#allocation7_spill]] %s8153_s4 }
   0x3   :  { %8189 = sst [smem:[#allocation8_spill]] %s8154_s3 }
   0x4   :  { %8190 = sst [smem:[#allocation9_spill]] %s8155_s1 }
   0x5   :  { %8191 = sst [smem:[#allocation10_spill]] %s8156_s2 }
   0x6   :  { %8192 = sst [smem:[#allocation11_spill]] %s8157_s5 }
   0x7   :  { %8193 = sst [smem:[#allocation12_spill]] %s8158_s6 }
   0x8   :  { %8194 = sst [smem:[#allocation13_spill]] %s8159_s7 }
   0x9   :  { %8195 = sst [smem:[#allocation14_spill]] %s8160_s8 }
   0xa   :  { %8196 = sst [smem:[#allocation15_spill]] %s8161_s9 }
   0xb   :  { %8197 = sst [smem:[#allocation16_spill]] %s8162_s10  ;;  %s6115_s10 = smov 64  }
   0xc   :  { %8198 = sst [smem:[#allocation17_spill]] %s8163_s11 }
   0xd   :  { %s8199_s8 = sld [smem:[#allocation6_spill]] }
   0xe   :  { %s8200_s9 = sld [smem:[#allocation7_spill]] }
   0xf   :  { %s8202_s4 = sld [smem:[#allocation9_spill]] }
  0x10   :  { %s8204_s28 = sld [smem:[#allocation11_spill]] }
  0x11   :  { %s8205_s5 = sld [smem:[#allocation12_spill]] }
  0x12   :  { %s8206_s7 = sld [smem:[#allocation13_spill]] }
  0x13   :  { %v89_v0 = vld [vmem:[%s8199_s8] sm:$0xff]  ;;  %v91_v1 = vld [vmem:[%s8199_s8 + $0x10] sm:$0xff]  ;;  %v90_v2 = vld [vmem:[%s8199_s8 + $0x8] sm:$0xff]  ;;  %s8207_s6 = sld [smem:[#allocation14_spill]] }
  0x14   :  { %v98_v3 = vsel %vm97_vm0, %v89_v0, 0.0  ;;  %v104_v4 = vsel %vm97_vm0, %v91_v1, 0.0  ;;  %v92_v5 = vld [vmem:[%s8199_s8 + $0x18] sm:$0xff]  ;;  %v101_v6 = vsel %vm97_vm0, %v90_v2, 0.0  ;;  %v93_v8 = vld [vmem:[%s8199_s8 + $0x20] sm:$0xff]  ;;  %v94_v9 = vld [vmem:[%s8199_s8 + $0x28] sm:$0xff] }
  0x15   :  { %99 = vadd.xlane.f32.xlu0 %v98_v3  ;;  %105 = vadd.xlane.f32.xlu1 %v104_v4  ;;  %v107_v7 = vsel %vm97_vm0, %v92_v5, 0.0  ;;  %v110_v10 = vsel %vm97_vm0, %v93_v8, 0.0  ;;  %v113_v11 = vsel %vm97_vm0, %v94_v9, 0.0  ;;  %v95_v12 = vld [vmem:[%s8199_s8 + $0x30] sm:$0xff]  ;;  %v96_v13 = vld [vmem:[%s8199_s8 + $0x38] sm:$0xff]  ;;  %v6346_v58 = vld [vmem:[%s8200_s9 + $0x68] sm:$0xff] }
  0x16   :  { %v116_v14 = vsel %vm97_vm0, %v95_v12, 0.0  ;;  %v119_v15 = vsel %vm97_vm0, %v96_v13, 0.0  ;;  %v6334_v56 = vld [vmem:[%s8200_s9 + $0x78] sm:$0xff]  ;;  %v6340_v57 = vld [vmem:[%s8200_s9 + $0x70] sm:$0xff]  ;;  %v6352_v59 = vld [vmem:[%s8200_s9 + $0x60] sm:$0xff]  ;;  %s8201_s8 = sld [smem:[#allocation8_spill]] }
  0x17   :  { %443 = vmatprep.subr.mxu1 %v6334_v56  ;;  %v6358_v60 = vld [vmem:[%s8200_s9 + $0x58] sm:$0xff]  ;;  %v6364_v61 = vld [vmem:[%s8200_s9 + $0x50] sm:$0xff]  ;;  %v6370_v62 = vld [vmem:[%s8200_s9 + $0x48] sm:$0xff] }
  0x18   :  { %444 = vmatpush1.msra.mxu1 %v6340_v57  ;;  %v6376_v63 = vld [vmem:[%s8200_s9 + $0x40] sm:$0xff]  ;;  %v6404_v4 = vld [vmem:[%s8200_s9 + $0x18] sm:$0xff] }
  0x19   :  { %102 = vadd.xlane.f32.xlu0 %v101_v6  ;;  %108 = vadd.xlane.f32.xlu1 %v107_v7  ;;  %v6399_v3 = vld [vmem:[%s8200_s9 + $0x20] sm:$0xff]  ;;  %v6113_v7 = vmov 0.0  }
  0x1a   :  { %445 = vmatprep.subr.mxu1 %v6346_v58  ;;  %342 = vmatprep.mubr.f32.mxu0 %v6113_v7 }
  0x1b   :  { %446 = vmatpush1.msra.mxu1 %v6352_v59  ;;  %491 = vmatprep.mubr.f32.mxu1 %v6113_v7 }
  0x1c   :  { %447 = vmatprep.subr.mxu1 %v6358_v60  ;;  %v233_v6 = vld [vmem:[%s8201_s8] sm:$0x1f] }
  0x1d   :  { %111 = vadd.xlane.f32.xlu0 %v110_v10  ;;  %114 = vadd.xlane.f32.xlu1 %v113_v11  ;;  %v6430_v10 = vld [vmem:[%s8200_s9] sm:$0xff] }
  0x1e   :  { %448 = vmatpush1.msra.mxu1 %v6364_v61 }
  0x1f   :  { %449 = vmatprep.subr.mxu1 %v6370_v62 }
  0x20   :  { %450 = vmatpush1.msra.mxu1 %v6376_v63 }
  0x21   :  { %117 = vadd.xlane.f32.xlu0 %v116_v14  ;;  %120 = vadd.xlane.f32.xlu1 %v119_v15 }
  0x9e   :  { %v100_v16 = vpop.xlane.xlu0 %99  ;;  %v106_v17 = vpop.xlane.xlu1 %105 }
  0x9f   :  { %v123_v18 = vmul.f32 0.2, %v100_v16  ;;  %v125_v19 = vmul.f32 0.2, %v106_v17 }
  0xa1   :  { %v6291_v20 = vsub.f32 %v89_v0, %v123_v18  ;;  %v6293_v21 = vsub.f32 %v91_v1, %v125_v19  ;;  %v6382_v0 = vld [vmem:[%s8200_s9 + $0x38] sm:$0xff]  ;;  %v6388_v1 = vld [vmem:[%s8200_s9 + $0x30] sm:$0xff] }
  0xa2   :  { %v103_v22 = vpop.xlane.xlu0 %102  ;;  %v109_v23 = vpop.xlane.xlu1 %108  ;;  %451 = vmatprep.subr.mxu1 %v6382_v0 }
  0xa3   :  { %v124_v24 = vmul.f32 0.2, %v103_v22  ;;  %v126_v25 = vmul.f32 0.2, %v109_v23  ;;  %v139_v26 = vmul.f32 %v6291_v20, %v6291_v20  ;;  %v141_v27 = vmul.f32 %v6293_v21, %v6293_v21  ;;  %452 = vmatpush1.msra.mxu1 %v6388_v1 }
  0xa5   :  { %v6299_v28 = vsub.f32 %v90_v2, %v124_v24  ;;  %v6301_v29 = vsub.f32 %v92_v5, %v126_v25  ;;  %v147_v30 = vsel %vm97_vm0, %v139_v26, 0.0  ;;  %v153_v33 = vsel %vm97_vm0, %v141_v27, 0.0  ;;  %v6394_v2 = vld [vmem:[%s8200_s9 + $0x28] sm:$0xff] }
  0xa6   :  { %148 = vadd.xlane.f32.xlu0 %v147_v30  ;;  %v112_v31 = vpop.xlane.xlu0 %111  ;;  %v115_v32 = vpop.xlane.xlu1 %114  ;;  %453 = vmatprep.subr.mxu1 %v6394_v2  ;;  %v234_v5 = vld [vmem:[%s8201_s8 + $0x8] sm:$0x1f]  ;;  %s8203_s8 = sld [smem:[#allocation10_spill]] }
  0xa7   :  { %v127_v34 = vmul.f32 0.2, %v112_v31  ;;  %v128_v35 = vmul.f32 0.2, %v115_v32  ;;  %v140_v36 = vmul.f32 %v6299_v28, %v6299_v28  ;;  %v142_v37 = vmul.f32 %v6301_v29, %v6301_v29  ;;  %454 = vmatpush1.msra.mxu1 %v6399_v3  ;;  %5301 = vmatprep.subr.msk.mxu0 %vm271_vm1, %v234_v5 }
  0xa8   :  { %455 = vmatprep.subr.mxu1 %v6404_v4  ;;  %5302 = vmatpush1.msk.msra.mxu0 %vm271_vm1, %v233_v6  ;;  %vm4826_vm1 = vcmask 64512  }
  0xa9   :  { %v6309_v38 = vsub.f32 %v93_v8, %v127_v34  ;;  %v6311_v39 = vsub.f32 %v94_v9, %v128_v35  ;;  %v150_v40 = vsel %vm97_vm0, %v140_v36, 0.0  ;;  %v156_v43 = vsel %vm97_vm0, %v142_v37, 0.0  ;;  %v6417_v8 = vld [vmem:[%s8200_s9 + $0x10] sm:$0xff]  ;;  %v6425_v9 = vld [vmem:[%s8200_s9 + $0x8] sm:$0xff]  ;;  %719 = vmatprep.subr.mxu0 %v6334_v56  ;;  %v6458_v37 = vld [vmem:[%s8202_s4] ss:$0 sm:$0xff] }
  0xaa   :  { %154 = vadd.xlane.f32.xlu0 %v153_v33  ;;  %151 = vadd.xlane.f32.xlu1 %v150_v40  ;;  %v118_v41 = vpop.xlane.xlu0 %117  ;;  %v121_v42 = vpop.xlane.xlu1 %120  ;;  %s8208_s4 = sld [smem:[#allocation15_spill]] }
  0xab   :  { %v129_v44 = vmul.f32 0.2, %v118_v41  ;;  %v130_v45 = vmul.f32 0.2, %v121_v42  ;;  %v143_v46 = vmul.f32 %v6309_v38, %v6309_v38  ;;  %v144_v47 = vmul.f32 %v6311_v39, %v6311_v39  ;;  %456 = vmatpush1.msra.mxu1 %v6417_v8 }
  0xac   :  { %457 = vmatprep.subr.mxu1 %v6425_v9 }
  0xad   :  { %v6319_v48 = vsub.f32 %v95_v12, %v129_v44  ;;  %v6321_v49 = vsub.f32 %v96_v13, %v130_v45  ;;  %v159_v50 = vsel %vm97_vm0, %v143_v46, 0.0  ;;  %v162_v51 = vsel %vm97_vm0, %v144_v47, 0.0  ;;  %458 = vmatpush1.msra.mxu1 %v6430_v10 }
  0xae   :  { %157 = vadd.xlane.f32.xlu1 %v156_v43  ;;  %160 = vadd.xlane.f32.xlu0 %v159_v50  ;;  %v6464_v43 = vld [vmem:[%s8203_s8] ss:$0 sm:$0xff] }
  0xaf   :  { %v145_v52 = vmul.f32 %v6319_v48, %v6319_v48  ;;  %v146_v53 = vmul.f32 %v6321_v49, %v6321_v49  ;;  %492 = vmatmul.mubr.f32.vlgmr.msra.gmra.mxu1 %v6113_v7  ;;  %582 = vmatprep.subr.mxu1 %v6334_v56 }
  0xb0   :  { %583 = vmatpush1.msra.mxu1 %v6340_v57  ;;  %630 = vmatprep.mubr.f32.mxu1 %v6113_v7 }
  0xb1   :  { %v165_v54 = vsel %vm97_vm0, %v145_v52, 0.0  ;;  %v168_v55 = vsel %vm97_vm0, %v146_v53, 0.0  ;;  %584 = vmatprep.subr.mxu1 %v6346_v58 }
  0xb2   :  { %163 = vadd.xlane.f32.xlu1 %v162_v51  ;;  %166 = vadd.xlane.f32.xlu0 %v165_v54 }
  0xb3   :  { %585 = vmatpush1.msra.mxu1 %v6352_v59 }
  0xb4   :  { %586 = vmatprep.subr.mxu1 %v6358_v60 }
  0xb5   :  { %587 = vmatpush1.msra.mxu1 %v6364_v61 }
  0xb6   :  { %169 = vadd.xlane.f32.xlu1 %v168_v55  ;;  %588 = vmatprep.subr.mxu1 %v6370_v62 }
  0xb7   :  { %589 = vmatpush1.msra.mxu1 %v6376_v63 }
  0xb8   :  { %590 = vmatprep.subr.mxu1 %v6382_v0 }
  0xb9   :  { %591 = vmatpush1.msra.mxu1 %v6388_v1 }
  0xba   :  { %592 = vmatprep.subr.mxu1 %v6394_v2 }
  0xbb   :  { %593 = vmatpush1.msra.mxu1 %v6399_v3 }
  0xbc   :  { %594 = vmatprep.subr.mxu1 %v6404_v4 }
  0xbd   :  { %595 = vmatpush1.msra.mxu1 %v6417_v8 }
  0xbe   :  { %596 = vmatprep.subr.mxu1 %v6425_v9 }
  0xbf   :  { %597 = vmatpush1.msra.mxu1 %v6430_v10 }
  0xc0   :  { %856 = vmatprep.subr.mxu1 %v6334_v56 }
 0x12f   :  { %v149_v11 = vpop.xlane.xlu0 %148 }
 0x130   :  { %v171_v12 = vmul.f32 0.2, %v149_v11 }
 0x132   :  { %v179_v13 = vadd.f32 1e-05, %v171_v12 }
 0x133   :  { %v152_v14 = vpop.xlane.xlu1 %151  ;;  %v155_v15 = vpop.xlane.xlu0 %154 }
 0x134   :  { %5660 = vrsqrt.f32 %v179_v13  ;;  %v172_v16 = vmul.f32 0.2, %v152_v14  ;;  %v173_v17 = vmul.f32 0.2, %v155_v15 }
 0x136   :  { %v180_v18 = vadd.f32 1e-05, %v172_v16  ;;  %v181_v19 = vadd.f32 1e-05, %v173_v17 }
 0x137   :  { %v158_v22 = vpop.xlane.xlu1 %157  ;;  %v161_v23 = vpop.xlane.xlu0 %160 }
 0x138   :  { %5662 = vrsqrt.f32 %v180_v18  ;;  %v174_v24 = vmul.f32 0.2, %v158_v22  ;;  %v175_v25 = vmul.f32 0.2, %v161_v23 }
 0x139   :  { %5664 = vrsqrt.f32 %v181_v19 }
 0x13a   :  { %v182_v26 = vadd.f32 1e-05, %v174_v24  ;;  %v183_v27 = vadd.f32 1e-05, %v175_v25  ;;  %v237_v25 = vlaneseq }
 0x13b   :  { %v164_v30 = vpop.xlane.xlu1 %163  ;;  %v167_v31 = vpop.xlane.xlu0 %166 }
 0x13c   :  { %5666 = vrsqrt.f32 %v182_v26  ;;  %v176_v32 = vmul.f32 0.2, %v164_v30  ;;  %v177_v34 = vmul.f32 0.2, %v167_v31 }
 0x13d   :  { %5668 = vrsqrt.f32 %v183_v27  ;;  %v235_v27 = vld [vmem:[%s8204_s28] sm:$0x3] }
 0x13e   :  { %v184_v33 = vadd.f32 1e-05, %v176_v32  ;;  %v185_v40 = vadd.f32 1e-05, %v177_v34 }
 0x13f   :  { %v170_v35 = vpop.xlane.xlu1 %169 }
 0x140   :  { %5670 = vrsqrt.f32 %v184_v33  ;;  %v178_v41 = vmul.f32 0.2, %v170_v35 }
 0x141   :  { %v5661_v36 = vpop.eup %5660  ;;  %5672 = vrsqrt.f32 %v185_v40 }
 0x142   :  { %v195_v42 = vmul.f32 %v5661_v36, %v6291_v20  ;;  %v186_v47 = vadd.f32 1e-05, %v178_v41 }
 0x144   :  { %v210_v44 = vmul.f32 %v6458_v37, %v195_v42  ;;  %5674 = vrsqrt.f32 %v186_v47 }
 0x145   :  { %v5663_v45 = vpop.eup %5662 }
 0x146   :  { %v5665_v46 = vpop.eup %5664  ;;  %v225_v50 = vadd.f32 %v6464_v43, %v210_v44  ;;  %v196_v51 = vmul.f32 %v5663_v45, %v6299_v28 }
 0x147   :  { %v197_v52 = vmul.f32 %v5665_v46, %v6293_v21 }
 0x148   :  { %5303 = vmatmul.mubr.msk.f32.vlgmr.msra.gmra.mxu0 %vm97_vm0, %v225_v50  ;;  %v211_v20 = vmul.f32 %v6458_v37, %v196_v51 }
 0x149   :  { %v5667_v53 = vpop.eup %5666  ;;  %348 = vmatprep.mubr.f32.mxu0 %v6113_v7  ;;  %720 = vmatpush1.msra.mxu0 %v6340_v57  ;;  %v212_v55 = vmul.f32 %v6458_v37, %v197_v52 }
 0x14a   :  { %v226_v54 = vadd.f32 %v6464_v43, %v211_v20  ;;  %v198_v5 = vmul.f32 %v5667_v53, %v6301_v29  ;;  %721 = vmatprep.subr.mxu0 %v6346_v58  ;;  %v5669_v28 = vpop.eup %5668 }
 0x14b   :  { %722 = vmatpush1.msra.mxu0 %v6352_v59  ;;  %v227_v21 = vadd.f32 %v6464_v43, %v212_v55  ;;  %v199_v11 = vmul.f32 %v5669_v28, %v6309_v38 }
 0x14c   :  { %5304 = vmatmul.mubr.msk.f32.gmra.mxu0 %vm97_vm0, %v226_v54  ;;  %723 = vmatprep.subr.mxu0 %v6358_v60  ;;  %v213_v6 = vmul.f32 %v6458_v37, %v198_v5 }
 0x14d   :  { %354 = vmatprep.mubr.f32.mxu0 %v6113_v7  ;;  %724 = vmatpush1.msra.mxu0 %v6364_v61  ;;  %v5671_v29 = vpop.eup %5670  ;;  %v214_v13 = vmul.f32 %v6458_v37, %v199_v11 }
 0x14e   :  { %725 = vmatprep.subr.mxu0 %v6370_v62  ;;  %v228_v12 = vadd.f32 %v6464_v43, %v213_v6  ;;  %v200_v14 = vmul.f32 %v5671_v29, %v6311_v39  ;;  %v5673_v38 = vpop.eup %5672 }
 0x14f   :  { %726 = vmatpush1.msra.mxu0 %v6376_v63  ;;  %v229_v15 = vadd.f32 %v6464_v43, %v214_v13  ;;  %v201_v17 = vmul.f32 %v5673_v38, %v6319_v48 }
 0x150   :  { %5305 = vmatmul.mubr.msk.f32.gmra.mxu0 %vm97_vm0, %v227_v21  ;;  %727 = vmatprep.subr.mxu0 %v6382_v0  ;;  %v215_v16 = vmul.f32 %v6458_v37, %v200_v14 }
 0x151   :  { %360 = vmatprep.mubr.f32.mxu0 %v6113_v7  ;;  %728 = vmatpush1.msra.mxu0 %v6388_v1  ;;  %v5675_v39 = vpop.eup %5674  ;;  %v216_v19 = vmul.f32 %v6458_v37, %v201_v17 }
 0x152   :  { %729 = vmatprep.subr.mxu0 %v6394_v2  ;;  %v230_v18 = vadd.f32 %v6464_v43, %v215_v16  ;;  %v202_v22 = vmul.f32 %v5675_v39, %v6321_v49  ;;  %v6522_v49 = vshrl.u32 %v237_v25, 7 }
 0x153   :  { %730 = vmatpush1.msra.mxu0 %v6399_v3  ;;  %v231_v48 = vadd.f32 %v6464_v43, %v216_v19 }
 0x154   :  { %5306 = vmatmul.mubr.msk.f32.gmra.mxu0 %vm97_vm0, %v228_v12  ;;  %731 = vmatprep.subr.mxu0 %v6404_v4  ;;  %v217_v23 = vmul.f32 %v6458_v37, %v202_v22  ;;  %v6525_v26 = vsub.s32 0, %v6522_v49  ;;  %v6531_v30 = vsub.s32 1, %v6522_v49 }
 0x155   :  { %366 = vmatprep.mubr.f32.mxu0 %v6113_v7  ;;  %732 = vmatpush1.msra.mxu0 %v6417_v8 }
 0x156   :  { %733 = vmatprep.subr.mxu0 %v6425_v9  ;;  %v232_v24 = vadd.f32 %v6464_v43, %v217_v23  ;;  %v240_v31 = vrot.slane %v235_v27, %v6525_v26  ;;  %v244_v32 = vrot.slane %v235_v27, %v6531_v30 }
 0x157   :  { %734 = vmatpush1.msra.mxu0 %v6430_v10 }
 0x158   :  { %5307 = vmatmul.mubr.msk.f32.gmra.mxu0 %vm97_vm0, %v229_v15  ;;  %993 = vmatprep.subr.mxu0 %v6334_v56 }
 0x159   :  { %372 = vmatprep.mubr.f32.mxu0 %v6113_v7 }
 0x15c   :  { %5308 = vmatmul.mubr.msk.f32.gmra.mxu0 %vm97_vm0, %v230_v18 }
 0x15d   :  { %378 = vmatprep.mubr.f32.mxu0 %v6113_v7 }
 0x160   :  { %5309 = vmatmul.mubr.msk.f32.gmra.mxu0 %vm97_vm0, %v231_v48 }
 0x161   :  { %384 = vmatprep.mubr.f32.mxu0 %v6113_v7 }
 0x164   :  { %5310 = vmatmul.mubr.msk.f32.gmra.mxu0 %vm97_vm0, %v232_v24 }
 0x165   :  { %767 = vmatprep.mubr.f32.mxu0 %v6113_v7 }
 0x16f   :  { %v493_v34 = vpop.f32.mrf.mxu1 }
 0x171   :  { %v495_v19 = vpop.f32.mrf.mxu1 }
 0x208   :  { %v344_v33 = vpop.f32.mrf.mxu0 }
 0x209   :  { %v345_v35 = vadd.f32 %v344_v33, %v240_v31 }
 0x20a   :  { %v346_v36 = vpop.f32.mrf.mxu0 }
 0x20b   :  { %v6535_v37 = vadd.f32 %v346_v36, %v244_v32  ;;  %v500_v40 = vadd.f32 %v493_v34, %v345_v35 }
 0x20c   :  { %v350_v41 = vpop.f32.mrf.mxu0 }
 0x20d   :  { %5676 = vtanh.f32 %v500_v40  ;;  %v6537_v42 = vadd.f32 %v350_v41, %v240_v31  ;;  %v5311_v23 = vmul.f32 -1.442695, %v500_v40 }
 0x20e   :  { %v352_v43 = vpop.f32.mrf.mxu0 }
 0x20f   :  { %v6539_v44 = vadd.f32 %v352_v43, %v244_v32 }
 0x210   :  { %v356_v45 = vpop.f32.mrf.mxu0 }
 0x211   :  { %v6541_v46 = vadd.f32 %v356_v45, %v240_v31 }
 0x212   :  { %v358_v47 = vpop.f32.mrf.mxu0 }
 0x213   :  { %v6543_v50 = vadd.f32 %v358_v47, %v244_v32 }
 0x214   :  { %v362_v51 = vpop.f32.mrf.mxu0 }
 0x215   :  { %v6545_v52 = vadd.f32 %v362_v51, %v240_v31 }
 0x216   :  { %v364_v20 = vpop.f32.mrf.mxu0 }
 0x217   :  { %v6547_v53 = vadd.f32 %v364_v20, %v244_v32 }
 0x218   :  { %v368_v54 = vpop.f32.mrf.mxu0 }
 0x219   :  { %v6549_v55 = vadd.f32 %v368_v54, %v240_v31 }
 0x21a   :  { %v5677_v5 = vpop.eup %5676  ;;  %v370_v28 = vpop.f32.mrf.mxu0 }
 0x21b   :  { %v6551_v21 = vadd.f32 %v370_v28, %v244_v32  ;;  %518 = vrot.lane.b32.xlu0 %v5677_v5, %s6114_s0 }
 0x21c   :  { %v374_v6 = vpop.f32.mrf.mxu0 }
 0x21d   :  { %v6554_v11 = vadd.f32 %v374_v6, %v240_v31 }
 0x21e   :  { %v376_v29 = vpop.f32.mrf.mxu0 }
 0x21f   :  { %v6556_v12 = vadd.f32 %v376_v29, %v244_v32 }
 0x220   :  { %v380_v13 = vpop.f32.mrf.mxu0 }
 0x221   :  { %v6558_v14 = vadd.f32 %v380_v13, %v240_v31 }
 0x222   :  { %v382_v38 = vpop.f32.mrf.mxu0 }
 0x223   :  { %v6560_v15 = vadd.f32 %v382_v38, %v244_v32 }
 0x224   :  { %v386_v16 = vpop.f32.mrf.mxu0 }
 0x225   :  { %v6562_v17 = vadd.f32 %v386_v16, %v240_v31 }
 0x226   :  { %v388_v39 = vpop.f32.mrf.mxu0 }
 0x227   :  { %v389_v18 = vadd.f32 %v388_v39, %v244_v32 }
 0x229   :  { %v501_v22 = vadd.f32 %v495_v19, %v389_v18 }
 0x22b   :  { %5678 = vtanh.f32 %v501_v22  ;;  %v5312_v33 = vmul.f32 -1.442695, %v501_v22 }
 0x22c   :  { %5680 = vpow2.f32 %v5311_v23 }
 0x238   :  { %v5679_v48 = vpop.eup %5678 }
 0x239   :  { %529 = vrot.lane.b32.xlu1 %v5679_v48, %s6114_s0  ;;  %v5681_v24 = vpop.eup %5680 }
 0x23a   :  { %v508_v27 = vadd.f32 1.0, %v5681_v24 }
 0x23c   :  { %5682 = vrcp.f32 %v508_v27 }
 0x23d   :  { %5684 = vpow2.f32 %v5312_v33 }
 0x249   :  { %v5683_v34 = vpop.eup %5682 }
 0x24a   :  { %v5685_v31 = vpop.eup %5684  ;;  %v516_v40 = vmul.f32 0.0, %v5683_v34 }
 0x24b   :  { %v509_v32 = vadd.f32 1.0, %v5685_v31 }
 0x24d   :  { %5686 = vrcp.f32 %v509_v32 }
 0x25a   :  { %v5687_v41 = vpop.eup %5686 }
 0x25b   :  { %v527_v54 = vmul.f32 0.0, %v5687_v41 }
 0x28d   :  { %v519_v35 = vpop.permute.xlu0 %518 }
 0x28e   :  { %v521_v36 = vmul.f32 %v5683_v34, %v519_v35 }
 0x290   :  { %523 = vrot.lane.b32.xlu1 %v521_v36, %s6114_s0 }
 0x2ab   :  { %v530_v43 = vpop.permute.xlu1 %529 }
 0x2ac   :  { %v532_v45 = vmul.f32 %v5687_v41, %v530_v43 }
 0x2ae   :  { %534 = vrot.lane.b32.xlu1 %v532_v45, %s6114_s0 }
 0x302   :  { %v524_v47 = vpop.permute.xlu1 %523 }
 0x303   :  { %v6567_v51 = vadd.f32 %v524_v47, %v516_v40 }
 0x305   :  { %5688 = vtanh.f32 %v6567_v51 }
 0x312   :  { %v5689_v20 = vpop.eup %5688 }
 0x313   :  { %540 = vrot.lane.b32.xlu0 %v5689_v20, %s6114_s0 }
 0x320   :  { %v535_v5 = vpop.permute.xlu1 %534 }
 0x321   :  { %v6571_v28 = vadd.f32 %v535_v5, %v527_v54 }
 0x323   :  { %5690 = vtanh.f32 %v6571_v28 }
 0x330   :  { %v5691_v6 = vpop.eup %5690 }
 0x331   :  { %546 = vrot.lane.b32.xlu1 %v5691_v6, %s6114_s0 }
 0x385   :  { %v541_v29 = vpop.permute.xlu0 %540 }
 0x386   :  { %v543_v13 = vmul.f32 %v5683_v34, %v541_v29 }
 0x388   :  { %551 = vrot.lane.b32.xlu0 %v543_v13, %s6115_s10 }
 0x3a3   :  { %v547_v38 = vpop.permute.xlu1 %546 }
 0x3a4   :  { %v549_v16 = vmul.f32 %v5687_v41, %v547_v38 }
 0x3a6   :  { %557 = vrot.lane.b32.xlu1 %v549_v16, %s6116_s29 }
 0x3fa   :  { %v552_v39 = vpop.permute.xlu0 %551 }
 0x3fb   :  { %555 = vst.msk [vmem:[#allocation2] sm:$0xff] %vm554_vm2, %v552_v39 }
 0x418   :  { %v558_v18 = vpop.permute.xlu1 %557 }
 0x419   :  { %561 = vst.msk [vmem:[#allocation2 + $0x38] sm:$0xff] %vm560_vm3, %v558_v18  ;;  %v562_v19 = vsel %vm554_vm2, %v552_v39, %v558_v18 }
 0x41a   :  { %5313 = vmatmul.mubr.msk.f32.vlgmr.msra.gmra.mxu1 %vm423_vm4, %v562_v19 }
 0x41b   :  { %857 = vmatpush1.msra.mxu1 %v6340_v57  ;;  %904 = vmatprep.mubr.f32.mxu1 %v6113_v7 }
 0x41c   :  { %858 = vmatprep.subr.mxu1 %v6346_v58 }
 0x41d   :  { %859 = vmatpush1.msra.mxu1 %v6352_v59 }
 0x41e   :  { %860 = vmatprep.subr.mxu1 %v6358_v60 }
 0x41f   :  { %861 = vmatpush1.msra.mxu1 %v6364_v61 }
 0x420   :  { %862 = vmatprep.subr.mxu1 %v6370_v62 }
 0x421   :  { %863 = vmatpush1.msra.mxu1 %v6376_v63 }
 0x422   :  { %864 = vmatprep.subr.mxu1 %v6382_v0 }
 0x423   :  { %865 = vmatpush1.msra.mxu1 %v6388_v1 }
 0x424   :  { %866 = vmatprep.subr.mxu1 %v6394_v2 }
 0x425   :  { %867 = vmatpush1.msra.mxu1 %v6399_v3 }
 0x426   :  { %868 = vmatprep.subr.mxu1 %v6404_v4 }
 0x427   :  { %869 = vmatpush1.msra.mxu1 %v6417_v8 }
 0x428   :  { %870 = vmatprep.subr.mxu1 %v6425_v9 }
 0x429   :  { %871 = vmatpush1.msra.mxu1 %v6430_v10 }
 0x42a   :  { %1130 = vmatprep.subr.mxu1 %v6334_v56 }
 0x4da   :  { %v632_v22 = vpop.f32.mrf.mxu1 }
 0x4db   :  { %v639_v48 = vadd.f32 %v632_v22, %v6537_v42 }
 0x4dc   :  { %v634_v23 = vpop.f32.mrf.mxu1 }
 0x4dd   :  { %5692 = vtanh.f32 %v639_v48  ;;  %v640_v24 = vadd.f32 %v634_v23, %v6560_v15  ;;  %v5314_v34 = vmul.f32 -1.442695, %v639_v48 }
 0x4df   :  { %5694 = vtanh.f32 %v640_v24  ;;  %v5315_v35 = vmul.f32 -1.442695, %v640_v24 }
 0x4e0   :  { %5696 = vpow2.f32 %v5314_v34 }
 0x4e1   :  { %5698 = vpow2.f32 %v5315_v35 }
 0x4ea   :  { %v5693_v27 = vpop.eup %5692 }
 0x4eb   :  { %657 = vrot.lane.b32.xlu0 %v5693_v27, %s6114_s0 }
 0x4ec   :  { %v5695_v33 = vpop.eup %5694 }
 0x4ed   :  { %668 = vrot.lane.b32.xlu1 %v5695_v33, %s6114_s0  ;;  %v5697_v36 = vpop.eup %5696 }
 0x4ee   :  { %v5699_v31 = vpop.eup %5698  ;;  %v647_v32 = vadd.f32 1.0, %v5697_v36 }
 0x4ef   :  { %v648_v41 = vadd.f32 1.0, %v5699_v31 }
 0x4f0   :  { %5700 = vrcp.f32 %v647_v32 }
 0x4f1   :  { %5702 = vrcp.f32 %v648_v41 }
 0x4fd   :  { %v5701_v42 = vpop.eup %5700 }
 0x4fe   :  { %v5703_v45 = vpop.eup %5702  ;;  %v655_v20 = vmul.f32 %v5701_v42, %v6567_v51 }
 0x4ff   :  { %v666_v6 = vmul.f32 %v5703_v45, %v6571_v28 }
 0x55d   :  { %v658_v43 = vpop.permute.xlu0 %657 }
 0x55e   :  { %v660_v15 = vmul.f32 %v5701_v42, %v658_v43 }
 0x55f   :  { %v669_v40 = vpop.permute.xlu1 %668 }
 0x560   :  { %662 = vrot.lane.b32.xlu0 %v660_v15, %s6114_s0  ;;  %v671_v47 = vmul.f32 %v5703_v45, %v669_v40 }
 0x562   :  { %673 = vrot.lane.b32.xlu1 %v671_v47, %s6114_s0 }
 0x5d2   :  { %v663_v54 = vpop.permute.xlu0 %662 }
 0x5d3   :  { %v6605_v5 = vadd.f32 %v663_v54, %v655_v20 }
 0x5d4   :  { %v674_v29 = vpop.permute.xlu1 %673 }
 0x5d5   :  { %5704 = vtanh.f32 %v6605_v5  ;;  %v6609_v13 = vadd.f32 %v674_v29, %v666_v6 }
 0x5d7   :  { %5706 = vtanh.f32 %v6609_v13 }
 0x5e2   :  { %v5705_v38 = vpop.eup %5704 }
 0x5e3   :  { %679 = vrot.lane.b32.xlu0 %v5705_v38, %s6114_s0 }
 0x5e4   :  { %v5707_v16 = vpop.eup %5706 }
 0x5e5   :  { %685 = vrot.lane.b32.xlu1 %v5707_v16, %s6114_s0 }
 0x655   :  { %v680_v39 = vpop.permute.xlu0 %679 }
 0x656   :  { %v682_v51 = vmul.f32 %v5701_v42, %v680_v39 }
 0x657   :  { %v686_v18 = vpop.permute.xlu1 %685 }
 0x658   :  { %690 = vrot.lane.b32.xlu0 %v682_v51, %s6115_s10  ;;  %v688_v19 = vmul.f32 %v5703_v45, %v686_v18 }
 0x65a   :  { %695 = vrot.lane.b32.xlu1 %v688_v19, %s6116_s29 }
 0x6ca   :  { %v691_v28 = vpop.permute.xlu0 %690 }
 0x6cb   :  { %693 = vst.msk [vmem:[#allocation2 + $0x8] sm:$0xff] %vm554_vm2, %v691_v28 }
 0x6cc   :  { %v696_v22 = vpop.permute.xlu1 %695 }
 0x6cd   :  { %698 = vst.msk [vmem:[#allocation2 + $0x30] sm:$0xff] %vm560_vm3, %v696_v22  ;;  %v699_v48 = vsel %vm554_vm2, %v691_v28, %v696_v22 }
 0x6ce   :  { %5316 = vmatmul.mubr.msk.f32.vlgmr.msra.gmra.mxu0 %vm423_vm4, %v699_v48 }
 0x6cf   :  { %994 = vmatpush1.msra.mxu0 %v6340_v57  ;;  %1041 = vmatprep.mubr.f32.mxu0 %v6113_v7 }
 0x6d0   :  { %995 = vmatprep.subr.mxu0 %v6346_v58 }
 0x6d1   :  { %996 = vmatpush1.msra.mxu0 %v6352_v59 }
 0x6d2   :  { %997 = vmatprep.subr.mxu0 %v6358_v60 }
 0x6d3   :  { %998 = vmatpush1.msra.mxu0 %v6364_v61 }
 0x6d4   :  { %999 = vmatprep.subr.mxu0 %v6370_v62 }
 0x6d5   :  { %1000 = vmatpush1.msra.mxu0 %v6376_v63 }
 0x6d6   :  { %1001 = vmatprep.subr.mxu0 %v6382_v0 }
 0x6d7   :  { %1002 = vmatpush1.msra.mxu0 %v6388_v1 }
 0x6d8   :  { %1003 = vmatprep.subr.mxu0 %v6394_v2 }
 0x6d9   :  { %1004 = vmatpush1.msra.mxu0 %v6399_v3 }
 0x6da   :  { %1005 = vmatprep.subr.mxu0 %v6404_v4 }
 0x6db   :  { %1006 = vmatpush1.msra.mxu0 %v6417_v8 }
 0x6dc   :  { %1007 = vmatprep.subr.mxu0 %v6425_v9 }
 0x6dd   :  { %1008 = vmatpush1.msra.mxu0 %v6430_v10 }
 0x6de   :  { %1267 = vmatprep.subr.mxu0 %v6334_v56 }
 0x78e   :  { %v769_v23 = vpop.f32.mrf.mxu0 }
 0x78f   :  { %v776_v24 = vadd.f32 %v769_v23, %v6541_v46 }
 0x790   :  { %v771_v27 = vpop.f32.mrf.mxu0 }
 0x791   :  { %5708 = vtanh.f32 %v776_v24  ;;  %v777_v33 = vadd.f32 %v771_v27, %v6556_v12  ;;  %v5317_v36 = vmul.f32 -1.442695, %v776_v24 }
 0x793   :  { %5710 = vtanh.f32 %v777_v33  ;;  %v5318_v31 = vmul.f32 -1.442695, %v777_v33 }
 0x794   :  { %5712 = vpow2.f32 %v5317_v36 }
 0x795   :  { %5714 = vpow2.f32 %v5318_v31 }
 0x79e   :  { %v5709_v34 = vpop.eup %5708 }
 0x79f   :  { %794 = vrot.lane.b32.xlu0 %v5709_v34, %s6114_s0 }
 0x7a0   :  { %v5711_v35 = vpop.eup %5710 }
 0x7a1   :  { %805 = vrot.lane.b32.xlu1 %v5711_v35, %s6114_s0  ;;  %v5713_v32 = vpop.eup %5712 }
 0x7a2   :  { %v5715_v41 = vpop.eup %5714  ;;  %v784_v42 = vadd.f32 1.0, %v5713_v32 }
 0x7a3   :  { %v785_v43 = vadd.f32 1.0, %v5715_v41 }
 0x7a4   :  { %5716 = vrcp.f32 %v784_v42 }
 0x7a5   :  { %5718 = vrcp.f32 %v785_v43 }
 0x7b1   :  { %v5717_v46 = vpop.eup %5716 }
 0x7b2   :  { %v5719_v45 = vpop.eup %5718  ;;  %v792_v20 = vmul.f32 %v5717_v46, %v6605_v5 }
 0x7b3   :  { %v803_v29 = vmul.f32 %v5719_v45, %v6609_v13 }
 0x811   :  { %v795_v15 = vpop.permute.xlu0 %794 }
 0x812   :  { %v797_v12 = vmul.f32 %v5717_v46, %v795_v15 }
 0x813   :  { %v806_v40 = vpop.permute.xlu1 %805 }
 0x814   :  { %799 = vrot.lane.b32.xlu0 %v797_v12, %s6114_s0  ;;  %v808_v47 = vmul.f32 %v5719_v45, %v806_v40 }
 0x816   :  { %810 = vrot.lane.b32.xlu1 %v808_v47, %s6114_s0 }
 0x886   :  { %v800_v54 = vpop.permute.xlu0 %799 }
 0x887   :  { %v6644_v6 = vadd.f32 %v800_v54, %v792_v20 }
 0x888   :  { %v811_v38 = vpop.permute.xlu1 %810 }
 0x889   :  { %5720 = vtanh.f32 %v6644_v6  ;;  %v6648_v16 = vadd.f32 %v811_v38, %v803_v29 }
 0x88b   :  { %5722 = vtanh.f32 %v6648_v16 }
 0x896   :  { %v5721_v39 = vpop.eup %5720 }
 0x897   :  { %816 = vrot.lane.b32.xlu0 %v5721_v39, %s6114_s0 }
 0x898   :  { %v5723_v51 = vpop.eup %5722 }
 0x899   :  { %822 = vrot.lane.b32.xlu1 %v5723_v51, %s6114_s0 }
 0x909   :  { %v817_v18 = vpop.permute.xlu0 %816 }
 0x90a   :  { %v819_v5 = vmul.f32 %v5717_v46, %v817_v18 }
 0x90b   :  { %v823_v19 = vpop.permute.xlu1 %822 }
 0x90c   :  { %827 = vrot.lane.b32.xlu0 %v819_v5, %s6115_s10  ;;  %v825_v28 = vmul.f32 %v5719_v45, %v823_v19 }
 0x90e   :  { %832 = vrot.lane.b32.xlu1 %v825_v28, %s6116_s29 }
 0x97e   :  { %v828_v13 = vpop.permute.xlu0 %827 }
 0x97f   :  { %830 = vst.msk [vmem:[#allocation2 + $0x10] sm:$0xff] %vm554_vm2, %v828_v13 }
 0x980   :  { %v833_v22 = vpop.permute.xlu1 %832 }
 0x981   :  { %835 = vst.msk [vmem:[#allocation2 + $0x28] sm:$0xff] %vm560_vm3, %v833_v22  ;;  %v836_v48 = vsel %vm554_vm2, %v828_v13, %v833_v22 }
 0x982   :  { %5319 = vmatmul.mubr.msk.f32.vlgmr.msra.gmra.mxu1 %vm423_vm4, %v836_v48 }
 0x983   :  { %1131 = vmatpush1.msra.mxu1 %v6340_v57  ;;  %1178 = vmatprep.mubr.f32.mxu1 %v6113_v7 }
 0x984   :  { %1132 = vmatprep.subr.mxu1 %v6346_v58 }
 0x985   :  { %1133 = vmatpush1.msra.mxu1 %v6352_v59 }
 0x986   :  { %1134 = vmatprep.subr.mxu1 %v6358_v60 }
 0x987   :  { %1135 = vmatpush1.msra.mxu1 %v6364_v61 }
 0x988   :  { %1136 = vmatprep.subr.mxu1 %v6370_v62 }
 0x989   :  { %1137 = vmatpush1.msra.mxu1 %v6376_v63 }
 0x98a   :  { %1138 = vmatprep.subr.mxu1 %v6382_v0 }
 0x98b   :  { %1139 = vmatpush1.msra.mxu1 %v6388_v1 }
 0x98c   :  { %1140 = vmatprep.subr.mxu1 %v6394_v2 }
 0x98d   :  { %1141 = vmatpush1.msra.mxu1 %v6399_v3 }
 0x98e   :  { %1142 = vmatprep.subr.mxu1 %v6404_v4 }
 0x98f   :  { %1143 = vmatpush1.msra.mxu1 %v6417_v8 }
 0x990   :  { %1144 = vmatprep.subr.mxu1 %v6425_v9 }
 0x991   :  { %1145 = vmatpush1.msra.mxu1 %v6430_v10 }
 0x992   :  { %1404 = vmatprep.subr.mxu1 %v6334_v56 }
 0xa42   :  { %v906_v23 = vpop.f32.mrf.mxu1 }
 0xa43   :  { %v913_v24 = vadd.f32 %v906_v23, %v6545_v52 }
 0xa44   :  { %v908_v27 = vpop.f32.mrf.mxu1 }
 0xa45   :  { %5724 = vtanh.f32 %v913_v24  ;;  %v914_v33 = vadd.f32 %v908_v27, %v6551_v21  ;;  %v5320_v36 = vmul.f32 -1.442695, %v913_v24 }
 0xa47   :  { %5726 = vtanh.f32 %v914_v33  ;;  %v5321_v31 = vmul.f32 -1.442695, %v914_v33 }
 0xa48   :  { %5728 = vpow2.f32 %v5320_v36 }
 0xa49   :  { %5730 = vpow2.f32 %v5321_v31 }
 0xa52   :  { %v5725_v34 = vpop.eup %5724 }
 0xa53   :  { %931 = vrot.lane.b32.xlu0 %v5725_v34, %s6114_s0 }
 0xa54   :  { %v5727_v35 = vpop.eup %5726 }
 0xa55   :  { %942 = vrot.lane.b32.xlu1 %v5727_v35, %s6114_s0  ;;  %v5729_v32 = vpop.eup %5728 }
 0xa56   :  { %v5731_v56 = vpop.eup %5730  ;;  %v921_v41 = vadd.f32 1.0, %v5729_v32 }
 0xa57   :  { %v922_v42 = vadd.f32 1.0, %v5731_v56 }
 0xa58   :  { %5732 = vrcp.f32 %v921_v41 }
 0xa59   :  { %5734 = vrcp.f32 %v922_v42 }
 0xa65   :  { %v5733_v52 = vpop.eup %5732 }
 0xa66   :  { %v5735_v46 = vpop.eup %5734  ;;  %v929_v45 = vmul.f32 %v5733_v52, %v6644_v6 }
 0xa67   :  { %v940_v20 = vmul.f32 %v5735_v46, %v6648_v16 }
 0xac5   :  { %v932_v43 = vpop.permute.xlu0 %931 }
 0xac6   :  { %v934_v21 = vmul.f32 %v5733_v52, %v932_v43  ;;  %v6098_v43 = vld [vmem:[%s8200_s9 + $0x70] sm:$0xff] }
 0xac7   :  { %v943_v15 = vpop.permute.xlu1 %942 }
 0xac8   :  { %936 = vrot.lane.b32.xlu0 %v934_v21, %s6114_s0  ;;  %v945_v12 = vmul.f32 %v5735_v46, %v943_v15  ;;  %v6099_v21 = vld [vmem:[%s8200_s9 + $0x68] sm:$0xff]  ;;  %v6101_v15 = vld [vmem:[%s8200_s9 + $0x58] sm:$0xff] }
 0xaca   :  { %947 = vrot.lane.b32.xlu1 %v945_v12, %s6114_s0  ;;  %v6102_v12 = vld [vmem:[%s8200_s9 + $0x50] sm:$0xff] }
 0xb3a   :  { %v937_v40 = vpop.permute.xlu0 %936 }
 0xb3b   :  { %v6683_v47 = vadd.f32 %v937_v40, %v929_v45  ;;  %v6103_v45 = vld [vmem:[%s8200_s9 + $0x48] sm:$0xff]  ;;  %v6104_v40 = vld [vmem:[%s8200_s9 + $0x40] sm:$0xff] }
 0xb3c   :  { %v948_v54 = vpop.permute.xlu1 %947 }
 0xb3d   :  { %5736 = vtanh.f32 %v6683_v47  ;;  %v6687_v29 = vadd.f32 %v948_v54, %v940_v20  ;;  %v6106_v20 = vld [vmem:[%s8200_s9 + $0x30] sm:$0xff]  ;;  %v6107_v54 = vld [vmem:[%s8200_s9 + $0x28] sm:$0xff] }
 0xb3f   :  { %5738 = vtanh.f32 %v6687_v29 }
 0xb4a   :  { %v5737_v38 = vpop.eup %5736 }
 0xb4b   :  { %953 = vrot.lane.b32.xlu0 %v5737_v38, %s6114_s0  ;;  %v6109_v38 = vld [vmem:[%s8200_s9 + $0x18] sm:$0xff] }
 0xb4c   :  { %v5739_v39 = vpop.eup %5738 }
 0xb4d   :  { %959 = vrot.lane.b32.xlu1 %v5739_v39, %s6114_s0  ;;  %v6110_v39 = vld [vmem:[%s8200_s9 + $0x10] sm:$0xff] }
 0xbbd   :  { %v954_v51 = vpop.permute.xlu0 %953 }
 0xbbe   :  { %v956_v6 = vmul.f32 %v5733_v52, %v954_v51  ;;  %v6111_v51 = vld [vmem:[%s8200_s9 + $0x8] sm:$0xff] }
 0xbbf   :  { %v960_v18 = vpop.permute.xlu1 %959 }
 0xbc0   :  { %964 = vrot.lane.b32.xlu0 %v956_v6, %s6115_s10  ;;  %v962_v5 = vmul.f32 %v5735_v46, %v960_v18  ;;  %v6100_v46 = vld [vmem:[%s8200_s9 + $0x60] sm:$0xff] }
 0xbc1   :  { %v6112_v6 = vld [vmem:[%s8200_s9] sm:$0xff] }
 0xbc2   :  { %969 = vrot.lane.b32.xlu1 %v962_v5, %s6116_s29 }
 0xc32   :  { %v965_v16 = vpop.permute.xlu0 %964 }
 0xc33   :  { %967 = vst.msk [vmem:[#allocation2 + $0x18] sm:$0xff] %vm554_vm2, %v965_v16 }
 0xc34   :  { %v970_v19 = vpop.permute.xlu1 %969 }
 0xc35   :  { %972 = vst.msk [vmem:[#allocation2 + $0x20] sm:$0xff] %vm560_vm3, %v970_v19  ;;  %v973_v28 = vsel %vm554_vm2, %v965_v16, %v970_v19 }
 0xc36   :  { %5322 = vmatmul.mubr.msk.f32.vlgmr.msra.gmra.mxu0 %vm423_vm4, %v973_v28 }
 0xc37   :  { %1268 = vmatpush1.msra.mxu0 %v6340_v57  ;;  %1315 = vmatprep.mubr.f32.mxu0 %v6113_v7 }
 0xc38   :  { %1269 = vmatprep.subr.mxu0 %v6346_v58 }
 0xc39   :  { %1270 = vmatpush1.msra.mxu0 %v6352_v59 }
 0xc3a   :  { %1271 = vmatprep.subr.mxu0 %v6358_v60 }
 0xc3b   :  { %1272 = vmatpush1.msra.mxu0 %v6364_v61 }
 0xc3c   :  { %1273 = vmatprep.subr.mxu0 %v6370_v62 }
 0xc3d   :  { %1274 = vmatpush1.msra.mxu0 %v6376_v63 }
 0xc3e   :  { %1275 = vmatprep.subr.mxu0 %v6382_v0 }
 0xc3f   :  { %1276 = vmatpush1.msra.mxu0 %v6388_v1 }
 0xc40   :  { %1277 = vmatprep.subr.mxu0 %v6394_v2 }
 0xc41   :  { %1278 = vmatpush1.msra.mxu0 %v6399_v3 }
 0xc42   :  { %1279 = vmatprep.subr.mxu0 %v6404_v4 }
 0xc43   :  { %1280 = vmatpush1.msra.mxu0 %v6417_v8 }
 0xc44   :  { %1281 = vmatprep.subr.mxu0 %v6425_v9 }
 0xc45   :  { %1282 = vmatpush1.msra.mxu0 %v6430_v10 }
 0xcf6   :  { %v1043_v57 = vpop.f32.mrf.mxu0 }
 0xcf7   :  { %v1050_v58 = vadd.f32 %v1043_v57, %v6549_v55 }
 0xcf8   :  { %v1045_v59 = vpop.f32.mrf.mxu0 }
 0xcf9   :  { %5740 = vtanh.f32 %v1050_v58  ;;  %v1051_v60 = vadd.f32 %v1045_v59, %v6547_v53  ;;  %v5323_v63 = vmul.f32 -1.442695, %v1050_v58 }
 0xcfb   :  { %5742 = vtanh.f32 %v1051_v60  ;;  %v5324_v0 = vmul.f32 -1.442695, %v1051_v60 }
 0xcfc   :  { %5744 = vpow2.f32 %v5323_v63 }
 0xcfd   :  { %5746 = vpow2.f32 %v5324_v0 }
 0xd06   :  { %v5741_v61 = vpop.eup %5740 }
 0xd07   :  { %1068 = vrot.lane.b32.xlu0 %v5741_v61, %s6114_s0 }
 0xd08   :  { %v5743_v62 = vpop.eup %5742 }
 0xd09   :  { %1079 = vrot.lane.b32.xlu1 %v5743_v62, %s6114_s0  ;;  %v5745_v1 = vpop.eup %5744 }
 0xd0a   :  { %v5747_v2 = vpop.eup %5746  ;;  %v1058_v3 = vadd.f32 1.0, %v5745_v1 }
 0xd0b   :  { %v1059_v4 = vadd.f32 1.0, %v5747_v2 }
 0xd0c   :  { %5748 = vrcp.f32 %v1058_v3 }
 0xd0d   :  { %5750 = vrcp.f32 %v1059_v4 }
 0xd19   :  { %v5749_v8 = vpop.eup %5748 }
 0xd1a   :  { %v5751_v53 = vpop.eup %5750  ;;  %v1066_v22 = vmul.f32 %v5749_v8, %v6683_v47  ;;  %v6105_v47 = vld [vmem:[%s8200_s9 + $0x38] sm:$0xff] }
 0xd1b   :  { %v1077_v24 = vmul.f32 %v5751_v53, %v6687_v29  ;;  %v6108_v29 = vld [vmem:[%s8200_s9 + $0x20] sm:$0xff]  ;;  %s8210_s9 = sld [smem:[#allocation17_spill]] }
 0xd79   :  { %v1069_v9 = vpop.permute.xlu0 %1068 }
 0xd7a   :  { %v1071_v10 = vmul.f32 %v5749_v8, %v1069_v9 }
 0xd7b   :  { %v1080_v55 = vpop.permute.xlu1 %1079 }
 0xd7c   :  { %1073 = vrot.lane.b32.xlu0 %v1071_v10, %s6114_s0  ;;  %v1082_v13 = vmul.f32 %v5751_v53, %v1080_v55 }
 0xd7e   :  { %1084 = vrot.lane.b32.xlu1 %v1082_v13, %s6114_s0 }
 0xdee   :  { %v1074_v48 = vpop.permute.xlu0 %1073 }
 0xdef   :  { %v6721_v23 = vadd.f32 %v1074_v48, %v1066_v22 }
 0xdf0   :  { %v1085_v27 = vpop.permute.xlu1 %1084 }
 0xdf1   :  { %5752 = vtanh.f32 %v6721_v23  ;;  %v6725_v33 = vadd.f32 %v1085_v27, %v1077_v24 }
 0xdf3   :  { %5754 = vtanh.f32 %v6725_v33 }
 0xdfe   :  { %v5753_v34 = vpop.eup %5752 }
 0xdff   :  { %1090 = vrot.lane.b32.xlu0 %v5753_v34, %s6114_s0 }
 0xe00   :  { %v5755_v35 = vpop.eup %5754 }
 0xe01   :  { %1096 = vrot.lane.b32.xlu1 %v5755_v35, %s6114_s0 }
 0xe71   :  { %v1091_v36 = vpop.permute.xlu0 %1090 }
 0xe72   :  { %v1093_v31 = vmul.f32 %v5749_v8, %v1091_v36 }
 0xe73   :  { %v1097_v32 = vpop.permute.xlu1 %1096 }
 0xe74   :  { %1101 = vrot.lane.b32.xlu0 %v1093_v31, %s6115_s10  ;;  %v1099_v56 = vmul.f32 %v5751_v53, %v1097_v32 }
 0xe76   :  { %1106 = vrot.lane.b32.xlu1 %v1099_v56, %s6116_s29 }
 0xee6   :  { %v1102_v41 = vpop.permute.xlu0 %1101 }
 0xee7   :  { %1104 = vst.msk [vmem:[#allocation2 + $0x20] sm:$0xff] %vm554_vm2, %v1102_v41 }
 0xee8   :  { %v1107_v42 = vpop.permute.xlu1 %1106 }
 0xee9   :  { %1109 = vst.msk [vmem:[#allocation2 + $0x18] sm:$0xff] %vm560_vm3, %v1107_v42  ;;  %v1110_v52 = vsel %vm554_vm2, %v1102_v41, %v1107_v42 }
 0xeea   :  { %5325 = vmatmul.mubr.msk.f32.vlgmr.msra.gmra.mxu1 %vm423_vm4, %v1110_v52 }
 0xeeb   :  { %1405 = vmatpush1.msra.mxu1 %v6098_v43  ;;  %1452 = vmatprep.mubr.f32.mxu1 %v6113_v7 }
 0xeec   :  { %1406 = vmatprep.subr.mxu1 %v6099_v21 }
 0xeed   :  { %1407 = vmatpush1.msra.mxu1 %v6100_v46 }
 0xeee   :  { %1408 = vmatprep.subr.mxu1 %v6101_v15 }
 0xeef   :  { %1409 = vmatpush1.msra.mxu1 %v6102_v12 }
 0xef0   :  { %1410 = vmatprep.subr.mxu1 %v6103_v45 }
 0xef1   :  { %1411 = vmatpush1.msra.mxu1 %v6104_v40 }
 0xef2   :  { %1412 = vmatprep.subr.mxu1 %v6105_v47 }
 0xef3   :  { %1413 = vmatpush1.msra.mxu1 %v6106_v20 }
 0xef4   :  { %1414 = vmatprep.subr.mxu1 %v6107_v54 }
 0xef5   :  { %1415 = vmatpush1.msra.mxu1 %v6108_v29 }
 0xef6   :  { %1416 = vmatprep.subr.mxu1 %v6109_v38 }
 0xef7   :  { %1417 = vmatpush1.msra.mxu1 %v6110_v39 }
 0xef8   :  { %1418 = vmatprep.subr.mxu1 %v6111_v51 }
 0xef9   :  { %1419 = vmatpush1.msra.mxu1 %v6112_v6 }
 0xfaa   :  { %v1180_v18 = vpop.f32.mrf.mxu1 }
 0xfab   :  { %v1187_v5 = vadd.f32 %v1180_v18, %v6554_v11 }
 0xfac   :  { %v1182_v16 = vpop.f32.mrf.mxu1 }
 0xfad   :  { %5756 = vtanh.f32 %v1187_v5  ;;  %v1188_v19 = vadd.f32 %v1182_v16, %v6543_v50  ;;  %v5326_v58 = vmul.f32 -1.442695, %v1187_v5 }
 0xfaf   :  { %5758 = vtanh.f32 %v1188_v19  ;;  %v5327_v59 = vmul.f32 -1.442695, %v1188_v19 }
 0xfb0   :  { %5760 = vpow2.f32 %v5326_v58 }
 0xfb1   :  { %5762 = vpow2.f32 %v5327_v59 }
 0xfba   :  { %v5757_v28 = vpop.eup %5756 }
 0xfbb   :  { %1205 = vrot.lane.b32.xlu0 %v5757_v28, %s6114_s0 }
 0xfbc   :  { %v5759_v57 = vpop.eup %5758 }
 0xfbd   :  { %1216 = vrot.lane.b32.xlu1 %v5759_v57, %s6114_s0  ;;  %v5761_v60 = vpop.eup %5760 }
 0xfbe   :  { %v5763_v61 = vpop.eup %5762  ;;  %v1195_v62 = vadd.f32 1.0, %v5761_v60 }
 0xfbf   :  { %v1196_v63 = vadd.f32 1.0, %v5763_v61 }
 0xfc0   :  { %5764 = vrcp.f32 %v1195_v62 }
 0xfc1   :  { %5766 = vrcp.f32 %v1196_v63 }
 0xfcd   :  { %v5765_v11 = vpop.eup %5764 }
 0xfce   :  { %v5767_v1 = vpop.eup %5766  ;;  %v1203_v4 = vmul.f32 %v5765_v11, %v6721_v23 }
 0xfcf   :  { %v1214_v10 = vmul.f32 %v5767_v1, %v6725_v33 }
0x102d   :  { %v1206_v0 = vpop.permute.xlu0 %1205 }
0x102e   :  { %v1208_v50 = vmul.f32 %v5765_v11, %v1206_v0 }
0x102f   :  { %v1217_v2 = vpop.permute.xlu1 %1216 }
0x1030   :  { %1210 = vrot.lane.b32.xlu0 %v1208_v50, %s6114_s0  ;;  %v1219_v3 = vmul.f32 %v5767_v1, %v1217_v2 }
0x1032   :  { %1221 = vrot.lane.b32.xlu1 %v1219_v3, %s6114_s0 }
0x10a2   :  { %v1211_v8 = vpop.permute.xlu0 %1210 }
0x10a3   :  { %v1213_v9 = vadd.f32 %v1211_v8, %v1203_v4 }
0x10a4   :  { %v1222_v53 = vpop.permute.xlu1 %1221 }
0x10a5   :  { %5768 = vtanh.f32 %v1213_v9  ;;  %v1224_v55 = vadd.f32 %v1222_v53, %v1214_v10 }
0x10a7   :  { %5770 = vtanh.f32 %v1224_v55 }
0x10b2   :  { %v5769_v13 = vpop.eup %5768 }
0x10b3   :  { %1227 = vrot.lane.b32.xlu0 %v5769_v13, %s6114_s0 }
0x10b4   :  { %v5771_v22 = vpop.eup %5770 }
0x10b5   :  { %1233 = vrot.lane.b32.xlu1 %v5771_v22, %s6114_s0 }
0x1125   :  { %v1228_v48 = vpop.permute.xlu0 %1227 }
0x1126   :  { %v1230_v24 = vmul.f32 %v5765_v11, %v1228_v48 }
0x1127   :  { %v1234_v27 = vpop.permute.xlu1 %1233 }
0x1128   :  { %1238 = vrot.lane.b32.xlu0 %v1230_v24, %s6115_s10  ;;  %v1236_v23 = vmul.f32 %v5767_v1, %v1234_v27 }
0x112a   :  { %1243 = vrot.lane.b32.xlu1 %v1236_v23, %s6116_s29 }
0x119a   :  { %v1239_v34 = vpop.permute.xlu0 %1238 }
0x119b   :  { %1241 = vst.msk [vmem:[#allocation2 + $0x28] sm:$0xff] %vm554_vm2, %v1239_v34 }
0x119c   :  { %v1244_v33 = vpop.permute.xlu1 %1243 }
0x119d   :  { %1246 = vst.msk [vmem:[#allocation2 + $0x10] sm:$0xff] %vm560_vm3, %v1244_v33  ;;  %v1247_v35 = vsel %vm554_vm2, %v1239_v34, %v1244_v33  ;;  %v1544_v33 = vld [vmem:[%s8205_s5 + $0x78] sm:$0xff] }
0x119e   :  { %5328 = vmatmul.mubr.msk.f32.vlgmr.msra.gmra.mxu0 %vm423_vm4, %v1247_v35  ;;  %v1543_v35 = vld [vmem:[%s8205_s5 + $0x70] sm:$0xff]  ;;  %1597 = vmatprep.subr.mxu0 %v1544_v33 }
0x119f   :  { %1645 = vmatprep.mubr.f32.mxu0 %v6113_v7  ;;  %1598 = vmatpush1.msra.mxu0 %v1543_v35 }
0x125e   :  { %v1317_v36 = vpop.f32.mrf.mxu0 }
0x125f   :  { %v1324_v31 = vadd.f32 %v1317_v36, %v6558_v14  ;;  %v1542_v36 = vld [vmem:[%s8205_s5 + $0x68] sm:$0xff] }
0x1260   :  { %v1319_v32 = vpop.f32.mrf.mxu0  ;;  %1599 = vmatprep.subr.mxu0 %v1542_v36 }
0x1261   :  { %5772 = vtanh.f32 %v1324_v31  ;;  %v1325_v56 = vadd.f32 %v1319_v32, %v6539_v44  ;;  %v5329_v52 = vmul.f32 -1.442695, %v1324_v31  ;;  %v6840_v31 = vld [vmem:[%s8206_s7 + $0x78] sm:$0xff]  ;;  %v1541_v32 = vld [vmem:[%s8205_s5 + $0x60] sm:$0xff] }
0x1262   :  { %1742 = vmatprep.subr.mxu1 %v6840_v31  ;;  %1600 = vmatpush1.msra.mxu0 %v1541_v32 }
0x1263   :  { %5774 = vtanh.f32 %v1325_v56  ;;  %v5330_v43 = vmul.f32 -1.442695, %v1325_v56  ;;  %v6848_v56 = vld [vmem:[%s8206_s7 + $0x70] sm:$0xff] }
0x1264   :  { %5776 = vpow2.f32 %v5329_v52  ;;  %v1539_v52 = vld [vmem:[%s8205_s5 + $0x50] sm:$0xff] }
0x1265   :  { %5778 = vpow2.f32 %v5330_v43  ;;  %v6866_v43 = vld [vmem:[%s8206_s7 + $0x60] sm:$0xff] }
0x126e   :  { %v5773_v41 = vpop.eup %5772 }
0x126f   :  { %1342 = vrot.lane.b32.xlu0 %v5773_v41, %s6114_s0  ;;  %v1540_v41 = vld [vmem:[%s8205_s5 + $0x58] sm:$0xff] }
0x1270   :  { %v5775_v42 = vpop.eup %5774  ;;  %1601 = vmatprep.subr.mxu0 %v1540_v41 }
0x1271   :  { %1353 = vrot.lane.b32.xlu1 %v5775_v42, %s6114_s0  ;;  %v5777_v21 = vpop.eup %5776  ;;  %v6857_v42 = vld [vmem:[%s8206_s7 + $0x68] sm:$0xff]  ;;  %1602 = vmatpush1.msra.mxu0 %v1539_v52 }
0x1272   :  { %v5779_v46 = vpop.eup %5778  ;;  %v1332_v15 = vadd.f32 1.0, %v5777_v21 }
0x1273   :  { %v1333_v12 = vadd.f32 1.0, %v5779_v46 }
0x1274   :  { %5780 = vrcp.f32 %v1332_v15  ;;  %v1538_v15 = vld [vmem:[%s8205_s5 + $0x48] sm:$0xff] }
0x1275   :  { %5782 = vrcp.f32 %v1333_v12  ;;  %v6878_v12 = vld [vmem:[%s8206_s7 + $0x58] sm:$0xff]  ;;  %1603 = vmatprep.subr.mxu0 %v1538_v15 }
0x1281   :  { %v5781_v14 = vpop.eup %5780 }
0x1282   :  { %v5783_v40 = vpop.eup %5782  ;;  %v1340_v54 = vmul.f32 %v5781_v14, %v1213_v9 }
0x1283   :  { %v1351_v39 = vmul.f32 %v5783_v40, %v1224_v55 }
0x12e1   :  { %v1343_v45 = vpop.permute.xlu0 %1342 }
0x12e2   :  { %v1345_v44 = vmul.f32 %v5781_v14, %v1343_v45  ;;  %v6887_v45 = vld [vmem:[%s8206_s7 + $0x50] sm:$0xff] }
0x12e3   :  { %v1354_v47 = vpop.permute.xlu1 %1353 }
0x12e4   :  { %1347 = vrot.lane.b32.xlu0 %v1345_v44, %s6114_s0  ;;  %v1356_v20 = vmul.f32 %v5783_v40, %v1354_v47  ;;  %v1536_v44 = vld [vmem:[%s8205_s5 + $0x38] sm:$0xff]  ;;  %v1535_v47 = vld [vmem:[%s8205_s5 + $0x30] sm:$0xff] }
0x12e6   :  { %1358 = vrot.lane.b32.xlu1 %v1356_v20, %s6114_s0  ;;  %v6905_v20 = vld [vmem:[%s8206_s7 + $0x40] sm:$0xff] }
0x1356   :  { %v1348_v29 = vpop.permute.xlu0 %1347 }
0x1357   :  { %v1350_v38 = vadd.f32 %v1348_v29, %v1340_v54  ;;  %v1534_v54 = vld [vmem:[%s8205_s5 + $0x28] sm:$0xff]  ;;  %v6914_v29 = vld [vmem:[%s8206_s7 + $0x38] sm:$0xff] }
0x1358   :  { %v1359_v51 = vpop.permute.xlu1 %1358 }
0x1359   :  { %5784 = vtanh.f32 %v1350_v38  ;;  %v1361_v6 = vadd.f32 %v1359_v51, %v1351_v39  ;;  %v6922_v39 = vld [vmem:[%s8206_s7 + $0x30] sm:$0xff]  ;;  %v1532_v51 = vld [vmem:[%s8205_s5 + $0x18] sm:$0xff] }
0x135b   :  { %5786 = vtanh.f32 %v1361_v6 }
0x1366   :  { %v5785_v18 = vpop.eup %5784 }
0x1367   :  { %1364 = vrot.lane.b32.xlu0 %v5785_v18, %s6114_s0  ;;  %v1531_v18 = vld [vmem:[%s8205_s5 + $0x10] sm:$0xff] }
0x1368   :  { %v5787_v5 = vpop.eup %5786 }
0x1369   :  { %1370 = vrot.lane.b32.xlu1 %v5787_v5, %s6114_s0  ;;  %v6940_v5 = vld [vmem:[%s8206_s7 + $0x20] sm:$0xff] }
0x13d9   :  { %v1365_v16 = vpop.permute.xlu0 %1364 }
0x13da   :  { %v1367_v19 = vmul.f32 %v5781_v14, %v1365_v16  ;;  %v1537_v14 = vld [vmem:[%s8205_s5 + $0x40] sm:$0xff]  ;;  %v1530_v16 = vld [vmem:[%s8205_s5 + $0x8] sm:$0xff] }
0x13db   :  { %v1371_v28 = vpop.permute.xlu1 %1370  ;;  %1604 = vmatpush1.msra.mxu0 %v1537_v14 }
0x13dc   :  { %1375 = vrot.lane.b32.xlu0 %v1367_v19, %s6115_s10  ;;  %v1373_v57 = vmul.f32 %v5783_v40, %v1371_v28  ;;  %v6896_v40 = vld [vmem:[%s8206_s7 + $0x48] sm:$0xff]  ;;  %1605 = vmatprep.subr.mxu0 %v1536_v44  ;;  %v6948_v19 = vld [vmem:[%s8206_s7 + $0x18] sm:$0xff]  ;;  %v1529_v28 = vld [vmem:[%s8205_s5] sm:$0xff] }
0x13dd   :  { %1606 = vmatpush1.msra.mxu0 %v1535_v47 }
0x13de   :  { %1380 = vrot.lane.b32.xlu1 %v1373_v57, %s6116_s29  ;;  %1607 = vmatprep.subr.mxu0 %v1534_v54  ;;  %v6957_v57 = vld [vmem:[%s8206_s7 + $0x10] sm:$0xff] }
0x144e   :  { %v1376_v58 = vpop.permute.xlu0 %1375 }
0x144f   :  { %1378 = vst.msk [vmem:[#allocation2 + $0x30] sm:$0xff] %vm554_vm2, %v1376_v58 }
0x1450   :  { %v1381_v59 = vpop.permute.xlu1 %1380 }
0x1451   :  { %1383 = vst.msk [vmem:[#allocation2 + $0x8] sm:$0xff] %vm560_vm3, %v1381_v59  ;;  %v1384_v60 = vsel %vm554_vm2, %v1376_v58, %v1381_v59  ;;  %v6965_v59 = vld [vmem:[%s8206_s7 + $0x8] sm:$0xff] }
0x1452   :  { %5331 = vmatmul.mubr.msk.f32.vlgmr.msra.gmra.mxu1 %vm423_vm4, %v1384_v60 }
0x1453   :  { %1790 = vmatprep.mubr.f32.mxu1 %v6113_v7  ;;  %1743 = vmatpush1.msra.mxu1 %v6848_v56 }
0x1454   :  { %1744 = vmatprep.subr.mxu1 %v6857_v42 }
0x1455   :  { %1745 = vmatpush1.msra.mxu1 %v6866_v43 }
0x1456   :  { %1746 = vmatprep.subr.mxu1 %v6878_v12 }
0x1457   :  { %1747 = vmatpush1.msra.mxu1 %v6887_v45 }
0x1458   :  { %1748 = vmatprep.subr.mxu1 %v6896_v40 }
0x1459   :  { %1749 = vmatpush1.msra.mxu1 %v6905_v20 }
0x145a   :  { %1750 = vmatprep.subr.mxu1 %v6914_v29 }
0x145b   :  { %1751 = vmatpush1.msra.mxu1 %v6922_v39 }
0x1512   :  { %v1454_v61 = vpop.f32.mrf.mxu1 }
0x1513   :  { %v1461_v62 = vadd.f32 %v1454_v61, %v6562_v17  ;;  %v6972_v61 = vld [vmem:[%s8206_s7] sm:$0xff] }
0x1514   :  { %v1456_v63 = vpop.f32.mrf.mxu1 }
0x1515   :  { %5788 = vtanh.f32 %v1461_v62  ;;  %v1462_v11 = vadd.f32 %v1456_v63, %v6535_v37  ;;  %v5332_v1 = vmul.f32 -1.442695, %v1461_v62 }
0x1517   :  { %5790 = vtanh.f32 %v1462_v11  ;;  %v5333_v2 = vmul.f32 -1.442695, %v1462_v11 }
0x1518   :  { %5792 = vpow2.f32 %v5332_v1  ;;  %v1522_v1 = vld [vmem:[#allocation2 + $0x8] sm:$0xff] }
0x1519   :  { %5794 = vpow2.f32 %v5333_v2  ;;  %v1523_v2 = vld [vmem:[#allocation2 + $0x10] sm:$0xff] }
0x1522   :  { %v5789_v0 = vpop.eup %5788 }
0x1523   :  { %1479 = vrot.lane.b32.xlu1 %v5789_v0, %s6114_s0 }
0x1524   :  { %v5791_v50 = vpop.eup %5790 }
0x1525   :  { %1490 = vrot.lane.b32.xlu0 %v5791_v50, %s6114_s0  ;;  %v5793_v3 = vpop.eup %5792 }
0x1526   :  { %v5795_v4 = vpop.eup %5794  ;;  %v1469_v8 = vadd.f32 1.0, %v5793_v3  ;;  %v1524_v3 = vld [vmem:[#allocation2 + $0x18] sm:$0xff] }
0x1527   :  { %v1470_v9 = vadd.f32 1.0, %v5795_v4  ;;  %v1525_v4 = vld [vmem:[#allocation2 + $0x20] sm:$0xff] }
0x1528   :  { %5796 = vrcp.f32 %v1469_v8  ;;  %v1526_v8 = vld [vmem:[#allocation2 + $0x28] sm:$0xff] }
0x1529   :  { %5798 = vrcp.f32 %v1470_v9  ;;  %v1527_v9 = vld [vmem:[#allocation2 + $0x30] sm:$0xff] }
0x1535   :  { %v6818_v17 = vpop.eup %5796 }
0x1536   :  { %v6821_v53 = vpop.eup %5798  ;;  %v1477_v22 = vmul.f32 %v6818_v17, %v1350_v38  ;;  %v1533_v38 = vld [vmem:[%s8205_s5 + $0x20] sm:$0xff] }
0x1537   :  { %v1488_v27 = vmul.f32 %v6821_v53, %v1361_v6  ;;  %v6931_v6 = vld [vmem:[%s8206_s7 + $0x28] sm:$0xff]  ;;  %1608 = vmatpush1.msra.mxu0 %v1533_v38  ;;  %s8209_s7 = sld [smem:[#allocation16_spill]] }
0x1538   :  { %1609 = vmatprep.subr.mxu0 %v1532_v51  ;;  %1752 = vmatprep.subr.mxu1 %v6931_v6 }
0x1539   :  { %1610 = vmatpush1.msra.mxu0 %v1531_v18  ;;  %1753 = vmatpush1.msra.mxu1 %v6940_v5 }
0x153a   :  { %1611 = vmatprep.subr.mxu0 %v1530_v16  ;;  %1754 = vmatprep.subr.mxu1 %v6948_v19 }
0x153b   :  { %1612 = vmatpush1.msra.mxu0 %v1529_v28  ;;  %1755 = vmatpush1.msra.mxu1 %v6957_v57 }
0x153c   :  { %1756 = vmatprep.subr.mxu1 %v6965_v59  ;;  %2016 = vmatprep.subr.mxu0 %v6840_v31 }
0x153d   :  { %1757 = vmatpush1.msra.mxu1 %v6972_v61 }
0x153e   :  { %1791 = vmatmul.mubr.f32.vlgmr.msra.gmra.mxu1 %v6113_v7  ;;  %1879 = vmatprep.subr.mxu1 %v6840_v31 }
0x153f   :  { %1927 = vmatprep.mubr.f32.mxu1 %v6113_v7  ;;  %1880 = vmatpush1.msra.mxu1 %v6848_v56 }
0x1540   :  { %1881 = vmatprep.subr.mxu1 %v6857_v42 }
0x1541   :  { %1882 = vmatpush1.msra.mxu1 %v6866_v43 }
0x1542   :  { %1883 = vmatprep.subr.mxu1 %v6878_v12 }
0x1543   :  { %1884 = vmatpush1.msra.mxu1 %v6887_v45 }
0x1544   :  { %1885 = vmatprep.subr.mxu1 %v6896_v40 }
0x1545   :  { %1886 = vmatpush1.msra.mxu1 %v6905_v20 }
0x1546   :  { %1887 = vmatprep.subr.mxu1 %v6914_v29 }
0x1547   :  { %1888 = vmatpush1.msra.mxu1 %v6922_v39 }
0x1548   :  { %1889 = vmatprep.subr.mxu1 %v6931_v6 }
0x1549   :  { %1890 = vmatpush1.msra.mxu1 %v6940_v5 }
0x154a   :  { %1891 = vmatprep.subr.mxu1 %v6948_v19 }
0x154b   :  { %1892 = vmatpush1.msra.mxu1 %v6957_v57 }
0x154c   :  { %1893 = vmatprep.subr.mxu1 %v6965_v59 }
0x154d   :  { %1894 = vmatpush1.msra.mxu1 %v6972_v61 }
0x154e   :  { %2153 = vmatprep.subr.mxu1 %v6840_v31 }
0x1595   :  { %v1480_v37 = vpop.permute.xlu1 %1479 }
0x1596   :  { %v1482_v10 = vmul.f32 %v6818_v17, %v1480_v37  ;;  %v1545_v37 = vld [vmem:[%s8207_s6] sm:$0x3] }
0x1597   :  { %v1491_v55 = vpop.permute.xlu0 %1490 }
0x1598   :  { %1484 = vrot.lane.b32.xlu1 %v1482_v10, %s6114_s0  ;;  %v1493_v13 = vmul.f32 %v6821_v53, %v1491_v55  ;;  %v1550_v10 = vrot.slane %v1545_v37, %v6525_v26 }
0x159a   :  { %1495 = vrot.lane.b32.xlu0 %v1493_v13, %s6114_s0 }
0x15fe   :  { %v1792_v13 = vpop.f32.mrf.mxu1 }
0x160a   :  { %v1485_v48 = vpop.permute.xlu1 %1484 }
0x160b   :  { %v1487_v24 = vadd.f32 %v1485_v48, %v1477_v22 }
0x160c   :  { %v1496_v23 = vpop.permute.xlu0 %1495 }
0x160d   :  { %5800 = vtanh.f32 %v1487_v24  ;;  %v1498_v34 = vadd.f32 %v1496_v23, %v1488_v27 }
0x160f   :  { %5802 = vtanh.f32 %v1498_v34 }
0x161a   :  { %v5801_v21 = vpop.eup %5800 }
0x161b   :  { %1501 = vrot.lane.b32.xlu1 %v5801_v21, %s6114_s0 }
0x161c   :  { %v5803_v46 = vpop.eup %5802 }
0x161d   :  { %1507 = vrot.lane.b32.xlu0 %v5803_v46, %s6114_s0 }
0x168d   :  { %v1502_v58 = vpop.permute.xlu1 %1501 }
0x168e   :  { %v1504_v60 = vmul.f32 %v6818_v17, %v1502_v58 }
0x168f   :  { %v1508_v62 = vpop.permute.xlu0 %1507 }
0x1690   :  { %1512 = vrot.lane.b32.xlu1 %v1504_v60, %s6115_s10  ;;  %v1510_v63 = vmul.f32 %v6821_v53, %v1508_v62  ;;  %v1554_v53 = vrot.slane %v1545_v37, %v6531_v30 }
0x1692   :  { %1517 = vrot.lane.b32.xlu0 %v1510_v63, %s6116_s29 }
0x1702   :  { %v1513_v11 = vpop.permute.xlu1 %1512 }
0x1703   :  { %1515 = vst.msk [vmem:[#allocation2 + $0x38] sm:$0xff] %vm554_vm2, %v1513_v11 }
0x1704   :  { %v1518_v0 = vpop.permute.xlu0 %1517 }
0x1705   :  { %1520 = vst.msk [vmem:[#allocation2] sm:$0xff] %vm560_vm3, %v1518_v0 }
0x170a   :  { %v1528_v17 = vld [vmem:[#allocation2 + $0x38] sm:$0xff] }
0x170c   :  { %v1521_v50 = vld [vmem:[#allocation2] sm:$0xff] }
0x170d   :  { %5334 = vmatmul.mubr.msk.f32.vlgmr.msra.gmra.mxu0 %vm423_vm4, %v1521_v50 }
0x170e   :  { %1651 = vmatprep.mubr.f32.mxu0 %v6113_v7  ;;  %2017 = vmatpush1.msra.mxu0 %v6848_v56 }
0x170f   :  { %2018 = vmatprep.subr.mxu0 %v6857_v42 }
0x1710   :  { %2019 = vmatpush1.msra.mxu0 %v6866_v43 }
0x1711   :  { %5335 = vmatmul.mubr.msk.f32.gmra.mxu0 %vm423_vm4, %v1522_v1  ;;  %2020 = vmatprep.subr.mxu0 %v6878_v12 }
0x1712   :  { %1657 = vmatprep.mubr.f32.mxu0 %v6113_v7  ;;  %2021 = vmatpush1.msra.mxu0 %v6887_v45 }
0x1713   :  { %2022 = vmatprep.subr.mxu0 %v6896_v40 }
0x1714   :  { %2023 = vmatpush1.msra.mxu0 %v6905_v20 }
0x1715   :  { %5336 = vmatmul.mubr.msk.f32.gmra.mxu0 %vm423_vm4, %v1523_v2  ;;  %2024 = vmatprep.subr.mxu0 %v6914_v29 }
0x1716   :  { %1663 = vmatprep.mubr.f32.mxu0 %v6113_v7  ;;  %2025 = vmatpush1.msra.mxu0 %v6922_v39 }
0x1717   :  { %2026 = vmatprep.subr.mxu0 %v6931_v6 }
0x1718   :  { %2027 = vmatpush1.msra.mxu0 %v6940_v5 }
0x1719   :  { %5337 = vmatmul.mubr.msk.f32.gmra.mxu0 %vm423_vm4, %v1524_v3  ;;  %2028 = vmatprep.subr.mxu0 %v6948_v19  ;;  %v1794_v3 = vpop.f32.mrf.mxu1 }
0x171a   :  { %1669 = vmatprep.mubr.f32.mxu0 %v6113_v7  ;;  %2029 = vmatpush1.msra.mxu0 %v6957_v57 }
0x171b   :  { %2030 = vmatprep.subr.mxu0 %v6965_v59 }
0x171c   :  { %2031 = vmatpush1.msra.mxu0 %v6972_v61 }
0x171d   :  { %5338 = vmatmul.mubr.msk.f32.gmra.mxu0 %vm423_vm4, %v1525_v4  ;;  %2290 = vmatprep.subr.mxu0 %v6840_v31 }
0x171e   :  { %1675 = vmatprep.mubr.f32.mxu0 %v6113_v7 }
0x1721   :  { %5339 = vmatmul.mubr.msk.f32.gmra.mxu0 %vm423_vm4, %v1526_v8 }
0x1722   :  { %1681 = vmatprep.mubr.f32.mxu0 %v6113_v7 }
0x1725   :  { %5340 = vmatmul.mubr.msk.f32.gmra.mxu0 %vm423_vm4, %v1527_v9 }
0x1726   :  { %1687 = vmatprep.mubr.f32.mxu0 %v6113_v7 }
0x1729   :  { %5341 = vmatmul.mubr.msk.f32.gmra.mxu0 %vm423_vm4, %v1528_v17 }
0x172a   :  { %2064 = vmatprep.mubr.f32.mxu0 %v6113_v7 }
0x17cd   :  { %v1647_v55 = vpop.f32.mrf.mxu0 }
0x17ce   :  { %v1648_v22 = vadd.f32 %v1647_v55, %v1550_v10 }
0x17cf   :  { %v1649_v48 = vpop.f32.mrf.mxu0 }
0x17d0   :  { %v7037_v24 = vadd.f32 %v1649_v48, %v1554_v53  ;;  %v1799_v27 = vadd.f32 %v1792_v13, %v1648_v22 }
0x17d1   :  { %v1653_v23 = vpop.f32.mrf.mxu0 }
0x17d2   :  { %5804 = vtanh.f32 %v1799_v27  ;;  %v7039_v34 = vadd.f32 %v1653_v23, %v1550_v10  ;;  %v5342_v9 = vmul.f32 -1.442695, %v1799_v27 }
0x17d3   :  { %v1655_v33 = vpop.f32.mrf.mxu0 }
0x17d4   :  { %v7041_v35 = vadd.f32 %v1655_v33, %v1554_v53 }
0x17d5   :  { %v1659_v36 = vpop.f32.mrf.mxu0 }
0x17d6   :  { %v7043_v32 = vadd.f32 %v1659_v36, %v1550_v10 }
0x17d7   :  { %v1661_v41 = vpop.f32.mrf.mxu0 }
0x17d8   :  { %v7045_v52 = vadd.f32 %v1661_v41, %v1554_v53 }
0x17d9   :  { %v1665_v21 = vpop.f32.mrf.mxu0 }
0x17da   :  { %v7047_v46 = vadd.f32 %v1665_v21, %v1550_v10 }
0x17db   :  { %v1667_v15 = vpop.f32.mrf.mxu0 }
0x17dc   :  { %v7049_v14 = vadd.f32 %v1667_v15, %v1554_v53 }
0x17dd   :  { %v1671_v44 = vpop.f32.mrf.mxu0 }
0x17de   :  { %v7051_v47 = vadd.f32 %v1671_v44, %v1550_v10 }
0x17df   :  { %v5805_v54 = vpop.eup %5804  ;;  %v1673_v38 = vpop.f32.mrf.mxu0 }
0x17e0   :  { %v7053_v51 = vadd.f32 %v1673_v38, %v1554_v53  ;;  %1817 = vrot.lane.b32.xlu0 %v5805_v54, %s6114_s0 }
0x17e1   :  { %v1677_v18 = vpop.f32.mrf.mxu0 }
0x17e2   :  { %v7056_v16 = vadd.f32 %v1677_v18, %v1550_v10 }
0x17e3   :  { %v1679_v28 = vpop.f32.mrf.mxu0 }
0x17e4   :  { %v7058_v58 = vadd.f32 %v1679_v28, %v1554_v53 }
0x17e5   :  { %v1683_v60 = vpop.f32.mrf.mxu0 }
0x17e6   :  { %v7060_v62 = vadd.f32 %v1683_v60, %v1550_v10 }
0x17e7   :  { %v1685_v63 = vpop.f32.mrf.mxu0 }
0x17e8   :  { %v7062_v11 = vadd.f32 %v1685_v63, %v1554_v53 }
0x17e9   :  { %v1689_v0 = vpop.f32.mrf.mxu0 }
0x17ea   :  { %v7064_v50 = vadd.f32 %v1689_v0, %v1550_v10 }
0x17eb   :  { %v1691_v1 = vpop.f32.mrf.mxu0 }
0x17ec   :  { %v1692_v2 = vadd.f32 %v1691_v1, %v1554_v53 }
0x17ee   :  { %v1800_v4 = vadd.f32 %v1794_v3, %v1692_v2 }
0x17f0   :  { %5806 = vtanh.f32 %v1800_v4  ;;  %v5343_v55 = vmul.f32 -1.442695, %v1800_v4 }
0x17f1   :  { %5808 = vpow2.f32 %v5342_v9 }
0x17fd   :  { %v5807_v8 = vpop.eup %5806 }
0x17fe   :  { %1828 = vrot.lane.b32.xlu1 %v5807_v8, %s6114_s0  ;;  %v5809_v17 = vpop.eup %5808 }
0x17ff   :  { %v1807_v37 = vadd.f32 1.0, %v5809_v17 }
0x1801   :  { %5810 = vrcp.f32 %v1807_v37 }
0x1802   :  { %5812 = vpow2.f32 %v5343_v55 }
0x180e   :  { %v5811_v13 = vpop.eup %5810 }
0x180f   :  { %v5813_v10 = vpop.eup %5812  ;;  %v1815_v27 = vmul.f32 0.0, %v5811_v13 }
0x1810   :  { %v1808_v53 = vadd.f32 1.0, %v5813_v10 }
0x1812   :  { %5814 = vrcp.f32 %v1808_v53 }
0x181f   :  { %v5815_v23 = vpop.eup %5814 }
0x1820   :  { %v1826_v44 = vmul.f32 0.0, %v5815_v23 }
0x1852   :  { %v1818_v22 = vpop.permute.xlu0 %1817 }
0x1853   :  { %v1820_v48 = vmul.f32 %v5811_v13, %v1818_v22 }
0x1855   :  { %1822 = vrot.lane.b32.xlu0 %v1820_v48, %s6114_s0 }
0x1870   :  { %v1829_v33 = vpop.permute.xlu1 %1828 }
0x1871   :  { %v1831_v36 = vmul.f32 %v5815_v23, %v1829_v33 }
0x1873   :  { %1833 = vrot.lane.b32.xlu1 %v1831_v36, %s6114_s0 }
0x18c7   :  { %v1823_v41 = vpop.permute.xlu0 %1822 }
0x18c8   :  { %v7069_v21 = vadd.f32 %v1823_v41, %v1815_v27 }
0x18ca   :  { %5816 = vtanh.f32 %v7069_v21 }
0x18d7   :  { %v5817_v15 = vpop.eup %5816 }
0x18d8   :  { %1839 = vrot.lane.b32.xlu0 %v5817_v15, %s6114_s0 }
0x18e5   :  { %v1834_v54 = vpop.permute.xlu1 %1833 }
0x18e6   :  { %v7073_v38 = vadd.f32 %v1834_v54, %v1826_v44 }
0x18e8   :  { %5818 = vtanh.f32 %v7073_v38 }
0x18f5   :  { %v5819_v18 = vpop.eup %5818 }
0x18f6   :  { %1845 = vrot.lane.b32.xlu1 %v5819_v18, %s6114_s0 }
0x194a   :  { %v1840_v28 = vpop.permute.xlu0 %1839 }
0x194b   :  { %v1842_v60 = vmul.f32 %v5811_v13, %v1840_v28 }
0x194d   :  { %1850 = vrot.lane.b32.xlu0 %v1842_v60, %s6115_s10 }
0x1968   :  { %v1846_v63 = vpop.permute.xlu1 %1845 }
0x1969   :  { %v1848_v0 = vmul.f32 %v5815_v23, %v1846_v63 }
0x196b   :  { %1855 = vrot.lane.b32.xlu1 %v1848_v0, %s6116_s29 }
0x19bf   :  { %v1851_v1 = vpop.permute.xlu0 %1850 }
0x19c0   :  { %1853 = vst.msk [vmem:[#allocation2] sm:$0xff] %vm554_vm2, %v1851_v1 }
0x19dd   :  { %v1856_v2 = vpop.permute.xlu1 %1855 }
0x19de   :  { %1858 = vst.msk [vmem:[#allocation2 + $0x38] sm:$0xff] %vm560_vm3, %v1856_v2  ;;  %v1859_v3 = vsel %vm554_vm2, %v1851_v1, %v1856_v2 }
0x19df   :  { %5344 = vmatmul.mubr.msk.f32.vlgmr.msra.gmra.mxu1 %vm423_vm4, %v1859_v3 }
0x19e0   :  { %2154 = vmatpush1.msra.mxu1 %v6848_v56  ;;  %2201 = vmatprep.mubr.f32.mxu1 %v6113_v7 }
0x19e1   :  { %2155 = vmatprep.subr.mxu1 %v6857_v42 }
0x19e2   :  { %2156 = vmatpush1.msra.mxu1 %v6866_v43 }
0x19e3   :  { %2157 = vmatprep.subr.mxu1 %v6878_v12 }
0x19e4   :  { %2158 = vmatpush1.msra.mxu1 %v6887_v45 }
0x19e5   :  { %2159 = vmatprep.subr.mxu1 %v6896_v40 }
0x19e6   :  { %2160 = vmatpush1.msra.mxu1 %v6905_v20 }
0x19e7   :  { %2161 = vmatprep.subr.mxu1 %v6914_v29 }
0x19e8   :  { %2162 = vmatpush1.msra.mxu1 %v6922_v39 }
0x19e9   :  { %2163 = vmatprep.subr.mxu1 %v6931_v6 }
0x19ea   :  { %2164 = vmatpush1.msra.mxu1 %v6940_v5 }
0x19eb   :  { %2165 = vmatprep.subr.mxu1 %v6948_v19 }
0x19ec   :  { %2166 = vmatpush1.msra.mxu1 %v6957_v57 }
0x19ed   :  { %2167 = vmatprep.subr.mxu1 %v6965_v59 }
0x19ee   :  { %2168 = vmatpush1.msra.mxu1 %v6972_v61 }
0x19ef   :  { %2427 = vmatprep.subr.mxu1 %v6840_v31 }
0x1a9f   :  { %v1929_v4 = vpop.f32.mrf.mxu1 }
0x1aa0   :  { %v1936_v8 = vadd.f32 %v1929_v4, %v7039_v34 }
0x1aa1   :  { %v1931_v9 = vpop.f32.mrf.mxu1 }
0x1aa2   :  { %5820 = vtanh.f32 %v1936_v8  ;;  %v1937_v17 = vadd.f32 %v1931_v9, %v7062_v11  ;;  %v5345_v13 = vmul.f32 -1.442695, %v1936_v8 }
0x1aa4   :  { %5822 = vtanh.f32 %v1937_v17  ;;  %v5346_v22 = vmul.f32 -1.442695, %v1937_v17 }
0x1aa5   :  { %5824 = vpow2.f32 %v5345_v13 }
0x1aa6   :  { %5826 = vpow2.f32 %v5346_v22 }
0x1aaf   :  { %v5821_v37 = vpop.eup %5820 }
0x1ab0   :  { %1954 = vrot.lane.b32.xlu0 %v5821_v37, %s6114_s0 }
0x1ab1   :  { %v5823_v55 = vpop.eup %5822 }
0x1ab2   :  { %1965 = vrot.lane.b32.xlu1 %v5823_v55, %s6114_s0  ;;  %v5825_v48 = vpop.eup %5824 }
0x1ab3   :  { %v5827_v10 = vpop.eup %5826  ;;  %v1944_v53 = vadd.f32 1.0, %v5825_v48 }
0x1ab4   :  { %v1945_v23 = vadd.f32 1.0, %v5827_v10 }
0x1ab5   :  { %5828 = vrcp.f32 %v1944_v53 }
0x1ab6   :  { %5830 = vrcp.f32 %v1945_v23 }
0x1ac2   :  { %v5829_v34 = vpop.eup %5828 }
0x1ac3   :  { %v5831_v36 = vpop.eup %5830  ;;  %v1952_v15 = vmul.f32 %v5829_v34, %v7069_v21 }
0x1ac4   :  { %v1963_v18 = vmul.f32 %v5831_v36, %v7073_v38 }
0x1b22   :  { %v1955_v33 = vpop.permute.xlu0 %1954 }
0x1b23   :  { %v1957_v11 = vmul.f32 %v5829_v34, %v1955_v33 }
0x1b24   :  { %v1966_v27 = vpop.permute.xlu1 %1965 }
0x1b25   :  { %1959 = vrot.lane.b32.xlu0 %v1957_v11, %s6114_s0  ;;  %v1968_v41 = vmul.f32 %v5831_v36, %v1966_v27 }
0x1b27   :  { %1970 = vrot.lane.b32.xlu1 %v1968_v41, %s6114_s0 }
0x1b97   :  { %v1960_v44 = vpop.permute.xlu0 %1959 }
0x1b98   :  { %v7107_v54 = vadd.f32 %v1960_v44, %v1952_v15 }
0x1b99   :  { %v1971_v28 = vpop.permute.xlu1 %1970 }
0x1b9a   :  { %5832 = vtanh.f32 %v7107_v54  ;;  %v7111_v60 = vadd.f32 %v1971_v28, %v1963_v18 }
0x1b9c   :  { %5834 = vtanh.f32 %v7111_v60 }
0x1ba7   :  { %v5833_v63 = vpop.eup %5832 }
0x1ba8   :  { %1976 = vrot.lane.b32.xlu0 %v5833_v63, %s6114_s0 }
0x1ba9   :  { %v5835_v0 = vpop.eup %5834 }
0x1baa   :  { %1982 = vrot.lane.b32.xlu1 %v5835_v0, %s6114_s0 }
0x1c1a   :  { %v1977_v1 = vpop.permute.xlu0 %1976 }
0x1c1b   :  { %v1979_v21 = vmul.f32 %v5829_v34, %v1977_v1 }
0x1c1c   :  { %v1983_v2 = vpop.permute.xlu1 %1982 }
0x1c1d   :  { %1987 = vrot.lane.b32.xlu0 %v1979_v21, %s6115_s10  ;;  %v1985_v3 = vmul.f32 %v5831_v36, %v1983_v2 }
0x1c1f   :  { %1992 = vrot.lane.b32.xlu1 %v1985_v3, %s6116_s29 }
0x1c8f   :  { %v1988_v38 = vpop.permute.xlu0 %1987 }
0x1c90   :  { %1990 = vst.msk [vmem:[#allocation2 + $0x8] sm:$0xff] %vm554_vm2, %v1988_v38 }
0x1c91   :  { %v1993_v4 = vpop.permute.xlu1 %1992 }
0x1c92   :  { %1995 = vst.msk [vmem:[#allocation2 + $0x30] sm:$0xff] %vm560_vm3, %v1993_v4  ;;  %v1996_v8 = vsel %vm554_vm2, %v1988_v38, %v1993_v4 }
0x1c93   :  { %5347 = vmatmul.mubr.msk.f32.vlgmr.msra.gmra.mxu0 %vm423_vm4, %v1996_v8 }
0x1c94   :  { %2291 = vmatpush1.msra.mxu0 %v6848_v56  ;;  %2338 = vmatprep.mubr.f32.mxu0 %v6113_v7 }
0x1c95   :  { %2292 = vmatprep.subr.mxu0 %v6857_v42 }
0x1c96   :  { %2293 = vmatpush1.msra.mxu0 %v6866_v43 }
0x1c97   :  { %2294 = vmatprep.subr.mxu0 %v6878_v12 }
0x1c98   :  { %2295 = vmatpush1.msra.mxu0 %v6887_v45 }
0x1c99   :  { %2296 = vmatprep.subr.mxu0 %v6896_v40 }
0x1c9a   :  { %2297 = vmatpush1.msra.mxu0 %v6905_v20 }
0x1c9b   :  { %2298 = vmatprep.subr.mxu0 %v6914_v29 }
0x1c9c   :  { %2299 = vmatpush1.msra.mxu0 %v6922_v39 }
0x1c9d   :  { %2300 = vmatprep.subr.mxu0 %v6931_v6 }
0x1c9e   :  { %2301 = vmatpush1.msra.mxu0 %v6940_v5 }
0x1c9f   :  { %2302 = vmatprep.subr.mxu0 %v6948_v19 }
0x1ca0   :  { %2303 = vmatpush1.msra.mxu0 %v6957_v57 }
0x1ca1   :  { %2304 = vmatprep.subr.mxu0 %v6965_v59 }
0x1ca2   :  { %2305 = vmatpush1.msra.mxu0 %v6972_v61 }
0x1ca3   :  { %2564 = vmatprep.subr.mxu0 %v6840_v31 }
0x1d53   :  { %v2066_v9 = vpop.f32.mrf.mxu0 }
0x1d54   :  { %v2073_v17 = vadd.f32 %v2066_v9, %v7043_v32 }
0x1d55   :  { %v2068_v37 = vpop.f32.mrf.mxu0 }
0x1d56   :  { %5836 = vtanh.f32 %v2073_v17  ;;  %v2074_v55 = vadd.f32 %v2068_v37, %v7058_v58  ;;  %v5348_v48 = vmul.f32 -1.442695, %v2073_v17 }
0x1d58   :  { %5838 = vtanh.f32 %v2074_v55  ;;  %v5349_v10 = vmul.f32 -1.442695, %v2074_v55 }
0x1d59   :  { %5840 = vpow2.f32 %v5348_v48 }
0x1d5a   :  { %5842 = vpow2.f32 %v5349_v10 }
0x1d63   :  { %v5837_v13 = vpop.eup %5836 }
0x1d64   :  { %2091 = vrot.lane.b32.xlu0 %v5837_v13, %s6114_s0 }
0x1d65   :  { %v5839_v22 = vpop.eup %5838 }
0x1d66   :  { %2102 = vrot.lane.b32.xlu1 %v5839_v22, %s6114_s0  ;;  %v5841_v53 = vpop.eup %5840 }
0x1d67   :  { %v5843_v23 = vpop.eup %5842  ;;  %v2081_v34 = vadd.f32 1.0, %v5841_v53 }
0x1d68   :  { %v2082_v33 = vadd.f32 1.0, %v5843_v23 }
0x1d69   :  { %5844 = vrcp.f32 %v2081_v34 }
0x1d6a   :  { %5846 = vrcp.f32 %v2082_v33 }
0x1d76   :  { %v5845_v32 = vpop.eup %5844 }
0x1d77   :  { %v5847_v36 = vpop.eup %5846  ;;  %v2089_v15 = vmul.f32 %v5845_v32, %v7107_v54 }
0x1d78   :  { %v2100_v28 = vmul.f32 %v5847_v36, %v7111_v60 }
0x1dd6   :  { %v2092_v11 = vpop.permute.xlu0 %2091 }
0x1dd7   :  { %v2094_v58 = vmul.f32 %v5845_v32, %v2092_v11 }
0x1dd8   :  { %v2103_v27 = vpop.permute.xlu1 %2102 }
0x1dd9   :  { %2096 = vrot.lane.b32.xlu0 %v2094_v58, %s6114_s0  ;;  %v2105_v41 = vmul.f32 %v5847_v36, %v2103_v27 }
0x1ddb   :  { %2107 = vrot.lane.b32.xlu1 %v2105_v41, %s6114_s0 }
0x1e4b   :  { %v2097_v44 = vpop.permute.xlu0 %2096 }
0x1e4c   :  { %v7146_v18 = vadd.f32 %v2097_v44, %v2089_v15 }
0x1e4d   :  { %v2108_v63 = vpop.permute.xlu1 %2107 }
0x1e4e   :  { %5848 = vtanh.f32 %v7146_v18  ;;  %v7150_v0 = vadd.f32 %v2108_v63, %v2100_v28 }
0x1e50   :  { %5850 = vtanh.f32 %v7150_v0 }
0x1e5b   :  { %v5849_v1 = vpop.eup %5848 }
0x1e5c   :  { %2113 = vrot.lane.b32.xlu0 %v5849_v1, %s6114_s0 }
0x1e5d   :  { %v5851_v21 = vpop.eup %5850 }
0x1e5e   :  { %2119 = vrot.lane.b32.xlu1 %v5851_v21, %s6114_s0 }
0x1ece   :  { %v2114_v2 = vpop.permute.xlu0 %2113 }
0x1ecf   :  { %v2116_v54 = vmul.f32 %v5845_v32, %v2114_v2 }
0x1ed0   :  { %v2120_v3 = vpop.permute.xlu1 %2119 }
0x1ed1   :  { %2124 = vrot.lane.b32.xlu0 %v2116_v54, %s6115_s10  ;;  %v2122_v38 = vmul.f32 %v5847_v36, %v2120_v3 }
0x1ed3   :  { %2129 = vrot.lane.b32.xlu1 %v2122_v38, %s6116_s29 }
0x1f43   :  { %v2125_v60 = vpop.permute.xlu0 %2124 }
0x1f44   :  { %2127 = vst.msk [vmem:[#allocation2 + $0x10] sm:$0xff] %vm554_vm2, %v2125_v60 }
0x1f45   :  { %v2130_v4 = vpop.permute.xlu1 %2129 }
0x1f46   :  { %2132 = vst.msk [vmem:[#allocation2 + $0x28] sm:$0xff] %vm560_vm3, %v2130_v4  ;;  %v2133_v8 = vsel %vm554_vm2, %v2125_v60, %v2130_v4 }
0x1f47   :  { %5350 = vmatmul.mubr.msk.f32.vlgmr.msra.gmra.mxu1 %vm423_vm4, %v2133_v8 }
0x1f48   :  { %2428 = vmatpush1.msra.mxu1 %v6848_v56  ;;  %2475 = vmatprep.mubr.f32.mxu1 %v6113_v7 }
0x1f49   :  { %2429 = vmatprep.subr.mxu1 %v6857_v42 }
0x1f4a   :  { %2430 = vmatpush1.msra.mxu1 %v6866_v43 }
0x1f4b   :  { %2431 = vmatprep.subr.mxu1 %v6878_v12 }
0x1f4c   :  { %2432 = vmatpush1.msra.mxu1 %v6887_v45 }
0x1f4d   :  { %2433 = vmatprep.subr.mxu1 %v6896_v40 }
0x1f4e   :  { %2434 = vmatpush1.msra.mxu1 %v6905_v20 }
0x1f4f   :  { %2435 = vmatprep.subr.mxu1 %v6914_v29 }
0x1f50   :  { %2436 = vmatpush1.msra.mxu1 %v6922_v39 }
0x1f51   :  { %2437 = vmatprep.subr.mxu1 %v6931_v6 }
0x1f52   :  { %2438 = vmatpush1.msra.mxu1 %v6940_v5 }
0x1f53   :  { %2439 = vmatprep.subr.mxu1 %v6948_v19 }
0x1f54   :  { %2440 = vmatpush1.msra.mxu1 %v6957_v57 }
0x1f55   :  { %2441 = vmatprep.subr.mxu1 %v6965_v59 }
0x1f56   :  { %2442 = vmatpush1.msra.mxu1 %v6972_v61 }
0x1f57   :  { %2701 = vmatprep.subr.mxu1 %v6840_v31 }
0x2007   :  { %v2203_v9 = vpop.f32.mrf.mxu1 }
0x2008   :  { %v2210_v17 = vadd.f32 %v2203_v9, %v7047_v46 }
0x2009   :  { %v2205_v37 = vpop.f32.mrf.mxu1 }
0x200a   :  { %5852 = vtanh.f32 %v2210_v17  ;;  %v2211_v55 = vadd.f32 %v2205_v37, %v7053_v51  ;;  %v5351_v48 = vmul.f32 -1.442695, %v2210_v17 }
0x200c   :  { %5854 = vtanh.f32 %v2211_v55  ;;  %v5352_v10 = vmul.f32 -1.442695, %v2211_v55 }
0x200d   :  { %5856 = vpow2.f32 %v5351_v48 }
0x200e   :  { %5858 = vpow2.f32 %v5352_v10 }
0x2017   :  { %v5853_v13 = vpop.eup %5852 }
0x2018   :  { %2228 = vrot.lane.b32.xlu0 %v5853_v13, %s6114_s0 }
0x2019   :  { %v5855_v22 = vpop.eup %5854 }
0x201a   :  { %2239 = vrot.lane.b32.xlu1 %v5855_v22, %s6114_s0  ;;  %v5857_v53 = vpop.eup %5856 }
0x201b   :  { %v5859_v31 = vpop.eup %5858  ;;  %v2218_v23 = vadd.f32 1.0, %v5857_v53 }
0x201c   :  { %v2219_v34 = vadd.f32 1.0, %v5859_v31 }
0x201d   :  { %5860 = vrcp.f32 %v2218_v23 }
0x201e   :  { %5862 = vrcp.f32 %v2219_v34 }
0x202a   :  { %v5861_v46 = vpop.eup %5860 }
0x202b   :  { %v5863_v32 = vpop.eup %5862  ;;  %v2226_v36 = vmul.f32 %v5861_v46, %v7146_v18 }
0x202c   :  { %v2237_v15 = vmul.f32 %v5863_v32, %v7150_v0 }
0x208a   :  { %v2229_v33 = vpop.permute.xlu0 %2228 }
0x208b   :  { %v2231_v51 = vmul.f32 %v5861_v46, %v2229_v33 }
0x208c   :  { %v2240_v11 = vpop.permute.xlu1 %2239 }
0x208d   :  { %2233 = vrot.lane.b32.xlu0 %v2231_v51, %s6114_s0  ;;  %v2242_v58 = vmul.f32 %v5863_v32, %v2240_v11 }
0x208f   :  { %2244 = vrot.lane.b32.xlu1 %v2242_v58, %s6114_s0 }
0x20ff   :  { %v2234_v27 = vpop.permute.xlu0 %2233 }
0x2100   :  { %v7185_v41 = vadd.f32 %v2234_v27, %v2226_v36 }
0x2101   :  { %v2245_v44 = vpop.permute.xlu1 %2244 }
0x2102   :  { %5864 = vtanh.f32 %v7185_v41  ;;  %v7189_v28 = vadd.f32 %v2245_v44, %v2237_v15 }
0x2104   :  { %5866 = vtanh.f32 %v7189_v28 }
0x210f   :  { %v5865_v63 = vpop.eup %5864 }
0x2110   :  { %2250 = vrot.lane.b32.xlu0 %v5865_v63, %s6114_s0 }
0x2111   :  { %v5867_v1 = vpop.eup %5866 }
0x2112   :  { %2256 = vrot.lane.b32.xlu1 %v5867_v1, %s6114_s0 }
0x2182   :  { %v2251_v21 = vpop.permute.xlu0 %2250 }
0x2183   :  { %v2253_v18 = vmul.f32 %v5861_v46, %v2251_v21 }
0x2184   :  { %v2257_v2 = vpop.permute.xlu1 %2256 }
0x2185   :  { %2261 = vrot.lane.b32.xlu0 %v2253_v18, %s6115_s10  ;;  %v2259_v54 = vmul.f32 %v5863_v32, %v2257_v2 }
0x2187   :  { %2266 = vrot.lane.b32.xlu1 %v2259_v54, %s6116_s29 }
0x21f7   :  { %v2262_v0 = vpop.permute.xlu0 %2261 }
0x21f8   :  { %2264 = vst.msk [vmem:[#allocation2 + $0x18] sm:$0xff] %vm554_vm2, %v2262_v0 }
0x21f9   :  { %v2267_v3 = vpop.permute.xlu1 %2266 }
0x21fa   :  { %2269 = vst.msk [vmem:[#allocation2 + $0x20] sm:$0xff] %vm560_vm3, %v2267_v3  ;;  %v2270_v38 = vsel %vm554_vm2, %v2262_v0, %v2267_v3 }
0x21fb   :  { %5353 = vmatmul.mubr.msk.f32.vlgmr.msra.gmra.mxu0 %vm423_vm4, %v2270_v38 }
0x21fc   :  { %2565 = vmatpush1.msra.mxu0 %v6848_v56  ;;  %2612 = vmatprep.mubr.f32.mxu0 %v6113_v7 }
0x21fd   :  { %2566 = vmatprep.subr.mxu0 %v6857_v42 }
0x21fe   :  { %2567 = vmatpush1.msra.mxu0 %v6866_v43 }
0x21ff   :  { %2568 = vmatprep.subr.mxu0 %v6878_v12 }
0x2200   :  { %2569 = vmatpush1.msra.mxu0 %v6887_v45 }
0x2201   :  { %2570 = vmatprep.subr.mxu0 %v6896_v40 }
0x2202   :  { %2571 = vmatpush1.msra.mxu0 %v6905_v20 }
0x2203   :  { %2572 = vmatprep.subr.mxu0 %v6914_v29 }
0x2204   :  { %2573 = vmatpush1.msra.mxu0 %v6922_v39 }
0x2205   :  { %2574 = vmatprep.subr.mxu0 %v6931_v6 }
0x2206   :  { %2575 = vmatpush1.msra.mxu0 %v6940_v5 }
0x2207   :  { %2576 = vmatprep.subr.mxu0 %v6948_v19 }
0x2208   :  { %2577 = vmatpush1.msra.mxu0 %v6957_v57 }
0x2209   :  { %2578 = vmatprep.subr.mxu0 %v6965_v59 }
0x220a   :  { %2579 = vmatpush1.msra.mxu0 %v6972_v61 }
0x22bb   :  { %v2340_v60 = vpop.f32.mrf.mxu0 }
0x22bc   :  { %v2347_v4 = vadd.f32 %v2340_v60, %v7051_v47 }
0x22bd   :  { %v2342_v8 = vpop.f32.mrf.mxu0 }
0x22be   :  { %5868 = vtanh.f32 %v2347_v4  ;;  %v2348_v9 = vadd.f32 %v2342_v8, %v7049_v14  ;;  %v5354_v55 = vmul.f32 -1.442695, %v2347_v4 }
0x22c0   :  { %5870 = vtanh.f32 %v2348_v9  ;;  %v5355_v13 = vmul.f32 -1.442695, %v2348_v9 }
0x22c1   :  { %5872 = vpow2.f32 %v5354_v55 }
0x22c2   :  { %5874 = vpow2.f32 %v5355_v13 }
0x22cb   :  { %v5869_v17 = vpop.eup %5868 }
0x22cc   :  { %2365 = vrot.lane.b32.xlu0 %v5869_v17, %s6114_s0 }
0x22cd   :  { %v5871_v37 = vpop.eup %5870 }
0x22ce   :  { %2376 = vrot.lane.b32.xlu1 %v5871_v37, %s6114_s0  ;;  %v5873_v22 = vpop.eup %5872 }
0x22cf   :  { %v5875_v48 = vpop.eup %5874  ;;  %v2355_v10 = vadd.f32 1.0, %v5873_v22 }
0x22d0   :  { %v2356_v53 = vadd.f32 1.0, %v5875_v48 }
0x22d1   :  { %5876 = vrcp.f32 %v2355_v10 }
0x22d2   :  { %5878 = vrcp.f32 %v2356_v53 }
0x22de   :  { %v5877_v47 = vpop.eup %5876 }
0x22df   :  { %v5879_v23 = vpop.eup %5878  ;;  %v2363_v33 = vmul.f32 %v5877_v47, %v7185_v41 }
0x22e0   :  { %v2374_v11 = vmul.f32 %v5879_v23, %v7189_v28 }
0x233e   :  { %v2366_v31 = vpop.permute.xlu0 %2365 }
0x233f   :  { %v2368_v14 = vmul.f32 %v5877_v47, %v2366_v31 }
0x2340   :  { %v2377_v34 = vpop.permute.xlu1 %2376 }
0x2341   :  { %2370 = vrot.lane.b32.xlu0 %v2368_v14, %s6114_s0  ;;  %v2379_v46 = vmul.f32 %v5879_v23, %v2377_v34 }
0x2343   :  { %2381 = vrot.lane.b32.xlu1 %v2379_v46, %s6114_s0 }
0x23b3   :  { %v2371_v51 = vpop.permute.xlu0 %2370 }
0x23b4   :  { %v7223_v32 = vadd.f32 %v2371_v51, %v2363_v33 }
0x23b5   :  { %v2382_v58 = vpop.permute.xlu1 %2381 }
0x23b6   :  { %5880 = vtanh.f32 %v7223_v32  ;;  %v7227_v36 = vadd.f32 %v2382_v58, %v2374_v11 }
0x23b8   :  { %5882 = vtanh.f32 %v7227_v36 }
0x23c3   :  { %v5881_v27 = vpop.eup %5880 }
0x23c4   :  { %2387 = vrot.lane.b32.xlu0 %v5881_v27, %s6114_s0 }
0x23c5   :  { %v5883_v15 = vpop.eup %5882 }
0x23c6   :  { %2393 = vrot.lane.b32.xlu1 %v5883_v15, %s6114_s0 }
0x2436   :  { %v2388_v44 = vpop.permute.xlu0 %2387 }
0x2437   :  { %v2390_v41 = vmul.f32 %v5877_v47, %v2388_v44 }
0x2438   :  { %v2394_v63 = vpop.permute.xlu1 %2393 }
0x2439   :  { %2398 = vrot.lane.b32.xlu0 %v2390_v41, %s6115_s10  ;;  %v2396_v1 = vmul.f32 %v5879_v23, %v2394_v63 }
0x243b   :  { %2403 = vrot.lane.b32.xlu1 %v2396_v1, %s6116_s29 }
0x24ab   :  { %v2399_v28 = vpop.permute.xlu0 %2398 }
0x24ac   :  { %2401 = vst.msk [vmem:[#allocation2 + $0x20] sm:$0xff] %vm554_vm2, %v2399_v28 }
0x24ad   :  { %v2404_v21 = vpop.permute.xlu1 %2403 }
0x24ae   :  { %2406 = vst.msk [vmem:[#allocation2 + $0x18] sm:$0xff] %vm560_vm3, %v2404_v21  ;;  %v2407_v18 = vsel %vm554_vm2, %v2399_v28, %v2404_v21 }
0x24af   :  { %5356 = vmatmul.mubr.msk.f32.vlgmr.msra.gmra.mxu1 %vm423_vm4, %v2407_v18 }
0x24b0   :  { %2702 = vmatpush1.msra.mxu1 %v6848_v56  ;;  %2749 = vmatprep.mubr.f32.mxu1 %v6113_v7 }
0x24b1   :  { %2703 = vmatprep.subr.mxu1 %v6857_v42 }
0x24b2   :  { %2704 = vmatpush1.msra.mxu1 %v6866_v43 }
0x24b3   :  { %2705 = vmatprep.subr.mxu1 %v6878_v12 }
0x24b4   :  { %2706 = vmatpush1.msra.mxu1 %v6887_v45 }
0x24b5   :  { %2707 = vmatprep.subr.mxu1 %v6896_v40 }
0x24b6   :  { %2708 = vmatpush1.msra.mxu1 %v6905_v20 }
0x24b7   :  { %2709 = vmatprep.subr.mxu1 %v6914_v29 }
0x24b8   :  { %2710 = vmatpush1.msra.mxu1 %v6922_v39 }
0x24b9   :  { %2711 = vmatprep.subr.mxu1 %v6931_v6 }
0x24ba   :  { %2712 = vmatpush1.msra.mxu1 %v6940_v5 }
0x24bb   :  { %2713 = vmatprep.subr.mxu1 %v6948_v19 }
0x24bc   :  { %2714 = vmatpush1.msra.mxu1 %v6957_v57 }
0x24bd   :  { %2715 = vmatprep.subr.mxu1 %v6965_v59 }
0x24be   :  { %2716 = vmatpush1.msra.mxu1 %v6972_v61 }
0x256f   :  { %v2477_v56 = vpop.f32.mrf.mxu1 }
0x2570   :  { %v2484_v42 = vadd.f32 %v2477_v56, %v7056_v16 }
0x2571   :  { %v2479_v43 = vpop.f32.mrf.mxu1 }
0x2572   :  { %5884 = vtanh.f32 %v2484_v42  ;;  %v2485_v12 = vadd.f32 %v2479_v43, %v7045_v52  ;;  %v5357_v20 = vmul.f32 -1.442695, %v2484_v42 }
0x2574   :  { %5886 = vtanh.f32 %v2485_v12  ;;  %v5358_v29 = vmul.f32 -1.442695, %v2485_v12 }
0x2575   :  { %5888 = vpow2.f32 %v5357_v20 }
0x2576   :  { %5890 = vpow2.f32 %v5358_v29 }
0x257f   :  { %v5885_v45 = vpop.eup %5884 }
0x2580   :  { %2502 = vrot.lane.b32.xlu0 %v5885_v45, %s6114_s0 }
0x2581   :  { %v5887_v40 = vpop.eup %5886 }
0x2582   :  { %2513 = vrot.lane.b32.xlu1 %v5887_v40, %s6114_s0  ;;  %v5889_v39 = vpop.eup %5888 }
0x2583   :  { %v5891_v6 = vpop.eup %5890  ;;  %v2492_v5 = vadd.f32 1.0, %v5889_v39 }
0x2584   :  { %v2493_v19 = vadd.f32 1.0, %v5891_v6 }
0x2585   :  { %5892 = vrcp.f32 %v2492_v5 }
0x2586   :  { %5894 = vrcp.f32 %v2493_v19 }
0x2592   :  { %v5893_v57 = vpop.eup %5892 }
0x2593   :  { %v5895_v52 = vpop.eup %5894  ;;  %v2500_v54 = vmul.f32 %v5893_v57, %v7223_v32 }
0x2594   :  { %v2511_v38 = vmul.f32 %v5895_v52, %v7227_v36 }
0x25f2   :  { %v2503_v59 = vpop.permute.xlu0 %2502 }
0x25f3   :  { %v2505_v61 = vmul.f32 %v5893_v57, %v2503_v59 }
0x25f4   :  { %v2514_v16 = vpop.permute.xlu1 %2513 }
0x25f5   :  { %2507 = vrot.lane.b32.xlu0 %v2505_v61, %s6114_s0  ;;  %v2516_v2 = vmul.f32 %v5895_v52, %v2514_v16 }
0x25f7   :  { %2518 = vrot.lane.b32.xlu1 %v2516_v2, %s6114_s0 }
0x2667   :  { %v2508_v0 = vpop.permute.xlu0 %2507 }
0x2668   :  { %v2510_v3 = vadd.f32 %v2508_v0, %v2500_v54 }
0x2669   :  { %v2519_v60 = vpop.permute.xlu1 %2518 }
0x266a   :  { %5896 = vtanh.f32 %v2510_v3  ;;  %v2521_v4 = vadd.f32 %v2519_v60, %v2511_v38 }
0x266c   :  { %5898 = vtanh.f32 %v2521_v4 }
0x2677   :  { %v5897_v8 = vpop.eup %5896 }
0x2678   :  { %2524 = vrot.lane.b32.xlu0 %v5897_v8, %s6114_s0 }
0x2679   :  { %v5899_v9 = vpop.eup %5898 }
0x267a   :  { %2530 = vrot.lane.b32.xlu1 %v5899_v9, %s6114_s0 }
0x26ea   :  { %v2525_v17 = vpop.permute.xlu0 %2524 }
0x26eb   :  { %v2527_v37 = vmul.f32 %v5893_v57, %v2525_v17 }
0x26ec   :  { %v2531_v55 = vpop.permute.xlu1 %2530 }
0x26ed   :  { %2535 = vrot.lane.b32.xlu0 %v2527_v37, %s6115_s10  ;;  %v2533_v13 = vmul.f32 %v5895_v52, %v2531_v55 }
0x26ef   :  { %2540 = vrot.lane.b32.xlu1 %v2533_v13, %s6116_s29 }
0x275f   :  { %v2536_v22 = vpop.permute.xlu0 %2535 }
0x2760   :  { %2538 = vst.msk [vmem:[#allocation2 + $0x28] sm:$0xff] %vm554_vm2, %v2536_v22 }
0x2761   :  { %v2541_v48 = vpop.permute.xlu1 %2540 }
0x2762   :  { %2543 = vst.msk [vmem:[#allocation2 + $0x10] sm:$0xff] %vm560_vm3, %v2541_v48  ;;  %v2544_v10 = vsel %vm554_vm2, %v2536_v22, %v2541_v48  ;;  %v2841_v48 = vld [vmem:[%s8208_s4 + $0x78] sm:$0xff] }
0x2763   :  { %5359 = vmatmul.mubr.msk.f32.vlgmr.msra.gmra.mxu0 %vm423_vm4, %v2544_v10  ;;  %v2840_v10 = vld [vmem:[%s8208_s4 + $0x70] sm:$0xff]  ;;  %2894 = vmatprep.subr.mxu0 %v2841_v48 }
0x2764   :  { %2942 = vmatprep.mubr.f32.mxu0 %v6113_v7  ;;  %2895 = vmatpush1.msra.mxu0 %v2840_v10 }
0x2823   :  { %v2614_v53 = vpop.f32.mrf.mxu0 }
0x2824   :  { %v2621_v47 = vadd.f32 %v2614_v53, %v7060_v62  ;;  %v2839_v53 = vld [vmem:[%s8208_s4 + $0x68] sm:$0xff] }
0x2825   :  { %v2616_v31 = vpop.f32.mrf.mxu0  ;;  %2896 = vmatprep.subr.mxu0 %v2839_v53 }
0x2826   :  { %5900 = vtanh.f32 %v2621_v47  ;;  %v2622_v14 = vadd.f32 %v2616_v31, %v7041_v35  ;;  %v5360_v46 = vmul.f32 -1.442695, %v2621_v47  ;;  %v7312_v47 = vld [vmem:[%s8209_s7 + $0x78] sm:$0xff]  ;;  %v2838_v31 = vld [vmem:[%s8208_s4 + $0x60] sm:$0xff] }
0x2827   :  { %3039 = vmatprep.subr.mxu1 %v7312_v47  ;;  %2897 = vmatpush1.msra.mxu0 %v2838_v31 }
0x2828   :  { %5902 = vtanh.f32 %v2622_v14  ;;  %v5361_v33 = vmul.f32 -1.442695, %v2622_v14  ;;  %v7320_v14 = vld [vmem:[%s8209_s7 + $0x70] sm:$0xff] }
0x2829   :  { %5904 = vpow2.f32 %v5360_v46  ;;  %v2836_v46 = vld [vmem:[%s8208_s4 + $0x50] sm:$0xff] }
0x282a   :  { %5906 = vpow2.f32 %v5361_v33  ;;  %v7338_v33 = vld [vmem:[%s8209_s7 + $0x60] sm:$0xff] }
0x2833   :  { %v5901_v23 = vpop.eup %5900 }
0x2834   :  { %2639 = vrot.lane.b32.xlu0 %v5901_v23, %s6114_s0  ;;  %v2837_v23 = vld [vmem:[%s8208_s4 + $0x58] sm:$0xff] }
0x2835   :  { %v5903_v34 = vpop.eup %5902  ;;  %2898 = vmatprep.subr.mxu0 %v2837_v23 }
0x2836   :  { %2650 = vrot.lane.b32.xlu1 %v5903_v34, %s6114_s0  ;;  %v5905_v51 = vpop.eup %5904  ;;  %v7329_v34 = vld [vmem:[%s8209_s7 + $0x68] sm:$0xff]  ;;  %2899 = vmatpush1.msra.mxu0 %v2836_v46 }
0x2837   :  { %v5907_v32 = vpop.eup %5906  ;;  %v2629_v11 = vadd.f32 1.0, %v5905_v51 }
0x2838   :  { %v2630_v58 = vadd.f32 1.0, %v5907_v32 }
0x2839   :  { %5908 = vrcp.f32 %v2629_v11  ;;  %v2835_v11 = vld [vmem:[%s8208_s4 + $0x48] sm:$0xff] }
0x283a   :  { %5910 = vrcp.f32 %v2630_v58  ;;  %v7350_v58 = vld [vmem:[%s8209_s7 + $0x58] sm:$0xff]  ;;  %2900 = vmatprep.subr.mxu0 %v2835_v11 }
0x2846   :  { %v5909_v62 = vpop.eup %5908 }
0x2847   :  { %v5911_v27 = vpop.eup %5910  ;;  %v2637_v41 = vmul.f32 %v5909_v62, %v2510_v3 }
0x2848   :  { %v2648_v28 = vmul.f32 %v5911_v27, %v2521_v4 }
0x28a6   :  { %v2640_v36 = vpop.permute.xlu0 %2639 }
0x28a7   :  { %v2642_v35 = vmul.f32 %v5909_v62, %v2640_v36  ;;  %v7359_v36 = vld [vmem:[%s8209_s7 + $0x50] sm:$0xff] }
0x28a8   :  { %v2651_v15 = vpop.permute.xlu1 %2650 }
0x28a9   :  { %2644 = vrot.lane.b32.xlu0 %v2642_v35, %s6114_s0  ;;  %v2653_v44 = vmul.f32 %v5911_v27, %v2651_v15  ;;  %v2833_v35 = vld [vmem:[%s8208_s4 + $0x38] sm:$0xff]  ;;  %v2832_v15 = vld [vmem:[%s8208_s4 + $0x30] sm:$0xff] }
0x28ab   :  { %2655 = vrot.lane.b32.xlu1 %v2653_v44, %s6114_s0  ;;  %v7377_v44 = vld [vmem:[%s8209_s7 + $0x40] sm:$0xff] }
0x291b   :  { %v2645_v63 = vpop.permute.xlu0 %2644 }
0x291c   :  { %v2647_v1 = vadd.f32 %v2645_v63, %v2637_v41  ;;  %v2831_v41 = vld [vmem:[%s8208_s4 + $0x28] sm:$0xff]  ;;  %v7386_v63 = vld [vmem:[%s8209_s7 + $0x38] sm:$0xff] }
0x291d   :  { %v2656_v21 = vpop.permute.xlu1 %2655 }
0x291e   :  { %5912 = vtanh.f32 %v2647_v1  ;;  %v2658_v18 = vadd.f32 %v2656_v21, %v2648_v28  ;;  %v7394_v28 = vld [vmem:[%s8209_s7 + $0x30] sm:$0xff]  ;;  %v2829_v21 = vld [vmem:[%s8208_s4 + $0x18] sm:$0xff] }
0x2920   :  { %5914 = vtanh.f32 %v2658_v18 }
0x292b   :  { %v5913_v56 = vpop.eup %5912 }
0x292c   :  { %2661 = vrot.lane.b32.xlu0 %v5913_v56, %s6114_s0  ;;  %v2828_v56 = vld [vmem:[%s8208_s4 + $0x10] sm:$0xff] }
0x292d   :  { %v5915_v42 = vpop.eup %5914 }
0x292e   :  { %2667 = vrot.lane.b32.xlu1 %v5915_v42, %s6114_s0  ;;  %v7412_v42 = vld [vmem:[%s8209_s7 + $0x20] sm:$0xff] }
0x299e   :  { %v2662_v43 = vpop.permute.xlu0 %2661 }
0x299f   :  { %v2664_v12 = vmul.f32 %v5909_v62, %v2662_v43  ;;  %v2834_v62 = vld [vmem:[%s8208_s4 + $0x40] sm:$0xff]  ;;  %v2827_v43 = vld [vmem:[%s8208_s4 + $0x8] sm:$0xff] }
0x29a0   :  { %v2668_v45 = vpop.permute.xlu1 %2667  ;;  %2901 = vmatpush1.msra.mxu0 %v2834_v62 }
0x29a1   :  { %2672 = vrot.lane.b32.xlu0 %v2664_v12, %s6115_s10  ;;  %v2670_v40 = vmul.f32 %v5911_v27, %v2668_v45  ;;  %v7368_v27 = vld [vmem:[%s8209_s7 + $0x48] sm:$0xff]  ;;  %2902 = vmatprep.subr.mxu0 %v2833_v35  ;;  %v7420_v12 = vld [vmem:[%s8209_s7 + $0x18] sm:$0xff]  ;;  %v2826_v45 = vld [vmem:[%s8208_s4] sm:$0xff] }
0x29a2   :  { %2903 = vmatpush1.msra.mxu0 %v2832_v15 }
0x29a3   :  { %2677 = vrot.lane.b32.xlu1 %v2670_v40, %s6116_s29  ;;  %2904 = vmatprep.subr.mxu0 %v2831_v41  ;;  %v7429_v40 = vld [vmem:[%s8209_s7 + $0x10] sm:$0xff] }
0x2a13   :  { %v2673_v20 = vpop.permute.xlu0 %2672 }
0x2a14   :  { %2675 = vst.msk [vmem:[#allocation2 + $0x30] sm:$0xff] %vm554_vm2, %v2673_v20 }
0x2a15   :  { %v2678_v29 = vpop.permute.xlu1 %2677 }
0x2a16   :  { %2680 = vst.msk [vmem:[#allocation2 + $0x8] sm:$0xff] %vm560_vm3, %v2678_v29  ;;  %v2681_v39 = vsel %vm554_vm2, %v2673_v20, %v2678_v29  ;;  %v7437_v29 = vld [vmem:[%s8209_s7 + $0x8] sm:$0xff] }
0x2a17   :  { %5362 = vmatmul.mubr.msk.f32.vlgmr.msra.gmra.mxu1 %vm423_vm4, %v2681_v39 }
0x2a18   :  { %3087 = vmatprep.mubr.f32.mxu1 %v6113_v7  ;;  %3040 = vmatpush1.msra.mxu1 %v7320_v14 }
0x2a19   :  { %3041 = vmatprep.subr.mxu1 %v7329_v34 }
0x2a1a   :  { %3042 = vmatpush1.msra.mxu1 %v7338_v33 }
0x2a1b   :  { %3043 = vmatprep.subr.mxu1 %v7350_v58 }
0x2a1c   :  { %3044 = vmatpush1.msra.mxu1 %v7359_v36 }
0x2a1d   :  { %3045 = vmatprep.subr.mxu1 %v7368_v27 }
0x2a1e   :  { %3046 = vmatpush1.msra.mxu1 %v7377_v44 }
0x2a1f   :  { %3047 = vmatprep.subr.mxu1 %v7386_v63 }
0x2a20   :  { %3048 = vmatpush1.msra.mxu1 %v7394_v28 }
0x2ad7   :  { %v2751_v6 = vpop.f32.mrf.mxu1 }
0x2ad8   :  { %v2758_v5 = vadd.f32 %v2751_v6, %v7064_v50  ;;  %v7444_v6 = vld [vmem:[%s8209_s7] sm:$0xff] }
0x2ad9   :  { %v2753_v19 = vpop.f32.mrf.mxu1 }
0x2ada   :  { %5916 = vtanh.f32 %v2758_v5  ;;  %v2759_v57 = vadd.f32 %v2753_v19, %v7037_v24  ;;  %v5363_v52 = vmul.f32 -1.442695, %v2758_v5 }
0x2adc   :  { %5918 = vtanh.f32 %v2759_v57  ;;  %v5364_v16 = vmul.f32 -1.442695, %v2759_v57 }
0x2add   :  { %5920 = vpow2.f32 %v5363_v52  ;;  %v2819_v52 = vld [vmem:[#allocation2 + $0x8] sm:$0xff] }
0x2ade   :  { %5922 = vpow2.f32 %v5364_v16  ;;  %v2820_v16 = vld [vmem:[#allocation2 + $0x10] sm:$0xff] }
0x2ae7   :  { %v5917_v59 = vpop.eup %5916 }
0x2ae8   :  { %2776 = vrot.lane.b32.xlu1 %v5917_v59, %s6114_s0 }
0x2ae9   :  { %v5919_v61 = vpop.eup %5918 }
0x2aea   :  { %2787 = vrot.lane.b32.xlu0 %v5919_v61, %s6114_s0  ;;  %v5921_v2 = vpop.eup %5920 }
0x2aeb   :  { %v5923_v54 = vpop.eup %5922  ;;  %v2766_v0 = vadd.f32 1.0, %v5921_v2  ;;  %v2821_v2 = vld [vmem:[#allocation2 + $0x18] sm:$0xff] }
0x2aec   :  { %v2767_v3 = vadd.f32 1.0, %v5923_v54  ;;  %v2822_v54 = vld [vmem:[#allocation2 + $0x20] sm:$0xff] }
0x2aed   :  { %5924 = vrcp.f32 %v2766_v0  ;;  %v2823_v0 = vld [vmem:[#allocation2 + $0x28] sm:$0xff] }
0x2aee   :  { %5926 = vrcp.f32 %v2767_v3  ;;  %v2824_v3 = vld [vmem:[#allocation2 + $0x30] sm:$0xff] }
0x2afa   :  { %v7290_v50 = vpop.eup %5924 }
0x2afb   :  { %v7293_v60 = vpop.eup %5926  ;;  %v2774_v9 = vmul.f32 %v7290_v50, %v2647_v1  ;;  %v2830_v1 = vld [vmem:[%s8208_s4 + $0x20] sm:$0xff] }
0x2afc   :  { %v2785_v55 = vmul.f32 %v7293_v60, %v2658_v18  ;;  %v7403_v18 = vld [vmem:[%s8209_s7 + $0x28] sm:$0xff]  ;;  %2905 = vmatpush1.msra.mxu0 %v2830_v1 }
0x2afd   :  { %2906 = vmatprep.subr.mxu0 %v2829_v21  ;;  %3049 = vmatprep.subr.mxu1 %v7403_v18 }
0x2afe   :  { %2907 = vmatpush1.msra.mxu0 %v2828_v56  ;;  %3050 = vmatpush1.msra.mxu1 %v7412_v42 }
0x2aff   :  { %2908 = vmatprep.subr.mxu0 %v2827_v43  ;;  %3051 = vmatprep.subr.mxu1 %v7420_v12 }
0x2b00   :  { %2909 = vmatpush1.msra.mxu0 %v2826_v45  ;;  %3052 = vmatpush1.msra.mxu1 %v7429_v40 }
0x2b01   :  { %3053 = vmatprep.subr.mxu1 %v7437_v29  ;;  %3313 = vmatprep.subr.mxu0 %v7312_v47 }
0x2b02   :  { %3054 = vmatpush1.msra.mxu1 %v7444_v6 }
0x2b03   :  { %3088 = vmatmul.mubr.f32.vlgmr.msra.gmra.mxu1 %v6113_v7  ;;  %3176 = vmatprep.subr.mxu1 %v7312_v47 }
0x2b04   :  { %3224 = vmatprep.mubr.f32.mxu1 %v6113_v7  ;;  %3177 = vmatpush1.msra.mxu1 %v7320_v14 }
0x2b05   :  { %3178 = vmatprep.subr.mxu1 %v7329_v34 }
0x2b06   :  { %3179 = vmatpush1.msra.mxu1 %v7338_v33 }
0x2b07   :  { %3180 = vmatprep.subr.mxu1 %v7350_v58 }
0x2b08   :  { %3181 = vmatpush1.msra.mxu1 %v7359_v36 }
0x2b09   :  { %3182 = vmatprep.subr.mxu1 %v7368_v27 }
0x2b0a   :  { %3183 = vmatpush1.msra.mxu1 %v7377_v44 }
0x2b0b   :  { %3184 = vmatprep.subr.mxu1 %v7386_v63 }
0x2b0c   :  { %3185 = vmatpush1.msra.mxu1 %v7394_v28 }
0x2b0d   :  { %3186 = vmatprep.subr.mxu1 %v7403_v18 }
0x2b0e   :  { %3187 = vmatpush1.msra.mxu1 %v7412_v42 }
0x2b0f   :  { %3188 = vmatprep.subr.mxu1 %v7420_v12 }
0x2b10   :  { %3189 = vmatpush1.msra.mxu1 %v7429_v40 }
0x2b11   :  { %3190 = vmatprep.subr.mxu1 %v7437_v29 }
0x2b12   :  { %3191 = vmatpush1.msra.mxu1 %v7444_v6 }
0x2b13   :  { %3450 = vmatprep.subr.mxu1 %v7312_v47 }
0x2b5a   :  { %v2777_v24 = vpop.permute.xlu1 %2776 }
0x2b5b   :  { %v2779_v38 = vmul.f32 %v7290_v50, %v2777_v24  ;;  %v2842_v24 = vld [vmem:[%s8210_s9] sm:$0x3] }
0x2b5c   :  { %v2788_v4 = vpop.permute.xlu0 %2787 }
0x2b5d   :  { %2781 = vrot.lane.b32.xlu1 %v2779_v38, %s6114_s0  ;;  %v2790_v8 = vmul.f32 %v7293_v60, %v2788_v4  ;;  %v2847_v38 = vrot.slane %v2842_v24, %v6525_v26 }
0x2b5f   :  { %2792 = vrot.lane.b32.xlu0 %v2790_v8, %s6114_s0 }
0x2bc3   :  { %v3089_v8 = vpop.f32.mrf.mxu1 }
0x2bcf   :  { %v2782_v17 = vpop.permute.xlu1 %2781 }
0x2bd0   :  { %v2784_v37 = vadd.f32 %v2782_v17, %v2774_v9 }
0x2bd1   :  { %v2793_v13 = vpop.permute.xlu0 %2792 }
0x2bd2   :  { %5928 = vtanh.f32 %v2784_v37  ;;  %v2795_v22 = vadd.f32 %v2793_v13, %v2785_v55 }
0x2bd4   :  { %5930 = vtanh.f32 %v2795_v22 }
0x2bdf   :  { %v5929_v51 = vpop.eup %5928 }
0x2be0   :  { %2798 = vrot.lane.b32.xlu1 %v5929_v51, %s6114_s0 }
0x2be1   :  { %v5931_v32 = vpop.eup %5930 }
0x2be2   :  { %2804 = vrot.lane.b32.xlu0 %v5931_v32, %s6114_s0 }
0x2c52   :  { %v2799_v20 = vpop.permute.xlu1 %2798 }
0x2c53   :  { %v2801_v39 = vmul.f32 %v7290_v50, %v2799_v20 }
0x2c54   :  { %v2805_v5 = vpop.permute.xlu0 %2804 }
0x2c55   :  { %2809 = vrot.lane.b32.xlu1 %v2801_v39, %s6115_s10  ;;  %v2807_v19 = vmul.f32 %v7293_v60, %v2805_v5  ;;  %v2851_v60 = vrot.slane %v2842_v24, %v6531_v30 }
0x2c57   :  { %2814 = vrot.lane.b32.xlu0 %v2807_v19, %s6116_s29 }
0x2cc7   :  { %v2810_v57 = vpop.permute.xlu1 %2809 }
0x2cc8   :  { %2812 = vst.msk [vmem:[#allocation2 + $0x38] sm:$0xff] %vm554_vm2, %v2810_v57 }
0x2cc9   :  { %v2815_v59 = vpop.permute.xlu0 %2814 }
0x2cca   :  { %2817 = vst.msk [vmem:[#allocation2] sm:$0xff] %vm560_vm3, %v2815_v59 }
0x2ccf   :  { %v2825_v50 = vld [vmem:[#allocation2 + $0x38] sm:$0xff] }
0x2cd1   :  { %v2818_v61 = vld [vmem:[#allocation2] sm:$0xff] }
0x2cd2   :  { %5365 = vmatmul.mubr.msk.f32.vlgmr.msra.gmra.mxu0 %vm423_vm4, %v2818_v61 }
0x2cd3   :  { %2948 = vmatprep.mubr.f32.mxu0 %v6113_v7  ;;  %3314 = vmatpush1.msra.mxu0 %v7320_v14 }
0x2cd4   :  { %3315 = vmatprep.subr.mxu0 %v7329_v34 }
0x2cd5   :  { %3316 = vmatpush1.msra.mxu0 %v7338_v33 }
0x2cd6   :  { %5366 = vmatmul.mubr.msk.f32.gmra.mxu0 %vm423_vm4, %v2819_v52  ;;  %3317 = vmatprep.subr.mxu0 %v7350_v58  ;;  %v3091_v52 = vpop.f32.mrf.mxu1 }
0x2cd7   :  { %2954 = vmatprep.mubr.f32.mxu0 %v6113_v7  ;;  %3318 = vmatpush1.msra.mxu0 %v7359_v36 }
0x2cd8   :  { %3319 = vmatprep.subr.mxu0 %v7368_v27 }
0x2cd9   :  { %3320 = vmatpush1.msra.mxu0 %v7377_v44 }
0x2cda   :  { %5367 = vmatmul.mubr.msk.f32.gmra.mxu0 %vm423_vm4, %v2820_v16  ;;  %3321 = vmatprep.subr.mxu0 %v7386_v63 }
0x2cdb   :  { %2960 = vmatprep.mubr.f32.mxu0 %v6113_v7  ;;  %3322 = vmatpush1.msra.mxu0 %v7394_v28 }
0x2cdc   :  { %3323 = vmatprep.subr.mxu0 %v7403_v18 }
0x2cdd   :  { %3324 = vmatpush1.msra.mxu0 %v7412_v42 }
0x2cde   :  { %5368 = vmatmul.mubr.msk.f32.gmra.mxu0 %vm423_vm4, %v2821_v2  ;;  %3325 = vmatprep.subr.mxu0 %v7420_v12 }
0x2cdf   :  { %2966 = vmatprep.mubr.f32.mxu0 %v6113_v7  ;;  %3326 = vmatpush1.msra.mxu0 %v7429_v40 }
0x2ce0   :  { %3327 = vmatprep.subr.mxu0 %v7437_v29 }
0x2ce1   :  { %3328 = vmatpush1.msra.mxu0 %v7444_v6 }
0x2ce2   :  { %5369 = vmatmul.mubr.msk.f32.gmra.mxu0 %vm423_vm4, %v2822_v54  ;;  %3587 = vmatprep.subr.mxu0 %v7312_v47 }
0x2ce3   :  { %2972 = vmatprep.mubr.f32.mxu0 %v6113_v7 }
0x2ce6   :  { %5370 = vmatmul.mubr.msk.f32.gmra.mxu0 %vm423_vm4, %v2823_v0 }
0x2ce7   :  { %2978 = vmatprep.mubr.f32.mxu0 %v6113_v7 }
0x2cea   :  { %5371 = vmatmul.mubr.msk.f32.gmra.mxu0 %vm423_vm4, %v2824_v3 }
0x2ceb   :  { %2984 = vmatprep.mubr.f32.mxu0 %v6113_v7 }
0x2cee   :  { %5372 = vmatmul.mubr.msk.f32.gmra.mxu0 %vm423_vm4, %v2825_v50 }
0x2cef   :  { %3361 = vmatprep.mubr.f32.mxu0 %v6113_v7 }
0x2d92   :  { %v2944_v4 = vpop.f32.mrf.mxu0 }
0x2d93   :  { %v2945_v9 = vadd.f32 %v2944_v4, %v2847_v38 }
0x2d94   :  { %v2946_v17 = vpop.f32.mrf.mxu0 }
0x2d95   :  { %v7509_v37 = vadd.f32 %v2946_v17, %v2851_v60  ;;  %v3096_v55 = vadd.f32 %v3089_v8, %v2945_v9 }
0x2d96   :  { %v2950_v13 = vpop.f32.mrf.mxu0 }
0x2d97   :  { %5932 = vtanh.f32 %v3096_v55  ;;  %v7511_v22 = vadd.f32 %v2950_v13, %v2847_v38  ;;  %v5373_v54 = vmul.f32 -1.442695, %v3096_v55 }
0x2d98   :  { %v2952_v48 = vpop.f32.mrf.mxu0 }
0x2d99   :  { %v7513_v10 = vadd.f32 %v2952_v48, %v2851_v60 }
0x2d9a   :  { %v2956_v53 = vpop.f32.mrf.mxu0 }
0x2d9b   :  { %v7515_v31 = vadd.f32 %v2956_v53, %v2847_v38 }
0x2d9c   :  { %v2958_v26 = vpop.f32.mrf.mxu0 }
0x2d9d   :  { %v7517_v23 = vadd.f32 %v2958_v26, %v2851_v60 }
0x2d9e   :  { %v2962_v30 = vpop.f32.mrf.mxu0 }
0x2d9f   :  { %v7519_v46 = vadd.f32 %v2962_v30, %v2847_v38 }
0x2da0   :  { %v2964_v51 = vpop.f32.mrf.mxu0 }
0x2da1   :  { %v7521_v32 = vadd.f32 %v2964_v51, %v2851_v60 }
0x2da2   :  { %v2968_v11 = vpop.f32.mrf.mxu0 }
0x2da3   :  { %v7523_v62 = vadd.f32 %v2968_v11, %v2847_v38 }
0x2da4   :  { %v5933_v35 = vpop.eup %5932  ;;  %v2970_v15 = vpop.f32.mrf.mxu0 }
0x2da5   :  { %v7525_v41 = vadd.f32 %v2970_v15, %v2851_v60  ;;  %3114 = vrot.lane.b32.xlu0 %v5933_v35, %s6114_s0 }
0x2da6   :  { %v2974_v1 = vpop.f32.mrf.mxu0 }
0x2da7   :  { %v7528_v21 = vadd.f32 %v2974_v1, %v2847_v38 }
0x2da8   :  { %v2976_v56 = vpop.f32.mrf.mxu0 }
0x2da9   :  { %v7530_v43 = vadd.f32 %v2976_v56, %v2851_v60 }
0x2daa   :  { %v2980_v45 = vpop.f32.mrf.mxu0 }
0x2dab   :  { %v7532_v20 = vadd.f32 %v2980_v45, %v2847_v38 }
0x2dac   :  { %v2982_v39 = vpop.f32.mrf.mxu0 }
0x2dad   :  { %v7534_v5 = vadd.f32 %v2982_v39, %v2851_v60 }
0x2dae   :  { %v2986_v19 = vpop.f32.mrf.mxu0 }
0x2daf   :  { %v7536_v57 = vadd.f32 %v2986_v19, %v2847_v38 }
0x2db0   :  { %v2988_v59 = vpop.f32.mrf.mxu0 }
0x2db1   :  { %v2989_v61 = vadd.f32 %v2988_v59, %v2851_v60 }
0x2db3   :  { %v3097_v16 = vadd.f32 %v3091_v52, %v2989_v61 }
0x2db5   :  { %5934 = vtanh.f32 %v3097_v16  ;;  %v5374_v50 = vmul.f32 -1.442695, %v3097_v16 }
0x2db6   :  { %5936 = vpow2.f32 %v5373_v54 }
0x2dc2   :  { %v5935_v2 = vpop.eup %5934 }
0x2dc3   :  { %3125 = vrot.lane.b32.xlu1 %v5935_v2, %s6114_s0  ;;  %v5937_v0 = vpop.eup %5936 }
0x2dc4   :  { %v3104_v3 = vadd.f32 1.0, %v5937_v0 }
0x2dc6   :  { %5938 = vrcp.f32 %v3104_v3 }
0x2dc7   :  { %5940 = vpow2.f32 %v5374_v50 }
0x2dd3   :  { %v5939_v24 = vpop.eup %5938 }
0x2dd4   :  { %v5941_v38 = vpop.eup %5940  ;;  %v3112_v55 = vmul.f32 0.0, %v5939_v24 }
0x2dd5   :  { %v3105_v60 = vadd.f32 1.0, %v5941_v38 }
0x2dd7   :  { %5942 = vrcp.f32 %v3105_v60 }
0x2de4   :  { %v5943_v9 = vpop.eup %5942 }
0x2de5   :  { %v3123_v30 = vmul.f32 0.0, %v5943_v9 }
0x2e17   :  { %v3115_v4 = vpop.permute.xlu0 %3114 }
0x2e18   :  { %v3117_v8 = vmul.f32 %v5939_v24, %v3115_v4 }
0x2e1a   :  { %3119 = vrot.lane.b32.xlu0 %v3117_v8, %s6114_s0 }
0x2e35   :  { %v3126_v17 = vpop.permute.xlu1 %3125 }
0x2e36   :  { %v3128_v13 = vmul.f32 %v5943_v9, %v3126_v17 }
0x2e38   :  { %3130 = vrot.lane.b32.xlu1 %v3128_v13, %s6114_s0 }
0x2e8c   :  { %v3120_v48 = vpop.permute.xlu0 %3119 }
0x2e8d   :  { %v7541_v53 = vadd.f32 %v3120_v48, %v3112_v55 }
0x2e8f   :  { %5944 = vtanh.f32 %v7541_v53 }
0x2e9c   :  { %v5945_v26 = vpop.eup %5944 }
0x2e9d   :  { %3136 = vrot.lane.b32.xlu0 %v5945_v26, %s6114_s0 }
0x2eaa   :  { %v3131_v51 = vpop.permute.xlu1 %3130 }
0x2eab   :  { %v7545_v11 = vadd.f32 %v3131_v51, %v3123_v30 }
0x2ead   :  { %5946 = vtanh.f32 %v7545_v11 }
0x2eba   :  { %v5947_v35 = vpop.eup %5946 }
0x2ebb   :  { %3142 = vrot.lane.b32.xlu1 %v5947_v35, %s6114_s0 }
0x2f0f   :  { %v3137_v15 = vpop.permute.xlu0 %3136 }
0x2f10   :  { %v3139_v1 = vmul.f32 %v5939_v24, %v3137_v15 }
0x2f12   :  { %3147 = vrot.lane.b32.xlu0 %v3139_v1, %s6115_s10 }
0x2f2d   :  { %v3143_v56 = vpop.permute.xlu1 %3142 }
0x2f2e   :  { %v3145_v45 = vmul.f32 %v5943_v9, %v3143_v56 }
0x2f30   :  { %3152 = vrot.lane.b32.xlu1 %v3145_v45, %s6116_s29 }
0x2f84   :  { %v3148_v39 = vpop.permute.xlu0 %3147 }
0x2f85   :  { %3150 = vst.msk [vmem:[#allocation2] sm:$0xff] %vm554_vm2, %v3148_v39 }
0x2fa2   :  { %v3153_v19 = vpop.permute.xlu1 %3152 }
0x2fa3   :  { %3155 = vst.msk [vmem:[#allocation2 + $0x38] sm:$0xff] %vm560_vm3, %v3153_v19  ;;  %v3156_v59 = vsel %vm554_vm2, %v3148_v39, %v3153_v19 }
0x2fa4   :  { %5375 = vmatmul.mubr.msk.f32.vlgmr.msra.gmra.mxu1 %vm423_vm4, %v3156_v59 }
0x2fa5   :  { %3451 = vmatpush1.msra.mxu1 %v7320_v14  ;;  %3498 = vmatprep.mubr.f32.mxu1 %v6113_v7 }
0x2fa6   :  { %3452 = vmatprep.subr.mxu1 %v7329_v34 }
0x2fa7   :  { %3453 = vmatpush1.msra.mxu1 %v7338_v33 }
0x2fa8   :  { %3454 = vmatprep.subr.mxu1 %v7350_v58 }
0x2fa9   :  { %3455 = vmatpush1.msra.mxu1 %v7359_v36 }
0x2faa   :  { %3456 = vmatprep.subr.mxu1 %v7368_v27 }
0x2fab   :  { %3457 = vmatpush1.msra.mxu1 %v7377_v44 }
0x2fac   :  { %3458 = vmatprep.subr.mxu1 %v7386_v63 }
0x2fad   :  { %3459 = vmatpush1.msra.mxu1 %v7394_v28 }
0x2fae   :  { %3460 = vmatprep.subr.mxu1 %v7403_v18 }
0x2faf   :  { %3461 = vmatpush1.msra.mxu1 %v7412_v42 }
0x2fb0   :  { %3462 = vmatprep.subr.mxu1 %v7420_v12 }
0x2fb1   :  { %3463 = vmatpush1.msra.mxu1 %v7429_v40 }
0x2fb2   :  { %3464 = vmatprep.subr.mxu1 %v7437_v29 }
0x2fb3   :  { %3465 = vmatpush1.msra.mxu1 %v7444_v6 }
0x2fb4   :  { %3724 = vmatprep.subr.mxu1 %v7312_v47 }
0x3064   :  { %v3226_v61 = vpop.f32.mrf.mxu1 }
0x3065   :  { %v3233_v52 = vadd.f32 %v3226_v61, %v7511_v22 }
0x3066   :  { %v3228_v16 = vpop.f32.mrf.mxu1 }
0x3067   :  { %5948 = vtanh.f32 %v3233_v52  ;;  %v3234_v2 = vadd.f32 %v3228_v16, %v7534_v5  ;;  %v5376_v3 = vmul.f32 -1.442695, %v3233_v52 }
0x3069   :  { %5950 = vtanh.f32 %v3234_v2  ;;  %v5377_v50 = vmul.f32 -1.442695, %v3234_v2 }
0x306a   :  { %5952 = vpow2.f32 %v5376_v3 }
0x306b   :  { %5954 = vpow2.f32 %v5377_v50 }
0x3074   :  { %v5949_v54 = vpop.eup %5948 }
0x3075   :  { %3251 = vrot.lane.b32.xlu0 %v5949_v54, %s6114_s0 }
0x3076   :  { %v5951_v0 = vpop.eup %5950 }
0x3077   :  { %3262 = vrot.lane.b32.xlu1 %v5951_v0, %s6114_s0  ;;  %v5953_v24 = vpop.eup %5952 }
0x3078   :  { %v5955_v4 = vpop.eup %5954  ;;  %v3241_v8 = vadd.f32 1.0, %v5953_v24 }
0x3079   :  { %v3242_v38 = vadd.f32 1.0, %v5955_v4 }
0x307a   :  { %5956 = vrcp.f32 %v3241_v8 }
0x307b   :  { %5958 = vrcp.f32 %v3242_v38 }
0x3087   :  { %v5957_v22 = vpop.eup %5956 }
0x3088   :  { %v5959_v9 = vpop.eup %5958  ;;  %v3249_v55 = vmul.f32 %v5957_v22, %v7541_v53 }
0x3089   :  { %v3260_v30 = vmul.f32 %v5959_v9, %v7545_v11 }
0x30e7   :  { %v3252_v60 = vpop.permute.xlu0 %3251 }
0x30e8   :  { %v3254_v5 = vmul.f32 %v5957_v22, %v3252_v60 }
0x30e9   :  { %v3263_v17 = vpop.permute.xlu1 %3262 }
0x30ea   :  { %3256 = vrot.lane.b32.xlu0 %v3254_v5, %s6114_s0  ;;  %v3265_v13 = vmul.f32 %v5959_v9, %v3263_v17 }
0x30ec   :  { %3267 = vrot.lane.b32.xlu1 %v3265_v13, %s6114_s0 }
0x315c   :  { %v3257_v48 = vpop.permute.xlu0 %3256 }
0x315d   :  { %v7579_v26 = vadd.f32 %v3257_v48, %v3249_v55 }
0x315e   :  { %v3268_v51 = vpop.permute.xlu1 %3267 }
0x315f   :  { %5960 = vtanh.f32 %v7579_v26  ;;  %v7583_v35 = vadd.f32 %v3268_v51, %v3260_v30 }
0x3161   :  { %5962 = vtanh.f32 %v7583_v35 }
0x316c   :  { %v5961_v15 = vpop.eup %5960 }
0x316d   :  { %3273 = vrot.lane.b32.xlu0 %v5961_v15, %s6114_s0 }
0x316e   :  { %v5963_v1 = vpop.eup %5962 }
0x316f   :  { %3279 = vrot.lane.b32.xlu1 %v5963_v1, %s6114_s0 }
0x31df   :  { %v3274_v56 = vpop.permute.xlu0 %3273 }
0x31e0   :  { %v3276_v53 = vmul.f32 %v5957_v22, %v3274_v56 }
0x31e1   :  { %v3280_v45 = vpop.permute.xlu1 %3279 }
0x31e2   :  { %3284 = vrot.lane.b32.xlu0 %v3276_v53, %s6115_s10  ;;  %v3282_v39 = vmul.f32 %v5959_v9, %v3280_v45 }
0x31e4   :  { %3289 = vrot.lane.b32.xlu1 %v3282_v39, %s6116_s29 }
0x3254   :  { %v3285_v11 = vpop.permute.xlu0 %3284 }
0x3255   :  { %3287 = vst.msk [vmem:[#allocation2 + $0x8] sm:$0xff] %vm554_vm2, %v3285_v11 }
0x3256   :  { %v3290_v19 = vpop.permute.xlu1 %3289 }
0x3257   :  { %3292 = vst.msk [vmem:[#allocation2 + $0x30] sm:$0xff] %vm560_vm3, %v3290_v19  ;;  %v3293_v59 = vsel %vm554_vm2, %v3285_v11, %v3290_v19 }
0x3258   :  { %5378 = vmatmul.mubr.msk.f32.vlgmr.msra.gmra.mxu0 %vm423_vm4, %v3293_v59 }
0x3259   :  { %3588 = vmatpush1.msra.mxu0 %v7320_v14  ;;  %3635 = vmatprep.mubr.f32.mxu0 %v6113_v7 }
0x325a   :  { %3589 = vmatprep.subr.mxu0 %v7329_v34 }
0x325b   :  { %3590 = vmatpush1.msra.mxu0 %v7338_v33 }
0x325c   :  { %3591 = vmatprep.subr.mxu0 %v7350_v58 }
0x325d   :  { %3592 = vmatpush1.msra.mxu0 %v7359_v36 }
0x325e   :  { %3593 = vmatprep.subr.mxu0 %v7368_v27 }
0x325f   :  { %3594 = vmatpush1.msra.mxu0 %v7377_v44 }
0x3260   :  { %3595 = vmatprep.subr.mxu0 %v7386_v63 }
0x3261   :  { %3596 = vmatpush1.msra.mxu0 %v7394_v28 }
0x3262   :  { %3597 = vmatprep.subr.mxu0 %v7403_v18 }
0x3263   :  { %3598 = vmatpush1.msra.mxu0 %v7412_v42 }
0x3264   :  { %3599 = vmatprep.subr.mxu0 %v7420_v12 }
0x3265   :  { %3600 = vmatpush1.msra.mxu0 %v7429_v40 }
0x3266   :  { %3601 = vmatprep.subr.mxu0 %v7437_v29 }
0x3267   :  { %3602 = vmatpush1.msra.mxu0 %v7444_v6 }
0x3268   :  { %3861 = vmatprep.subr.mxu0 %v7312_v47 }
0x3318   :  { %v3363_v61 = vpop.f32.mrf.mxu0 }
0x3319   :  { %v3370_v52 = vadd.f32 %v3363_v61, %v7515_v31 }
0x331a   :  { %v3365_v16 = vpop.f32.mrf.mxu0 }
0x331b   :  { %5964 = vtanh.f32 %v3370_v52  ;;  %v3371_v2 = vadd.f32 %v3365_v16, %v7530_v43  ;;  %v5379_v3 = vmul.f32 -1.442695, %v3370_v52 }
0x331d   :  { %5966 = vtanh.f32 %v3371_v2  ;;  %v5380_v50 = vmul.f32 -1.442695, %v3371_v2 }
0x331e   :  { %5968 = vpow2.f32 %v5379_v3 }
0x331f   :  { %5970 = vpow2.f32 %v5380_v50 }
0x3328   :  { %v5965_v54 = vpop.eup %5964 }
0x3329   :  { %3388 = vrot.lane.b32.xlu0 %v5965_v54, %s6114_s0 }
0x332a   :  { %v5967_v0 = vpop.eup %5966 }
0x332b   :  { %3399 = vrot.lane.b32.xlu1 %v5967_v0, %s6114_s0  ;;  %v5969_v24 = vpop.eup %5968 }
0x332c   :  { %v5971_v4 = vpop.eup %5970  ;;  %v3378_v8 = vadd.f32 1.0, %v5969_v24 }
0x332d   :  { %v3379_v38 = vadd.f32 1.0, %v5971_v4 }
0x332e   :  { %5972 = vrcp.f32 %v3378_v8 }
0x332f   :  { %5974 = vrcp.f32 %v3379_v38 }
0x333b   :  { %v5973_v31 = vpop.eup %5972 }
0x333c   :  { %v5975_v60 = vpop.eup %5974  ;;  %v3386_v17 = vmul.f32 %v5973_v31, %v7579_v26 }
0x333d   :  { %v3397_v48 = vmul.f32 %v5975_v60, %v7583_v35 }
0x339b   :  { %v3389_v22 = vpop.permute.xlu0 %3388 }
0x339c   :  { %v3391_v43 = vmul.f32 %v5973_v31, %v3389_v22 }
0x339d   :  { %v3400_v5 = vpop.permute.xlu1 %3399 }
0x339e   :  { %3393 = vrot.lane.b32.xlu0 %v3391_v43, %s6114_s0  ;;  %v3402_v9 = vmul.f32 %v5975_v60, %v3400_v5 }
0x33a0   :  { %3404 = vrot.lane.b32.xlu1 %v3402_v9, %s6114_s0 }
0x3410   :  { %v3394_v13 = vpop.permute.xlu0 %3393 }
0x3411   :  { %v7618_v55 = vadd.f32 %v3394_v13, %v3386_v17 }
0x3412   :  { %v3405_v30 = vpop.permute.xlu1 %3404 }
0x3413   :  { %5976 = vtanh.f32 %v7618_v55  ;;  %v7622_v51 = vadd.f32 %v3405_v30, %v3397_v48 }
0x3415   :  { %5978 = vtanh.f32 %v7622_v51 }
0x3420   :  { %v5977_v15 = vpop.eup %5976 }
0x3421   :  { %3410 = vrot.lane.b32.xlu0 %v5977_v15, %s6114_s0 }
0x3422   :  { %v5979_v1 = vpop.eup %5978 }
0x3423   :  { %3416 = vrot.lane.b32.xlu1 %v5979_v1, %s6114_s0 }
0x3493   :  { %v3411_v56 = vpop.permute.xlu0 %3410 }
0x3494   :  { %v3413_v26 = vmul.f32 %v5973_v31, %v3411_v56 }
0x3495   :  { %v3417_v53 = vpop.permute.xlu1 %3416 }
0x3496   :  { %3421 = vrot.lane.b32.xlu0 %v3413_v26, %s6115_s10  ;;  %v3419_v45 = vmul.f32 %v5975_v60, %v3417_v53 }
0x3498   :  { %3426 = vrot.lane.b32.xlu1 %v3419_v45, %s6116_s29 }
0x3508   :  { %v3422_v35 = vpop.permute.xlu0 %3421 }
0x3509   :  { %3424 = vst.msk [vmem:[#allocation2 + $0x10] sm:$0xff] %vm554_vm2, %v3422_v35 }
0x350a   :  { %v3427_v39 = vpop.permute.xlu1 %3426 }
0x350b   :  { %3429 = vst.msk [vmem:[#allocation2 + $0x28] sm:$0xff] %vm560_vm3, %v3427_v39  ;;  %v3430_v11 = vsel %vm554_vm2, %v3422_v35, %v3427_v39 }
0x350c   :  { %5381 = vmatmul.mubr.msk.f32.vlgmr.msra.gmra.mxu1 %vm423_vm4, %v3430_v11 }
0x350d   :  { %3725 = vmatpush1.msra.mxu1 %v7320_v14  ;;  %3772 = vmatprep.mubr.f32.mxu1 %v6113_v7 }
0x350e   :  { %3726 = vmatprep.subr.mxu1 %v7329_v34 }
0x350f   :  { %3727 = vmatpush1.msra.mxu1 %v7338_v33 }
0x3510   :  { %3728 = vmatprep.subr.mxu1 %v7350_v58 }
0x3511   :  { %3729 = vmatpush1.msra.mxu1 %v7359_v36 }
0x3512   :  { %3730 = vmatprep.subr.mxu1 %v7368_v27 }
0x3513   :  { %3731 = vmatpush1.msra.mxu1 %v7377_v44 }
0x3514   :  { %3732 = vmatprep.subr.mxu1 %v7386_v63 }
0x3515   :  { %3733 = vmatpush1.msra.mxu1 %v7394_v28 }
0x3516   :  { %3734 = vmatprep.subr.mxu1 %v7403_v18 }
0x3517   :  { %3735 = vmatpush1.msra.mxu1 %v7412_v42 }
0x3518   :  { %3736 = vmatprep.subr.mxu1 %v7420_v12 }
0x3519   :  { %3737 = vmatpush1.msra.mxu1 %v7429_v40 }
0x351a   :  { %3738 = vmatprep.subr.mxu1 %v7437_v29 }
0x351b   :  { %3739 = vmatpush1.msra.mxu1 %v7444_v6 }
0x351c   :  { %3998 = vmatprep.subr.mxu1 %v7312_v47 }
0x35cc   :  { %v3500_v19 = vpop.f32.mrf.mxu1 }
0x35cd   :  { %v3507_v59 = vadd.f32 %v3500_v19, %v7519_v46 }
0x35ce   :  { %v3502_v61 = vpop.f32.mrf.mxu1 }
0x35cf   :  { %5980 = vtanh.f32 %v3507_v59  ;;  %v3508_v52 = vadd.f32 %v3502_v61, %v7525_v41  ;;  %v5382_v54 = vmul.f32 -1.442695, %v3507_v59 }
0x35d1   :  { %5982 = vtanh.f32 %v3508_v52  ;;  %v5383_v0 = vmul.f32 -1.442695, %v3508_v52 }
0x35d2   :  { %5984 = vpow2.f32 %v5382_v54 }
0x35d3   :  { %5986 = vpow2.f32 %v5383_v0 }
0x35dc   :  { %v5981_v16 = vpop.eup %5980 }
0x35dd   :  { %3525 = vrot.lane.b32.xlu0 %v5981_v16, %s6114_s0 }
0x35de   :  { %v5983_v2 = vpop.eup %5982 }
0x35df   :  { %3536 = vrot.lane.b32.xlu1 %v5983_v2, %s6114_s0  ;;  %v5985_v3 = vpop.eup %5984 }
0x35e0   :  { %v5987_v47 = vpop.eup %5986  ;;  %v3515_v50 = vadd.f32 1.0, %v5985_v3 }
0x35e1   :  { %v3516_v24 = vadd.f32 1.0, %v5987_v47 }
0x35e2   :  { %5988 = vrcp.f32 %v3515_v50 }
0x35e3   :  { %5990 = vrcp.f32 %v3516_v24 }
0x35ef   :  { %v5989_v46 = vpop.eup %5988 }
0x35f0   :  { %v5991_v8 = vpop.eup %5990  ;;  %v3523_v22 = vmul.f32 %v5989_v46, %v7618_v55 }
0x35f1   :  { %v3534_v5 = vmul.f32 %v5991_v8, %v7622_v51 }
0x364f   :  { %v3526_v4 = vpop.permute.xlu0 %3525 }
0x3650   :  { %v3528_v41 = vmul.f32 %v5989_v46, %v3526_v4 }
0x3651   :  { %v3537_v38 = vpop.permute.xlu1 %3536 }
0x3652   :  { %3530 = vrot.lane.b32.xlu0 %v3528_v41, %s6114_s0  ;;  %v3539_v31 = vmul.f32 %v5991_v8, %v3537_v38 }
0x3654   :  { %3541 = vrot.lane.b32.xlu1 %v3539_v31, %s6114_s0 }
0x36c4   :  { %v3531_v43 = vpop.permute.xlu0 %3530 }
0x36c5   :  { %v7657_v60 = vadd.f32 %v3531_v43, %v3523_v22 }
0x36c6   :  { %v3542_v9 = vpop.permute.xlu1 %3541 }
0x36c7   :  { %5992 = vtanh.f32 %v7657_v60  ;;  %v7661_v17 = vadd.f32 %v3542_v9, %v3534_v5 }
0x36c9   :  { %5994 = vtanh.f32 %v7661_v17 }
0x36d4   :  { %v5993_v13 = vpop.eup %5992 }
0x36d5   :  { %3547 = vrot.lane.b32.xlu0 %v5993_v13, %s6114_s0 }
0x36d6   :  { %v5995_v48 = vpop.eup %5994 }
0x36d7   :  { %3553 = vrot.lane.b32.xlu1 %v5995_v48, %s6114_s0 }
0x3747   :  { %v3548_v30 = vpop.permute.xlu0 %3547 }
0x3748   :  { %v3550_v55 = vmul.f32 %v5989_v46, %v3548_v30 }
0x3749   :  { %v3554_v15 = vpop.permute.xlu1 %3553 }
0x374a   :  { %3558 = vrot.lane.b32.xlu0 %v3550_v55, %s6115_s10  ;;  %v3556_v1 = vmul.f32 %v5991_v8, %v3554_v15 }
0x374c   :  { %3563 = vrot.lane.b32.xlu1 %v3556_v1, %s6116_s29 }
0x37bc   :  { %v3559_v51 = vpop.permute.xlu0 %3558 }
0x37bd   :  { %3561 = vst.msk [vmem:[#allocation2 + $0x18] sm:$0xff] %vm554_vm2, %v3559_v51 }
0x37be   :  { %v3564_v56 = vpop.permute.xlu1 %3563 }
0x37bf   :  { %3566 = vst.msk [vmem:[#allocation2 + $0x20] sm:$0xff] %vm560_vm3, %v3564_v56  ;;  %v3567_v26 = vsel %vm554_vm2, %v3559_v51, %v3564_v56 }
0x37c0   :  { %5384 = vmatmul.mubr.msk.f32.vlgmr.msra.gmra.mxu0 %vm423_vm4, %v3567_v26 }
0x37c1   :  { %3862 = vmatpush1.msra.mxu0 %v7320_v14  ;;  %3909 = vmatprep.mubr.f32.mxu0 %v6113_v7 }
0x37c2   :  { %3863 = vmatprep.subr.mxu0 %v7329_v34 }
0x37c3   :  { %3864 = vmatpush1.msra.mxu0 %v7338_v33 }
0x37c4   :  { %3865 = vmatprep.subr.mxu0 %v7350_v58 }
0x37c5   :  { %3866 = vmatpush1.msra.mxu0 %v7359_v36 }
0x37c6   :  { %3867 = vmatprep.subr.mxu0 %v7368_v27 }
0x37c7   :  { %3868 = vmatpush1.msra.mxu0 %v7377_v44 }
0x37c8   :  { %3869 = vmatprep.subr.mxu0 %v7386_v63 }
0x37c9   :  { %3870 = vmatpush1.msra.mxu0 %v7394_v28 }
0x37ca   :  { %3871 = vmatprep.subr.mxu0 %v7403_v18 }
0x37cb   :  { %3872 = vmatpush1.msra.mxu0 %v7412_v42 }
0x37cc   :  { %3873 = vmatprep.subr.mxu0 %v7420_v12 }
0x37cd   :  { %3874 = vmatpush1.msra.mxu0 %v7429_v40 }
0x37ce   :  { %3875 = vmatprep.subr.mxu0 %v7437_v29 }
0x37cf   :  { %3876 = vmatpush1.msra.mxu0 %v7444_v6 }
0x3880   :  { %v3637_v53 = vpop.f32.mrf.mxu0 }
0x3881   :  { %v3644_v45 = vadd.f32 %v3637_v53, %v7523_v62 }
0x3882   :  { %v3639_v35 = vpop.f32.mrf.mxu0 }
0x3883   :  { %5996 = vtanh.f32 %v3644_v45  ;;  %v3645_v39 = vadd.f32 %v3639_v35, %v7521_v32  ;;  %v5385_v59 = vmul.f32 -1.442695, %v3644_v45 }
0x3885   :  { %5998 = vtanh.f32 %v3645_v39  ;;  %v5386_v61 = vmul.f32 -1.442695, %v3645_v39 }
0x3886   :  { %6000 = vpow2.f32 %v5385_v59 }
0x3887   :  { %6002 = vpow2.f32 %v5386_v61 }
0x3890   :  { %v5997_v11 = vpop.eup %5996 }
0x3891   :  { %3662 = vrot.lane.b32.xlu0 %v5997_v11, %s6114_s0 }
0x3892   :  { %v5999_v19 = vpop.eup %5998 }
0x3893   :  { %3673 = vrot.lane.b32.xlu1 %v5999_v19, %s6114_s0  ;;  %v6001_v52 = vpop.eup %6000 }
0x3894   :  { %v6003_v16 = vpop.eup %6002  ;;  %v3652_v2 = vadd.f32 1.0, %v6001_v52 }
0x3895   :  { %v3653_v54 = vadd.f32 1.0, %v6003_v16 }
0x3896   :  { %6004 = vrcp.f32 %v3652_v2 }
0x3897   :  { %6006 = vrcp.f32 %v3653_v54 }
0x38a3   :  { %v6005_v62 = vpop.eup %6004 }
0x38a4   :  { %v6007_v3 = vpop.eup %6006  ;;  %v3660_v24 = vmul.f32 %v6005_v62, %v7657_v60 }
0x38a5   :  { %v3671_v41 = vmul.f32 %v6007_v3, %v7661_v17 }
0x3903   :  { %v3663_v0 = vpop.permute.xlu0 %3662 }
0x3904   :  { %v3665_v32 = vmul.f32 %v6005_v62, %v3663_v0 }
0x3905   :  { %v3674_v47 = vpop.permute.xlu1 %3673 }
0x3906   :  { %3667 = vrot.lane.b32.xlu0 %v3665_v32, %s6114_s0  ;;  %v3676_v50 = vmul.f32 %v6007_v3, %v3674_v47 }
0x3908   :  { %3678 = vrot.lane.b32.xlu1 %v3676_v50, %s6114_s0 }
0x3978   :  { %v3668_v46 = vpop.permute.xlu0 %3667 }
0x3979   :  { %v7695_v4 = vadd.f32 %v3668_v46, %v3660_v24 }
0x397a   :  { %v3679_v8 = vpop.permute.xlu1 %3678 }
0x397b   :  { %6008 = vtanh.f32 %v7695_v4  ;;  %v7699_v38 = vadd.f32 %v3679_v8, %v3671_v41 }
0x397d   :  { %6010 = vtanh.f32 %v7699_v38 }
0x3988   :  { %v6009_v31 = vpop.eup %6008 }
0x3989   :  { %3684 = vrot.lane.b32.xlu0 %v6009_v31, %s6114_s0 }
0x398a   :  { %v6011_v22 = vpop.eup %6010 }
0x398b   :  { %3690 = vrot.lane.b32.xlu1 %v6011_v22, %s6114_s0 }
0x39fb   :  { %v3685_v43 = vpop.permute.xlu0 %3684 }
0x39fc   :  { %v3687_v60 = vmul.f32 %v6005_v62, %v3685_v43 }
0x39fd   :  { %v3691_v5 = vpop.permute.xlu1 %3690 }
0x39fe   :  { %3695 = vrot.lane.b32.xlu0 %v3687_v60, %s6115_s10  ;;  %v3693_v9 = vmul.f32 %v6007_v3, %v3691_v5 }
0x3a00   :  { %3700 = vrot.lane.b32.xlu1 %v3693_v9, %s6116_s29 }
0x3a70   :  { %v3696_v17 = vpop.permute.xlu0 %3695 }
0x3a71   :  { %3698 = vst.msk [vmem:[#allocation2 + $0x20] sm:$0xff] %vm554_vm2, %v3696_v17 }
0x3a72   :  { %v3701_v13 = vpop.permute.xlu1 %3700 }
0x3a73   :  { %3703 = vst.msk [vmem:[#allocation2 + $0x18] sm:$0xff] %vm560_vm3, %v3701_v13  ;;  %v3704_v48 = vsel %vm554_vm2, %v3696_v17, %v3701_v13 }
0x3a74   :  { %5387 = vmatmul.mubr.msk.f32.vlgmr.msra.gmra.mxu1 %vm423_vm4, %v3704_v48 }
0x3a75   :  { %3999 = vmatpush1.msra.mxu1 %v7320_v14  ;;  %4046 = vmatprep.mubr.f32.mxu1 %v6113_v7 }
0x3a76   :  { %4000 = vmatprep.subr.mxu1 %v7329_v34 }
0x3a77   :  { %4001 = vmatpush1.msra.mxu1 %v7338_v33 }
0x3a78   :  { %4002 = vmatprep.subr.mxu1 %v7350_v58 }
0x3a79   :  { %4003 = vmatpush1.msra.mxu1 %v7359_v36 }
0x3a7a   :  { %4004 = vmatprep.subr.mxu1 %v7368_v27 }
0x3a7b   :  { %4005 = vmatpush1.msra.mxu1 %v7377_v44 }
0x3a7c   :  { %4006 = vmatprep.subr.mxu1 %v7386_v63 }
0x3a7d   :  { %4007 = vmatpush1.msra.mxu1 %v7394_v28 }
0x3a7e   :  { %4008 = vmatprep.subr.mxu1 %v7403_v18 }
0x3a7f   :  { %4009 = vmatpush1.msra.mxu1 %v7412_v42 }
0x3a80   :  { %4010 = vmatprep.subr.mxu1 %v7420_v12 }
0x3a81   :  { %4011 = vmatpush1.msra.mxu1 %v7429_v40 }
0x3a82   :  { %4012 = vmatprep.subr.mxu1 %v7437_v29 }
0x3a83   :  { %4013 = vmatpush1.msra.mxu1 %v7444_v6 }
0x3b34   :  { %v3774_v14 = vpop.f32.mrf.mxu1 }
0x3b35   :  { %v3781_v34 = vadd.f32 %v3774_v14, %v7528_v21 }
0x3b36   :  { %v3776_v33 = vpop.f32.mrf.mxu1 }
0x3b37   :  { %6012 = vtanh.f32 %v3781_v34  ;;  %v3782_v58 = vadd.f32 %v3776_v33, %v7517_v23  ;;  %v5388_v44 = vmul.f32 -1.442695, %v3781_v34 }
0x3b39   :  { %6014 = vtanh.f32 %v3782_v58  ;;  %v5389_v63 = vmul.f32 -1.442695, %v3782_v58 }
0x3b3a   :  { %6016 = vpow2.f32 %v5388_v44 }
0x3b3b   :  { %6018 = vpow2.f32 %v5389_v63 }
0x3b44   :  { %v6013_v36 = vpop.eup %6012 }
0x3b45   :  { %3799 = vrot.lane.b32.xlu0 %v6013_v36, %s6114_s0 }
0x3b46   :  { %v6015_v27 = vpop.eup %6014 }
0x3b47   :  { %3810 = vrot.lane.b32.xlu1 %v6015_v27, %s6114_s0  ;;  %v6017_v28 = vpop.eup %6016 }
0x3b48   :  { %v6019_v18 = vpop.eup %6018  ;;  %v3789_v42 = vadd.f32 1.0, %v6017_v28 }
0x3b49   :  { %v3790_v12 = vadd.f32 1.0, %v6019_v18 }
0x3b4a   :  { %6020 = vrcp.f32 %v3789_v42 }
0x3b4b   :  { %6022 = vrcp.f32 %v3790_v12 }
0x3b57   :  { %v6021_v40 = vpop.eup %6020 }
0x3b58   :  { %v6023_v23 = vpop.eup %6022  ;;  %v3797_v55 = vmul.f32 %v6021_v40, %v7695_v4 }
0x3b59   :  { %v3808_v51 = vmul.f32 %v6023_v23, %v7699_v38 }
0x3bb7   :  { %v3800_v29 = vpop.permute.xlu0 %3799 }
0x3bb8   :  { %v3802_v6 = vmul.f32 %v6021_v40, %v3800_v29 }
0x3bb9   :  { %v3811_v21 = vpop.permute.xlu1 %3810 }
0x3bba   :  { %3804 = vrot.lane.b32.xlu0 %v3802_v6, %s6114_s0  ;;  %v3813_v30 = vmul.f32 %v6023_v23, %v3811_v21 }
0x3bbc   :  { %3815 = vrot.lane.b32.xlu1 %v3813_v30, %s6114_s0 }
0x3c2c   :  { %v3805_v15 = vpop.permute.xlu0 %3804 }
0x3c2d   :  { %v3807_v1 = vadd.f32 %v3805_v15, %v3797_v55 }
0x3c2e   :  { %v3816_v56 = vpop.permute.xlu1 %3815 }
0x3c2f   :  { %6024 = vtanh.f32 %v3807_v1  ;;  %v3818_v26 = vadd.f32 %v3816_v56, %v3808_v51 }
0x3c31   :  { %6026 = vtanh.f32 %v3818_v26 }
0x3c3c   :  { %v6025_v53 = vpop.eup %6024 }
0x3c3d   :  { %3821 = vrot.lane.b32.xlu0 %v6025_v53, %s6114_s0 }
0x3c3e   :  { %v6027_v45 = vpop.eup %6026 }
0x3c3f   :  { %3827 = vrot.lane.b32.xlu1 %v6027_v45, %s6114_s0 }
0x3caf   :  { %v3822_v35 = vpop.permute.xlu0 %3821 }
0x3cb0   :  { %v3824_v39 = vmul.f32 %v6021_v40, %v3822_v35 }
0x3cb1   :  { %v3828_v11 = vpop.permute.xlu1 %3827 }
0x3cb2   :  { %3832 = vrot.lane.b32.xlu0 %v3824_v39, %s6115_s10  ;;  %v3830_v19 = vmul.f32 %v6023_v23, %v3828_v11 }
0x3cb4   :  { %3837 = vrot.lane.b32.xlu1 %v3830_v19, %s6116_s29  ;;  %v4243_v19 = vld [vmem:[%s8164_s12 + $0x38] sm:$0xff] }
0x3cb5   :  { %5515 = vmatprep.subr.mxu0 %v4243_v19 }
0x3d24   :  { %v3833_v59 = vpop.permute.xlu0 %3832 }
0x3d25   :  { %3835 = vst.msk [vmem:[#allocation2 + $0x28] sm:$0xff] %vm554_vm2, %v3833_v59 }
0x3d26   :  { %v3838_v61 = vpop.permute.xlu1 %3837 }
0x3d27   :  { %3840 = vst.msk [vmem:[#allocation2 + $0x10] sm:$0xff] %vm560_vm3, %v3838_v61  ;;  %v3841_v52 = vsel %vm554_vm2, %v3833_v59, %v3838_v61  ;;  %v4242_v59 = vld [vmem:[%s8164_s12 + $0x30] sm:$0xff]  ;;  %v4241_v61 = vld [vmem:[%s8164_s12 + $0x28] sm:$0xff] }
0x3d28   :  { %5390 = vmatmul.mubr.msk.f32.vlgmr.msra.gmra.mxu0 %vm423_vm4, %v3841_v52 }
0x3d29   :  { %5516 = vmatpush3.msra.mxu0 %v4243_v19 }
0x3d2a   :  { %5517 = vmatprep.subr.mxu0 %v4242_v59 }
0x3d2b   :  { %5518 = vmatpush3.msra.mxu0 %v4242_v59  ;;  %v7869_v59 = vadd.s32 16, %v6522_v49 }
0x3d2c   :  { %5519 = vmatprep.subr.mxu0 %v4241_v61 }
0x3d2d   :  { %5520 = vmatpush3.msra.mxu0 %v4241_v61  ;;  %v7872_v61 = vadd.s32 56, %v6522_v49 }
0x3de8   :  { %v3911_v16 = vpop.f32.mrf.mxu0 }
0x3de9   :  { %v3918_v2 = vadd.f32 %v3911_v16, %v7532_v20 }
0x3dea   :  { %v3913_v54 = vpop.f32.mrf.mxu0 }
0x3deb   :  { %6028 = vtanh.f32 %v3918_v2  ;;  %v3919_v62 = vadd.f32 %v3913_v54, %v7513_v10  ;;  %v5391_v3 = vmul.f32 -1.442695, %v3918_v2  ;;  %v4240_v2 = vld [vmem:[%s8164_s12 + $0x20] sm:$0xff]  ;;  %v4239_v54 = vld [vmem:[%s8164_s12 + $0x18] sm:$0xff] }
0x3dec   :  { %5521 = vmatprep.subr.mxu0 %v4240_v2 }
0x3ded   :  { %6030 = vtanh.f32 %v3919_v62  ;;  %v5392_v47 = vmul.f32 -1.442695, %v3919_v62  ;;  %5522 = vmatpush3.msra.mxu0 %v4240_v2  ;;  %v4238_v62 = vld [vmem:[%s8164_s12 + $0x10] sm:$0xff] }
0x3dee   :  { %6032 = vpow2.f32 %v5391_v3  ;;  %5523 = vmatprep.subr.mxu0 %v4239_v54 }
0x3def   :  { %6034 = vpow2.f32 %v5392_v47  ;;  %5524 = vmatpush3.msra.mxu0 %v4239_v54 }
0x3df0   :  { %5525 = vmatprep.subr.mxu0 %v4238_v62 }
0x3df1   :  { %5526 = vmatpush3.msra.mxu0 %v4238_v62  ;;  %v7878_v62 = vadd.s32 48, %v6522_v49 }
0x3df8   :  { %v6029_v0 = vpop.eup %6028 }
0x3df9   :  { %3936 = vrot.lane.b32.xlu0 %v6029_v0, %s6114_s0  ;;  %v4237_v0 = vld [vmem:[%s8164_s12 + $0x8] sm:$0xff] }
0x3dfa   :  { %v6031_v32 = vpop.eup %6030  ;;  %5527 = vmatprep.subr.mxu0 %v4237_v0 }
0x3dfb   :  { %3947 = vrot.lane.b32.xlu1 %v6031_v32, %s6114_s0  ;;  %v6033_v50 = vpop.eup %6032  ;;  %v4236_v32 = vld [vmem:[%s8164_s12] sm:$0xff]  ;;  %5528 = vmatpush3.msra.mxu0 %v4237_v0 }
0x3dfc   :  { %v6035_v24 = vpop.eup %6034  ;;  %v3926_v46 = vadd.f32 1.0, %v6033_v50  ;;  %5529 = vmatprep.subr.mxu0 %v4236_v32 }
0x3dfd   :  { %v3927_v4 = vadd.f32 1.0, %v6035_v24  ;;  %5530 = vmatpush3.msra.mxu0 %v4236_v32 }
0x3dfe   :  { %6036 = vrcp.f32 %v3926_v46  ;;  %5563 = vmatprep.subr.mxu0 %v6113_v7 }
0x3dff   :  { %6038 = vrcp.f32 %v3927_v4 }
0x3e0b   :  { %v6037_v20 = vpop.eup %6036 }
0x3e0c   :  { %v6039_v8 = vpop.eup %6038  ;;  %v3934_v22 = vmul.f32 %v6037_v20, %v3807_v1 }
0x3e0d   :  { %v3945_v5 = vmul.f32 %v6039_v8, %v3818_v26 }
0x3e6b   :  { %v3937_v41 = vpop.permute.xlu0 %3936 }
0x3e6c   :  { %v3939_v10 = vmul.f32 %v6037_v20, %v3937_v41 }
0x3e6d   :  { %v3948_v38 = vpop.permute.xlu1 %3947 }
0x3e6e   :  { %3941 = vrot.lane.b32.xlu0 %v3939_v10, %s6114_s0  ;;  %v3950_v31 = vmul.f32 %v6039_v8, %v3948_v38  ;;  %v7801_v10 = vld [vmem:[#allocation2 + $0x10] sm:$0xff]  ;;  %v7809_v38 = vld [vmem:[#allocation2 + $0x20] sm:$0xff] }
0x3e70   :  { %3952 = vrot.lane.b32.xlu1 %v3950_v31, %s6114_s0  ;;  %v7813_v31 = vld [vmem:[#allocation2 + $0x28] sm:$0xff] }
0x3ee0   :  { %v3942_v43 = vpop.permute.xlu0 %3941 }
0x3ee1   :  { %v3944_v60 = vadd.f32 %v3942_v43, %v3934_v22 }
0x3ee2   :  { %v3953_v9 = vpop.permute.xlu1 %3952 }
0x3ee3   :  { %6040 = vtanh.f32 %v3944_v60  ;;  %v3955_v17 = vadd.f32 %v3953_v9, %v3945_v5  ;;  %v4390_v5 = vld [vmem:[%s8165_s14 + $0x10] sm:$0xff]  ;;  %v4389_v9 = vld [vmem:[%s8165_s14 + $0x8] sm:$0xff] }
0x3ee5   :  { %6042 = vtanh.f32 %v3955_v17 }
0x3ef0   :  { %v6041_v13 = vpop.eup %6040 }
0x3ef1   :  { %3958 = vrot.lane.b32.xlu0 %v6041_v13, %s6114_s0  ;;  %v33_v13 = vstv %s8166_s15 }
0x3ef2   :  { %v6043_v48 = vpop.eup %6042  ;;  %34 = vst [vmem:[#allocation4] sm:$0x1] %v33_v13 }
0x3ef3   :  { %3964 = vrot.lane.b32.xlu1 %v6043_v48, %s6114_s0  ;;  %v5396_v48 = vld [vmem:[%s8167_s13] ss:$0 sm:$0xff] }
0x3ef9   :  { %v5405_v32 = vld [vmem:[#allocation4] ss:$0 sm:$0xff] }
0x3f63   :  { %v3959_v14 = vpop.permute.xlu0 %3958 }
0x3f64   :  { %v3961_v34 = vmul.f32 %v6037_v20, %v3959_v14 }
0x3f65   :  { %v3965_v33 = vpop.permute.xlu1 %3964 }
0x3f66   :  { %3969 = vrot.lane.b32.xlu0 %v3961_v34, %s6115_s10  ;;  %v3967_v58 = vmul.f32 %v6039_v8, %v3965_v33  ;;  %v7805_v8 = vld [vmem:[#allocation2 + $0x18] sm:$0xff] }
0x3f68   :  { %3974 = vrot.lane.b32.xlu1 %v3967_v58, %s6116_s29 }
0x3fd8   :  { %v3970_v36 = vpop.permute.xlu0 %3969 }
0x3fd9   :  { %3972 = vst.msk [vmem:[#allocation2 + $0x30] sm:$0xff] %vm554_vm2, %v3970_v36 }
0x3fda   :  { %v3975_v27 = vpop.permute.xlu1 %3974 }
0x3fdb   :  { %3977 = vst.msk [vmem:[#allocation2 + $0x8] sm:$0xff] %vm560_vm3, %v3975_v27  ;;  %v3978_v44 = vsel %vm554_vm2, %v3970_v36, %v3975_v27 }
0x3fdc   :  { %5393 = vmatmul.mubr.msk.f32.vlgmr.msra.gmra.mxu1 %vm423_vm4, %v3978_v44 }
0x3fe0   :  { %v7817_v22 = vld [vmem:[#allocation2 + $0x30] sm:$0xff] }
0x3fe2   :  { %v7797_v41 = vld [vmem:[#allocation2 + $0x8] sm:$0xff] }
0x409c   :  { %v4048_v63 = vpop.f32.mrf.mxu1 }
0x409d   :  { %v4055_v28 = vadd.f32 %v4048_v63, %v7536_v57 }
0x409e   :  { %v4050_v18 = vpop.f32.mrf.mxu1 }
0x409f   :  { %6044 = vtanh.f32 %v4055_v28  ;;  %v4056_v42 = vadd.f32 %v4050_v18, %v7509_v37  ;;  %v5394_v29 = vmul.f32 -1.442695, %v4055_v28 }
0x40a1   :  { %6046 = vtanh.f32 %v4056_v42  ;;  %v5395_v6 = vmul.f32 -1.442695, %v4056_v42 }
0x40a2   :  { %6048 = vpow2.f32 %v5394_v29 }
0x40a3   :  { %6050 = vpow2.f32 %v5395_v6 }
0x40ac   :  { %v6045_v12 = vpop.eup %6044 }
0x40ad   :  { %4073 = vrot.lane.b32.xlu1 %v6045_v12, %s6114_s0 }
0x40ae   :  { %v6047_v40 = vpop.eup %6046 }
0x40af   :  { %4084 = vrot.lane.b32.xlu0 %v6047_v40, %s6114_s0  ;;  %v6049_v23 = vpop.eup %6048 }
0x40b0   :  { %v6051_v21 = vpop.eup %6050  ;;  %v4063_v30 = vadd.f32 1.0, %v6049_v23 }
0x40b1   :  { %v4064_v55 = vadd.f32 1.0, %v6051_v21 }
0x40b2   :  { %6052 = vrcp.f32 %v4063_v30 }
0x40b3   :  { %6054 = vrcp.f32 %v4064_v55 }
0x40bf   :  { %v6053_v57 = vpop.eup %6052 }
0x40c0   :  { %v6055_v1 = vpop.eup %6054  ;;  %v4071_v26 = vmul.f32 %v6053_v57, %v3944_v60  ;;  %v4391_v60 = vld [vmem:[%s8165_s14 + $0x18] sm:$0xff] }
0x40c1   :  { %v4082_v35 = vmul.f32 %v6055_v1, %v3955_v17  ;;  %5543 = vmatprep.subr.mxu1 %v4391_v60  ;;  %v4388_v17 = vld [vmem:[%s8165_s14] sm:$0xff] }
0x40c2   :  { %5544 = vmatpush3.msra.mxu1 %v4391_v60 }
0x40c3   :  { %5545 = vmatprep.subr.mxu1 %v4390_v5 }
0x40c4   :  { %5546 = vmatpush3.msra.mxu1 %v4390_v5 }
0x40c5   :  { %5547 = vmatprep.subr.mxu1 %v4389_v9 }
0x40c6   :  { %5548 = vmatpush3.msra.mxu1 %v4389_v9 }
0x40c7   :  { %5549 = vmatprep.subr.mxu1 %v4388_v17 }
0x40c8   :  { %5550 = vmatpush3.msra.mxu1 %v4388_v17  ;;  %v4178_v17 = vand.u32 7, %v7878_v62  ;;  %v4975_v62 = vld [vmem:[%s8168_s16 + $0x18] sm:$0xff] }
0x40c9   :  { %5582 = vmatprep.subr.mxu1 %v6113_v7 }
0x40ca   :  { %vm4234_vm14 = vcmp.lt.s32.totalorder %v4178_v17, 2 }
0x411f   :  { %v4074_v15 = vpop.permute.xlu1 %4073 }
0x4120   :  { %v4076_v37 = vmul.f32 %v6053_v57, %v4074_v15 }
0x4121   :  { %v4085_v51 = vpop.permute.xlu0 %4084 }
0x4122   :  { %4078 = vrot.lane.b32.xlu1 %v4076_v37, %s6114_s0  ;;  %v4087_v56 = vmul.f32 %v6055_v1, %v4085_v51 }
0x4124   :  { %4089 = vrot.lane.b32.xlu0 %v4087_v56, %s6114_s0  ;;  %v6117_v56 = vmov 0  }
0x4125   :  { %5659 = vset.pattern.permute.xlu1 %v6117_v56  ;;  %5658 = vset.pattern.permute.xlu0 %v6117_v56 }
0x4194   :  { %v4079_v53 = vpop.permute.xlu1 %4078 }
0x4195   :  { %v4081_v45 = vadd.f32 %v4079_v53, %v4071_v26 }
0x4196   :  { %v4090_v39 = vpop.permute.xlu0 %4089 }
0x4197   :  { %6056 = vtanh.f32 %v4081_v45  ;;  %v4092_v11 = vadd.f32 %v4090_v39, %v4082_v35  ;;  %v7857_v45 = vadd.s32 40, %v6522_v49  ;;  %v7860_v35 = vadd.s32 32, %v6522_v49 }
0x4198   :  { %v7863_v39 = vadd.s32 8, %v6522_v49 }
0x4199   :  { %6058 = vtanh.f32 %v4092_v11  ;;  %v7866_v11 = vadd.s32 24, %v6522_v49  ;;  %v4171_v2 = vand.u32 7, %v7857_v45  ;;  %v4164_v54 = vand.u32 7, %v7860_v35  ;;  %v4977_v35 = vld [vmem:[%s8168_s16 + $0x28] sm:$0xff]  ;;  %v4976_v45 = vld [vmem:[%s8168_s16 + $0x20] sm:$0xff] }
0x419a   :  { %v4143_v0 = vand.u32 7, %v7863_v39  ;;  %v4979_v39 = vld [vmem:[%s8168_s16 + $0x38] sm:$0xff] }
0x419b   :  { %vm4233_vm7 = vcmp.lt.s32.totalorder %v4171_v2, 2  ;;  %vm4232_vm8 = vcmp.lt.s32.totalorder %v4164_v54, 2 }
0x419c   :  { %vm4229_vm9 = vcmp.lt.s32.totalorder %v4143_v0, 2 }
0x41a4   :  { %v6057_v52 = vpop.eup %6056 }
0x41a5   :  { %4095 = vrot.lane.b32.xlu1 %v6057_v52, %s6114_s0  ;;  %v4136_v52 = vand.u32 7, %v6522_v49 }
0x41a6   :  { %v6059_v16 = vpop.eup %6058 }
0x41a7   :  { %4101 = vrot.lane.b32.xlu0 %v6059_v16, %s6114_s0  ;;  %vm7886_vm6 = vcmp.lt.s32.totalorder %v4136_v52, 2 }
0x4217   :  { %v4096_v3 = vpop.permute.xlu1 %4095 }
0x4218   :  { %v4098_v47 = vmul.f32 %v6053_v57, %v4096_v3  ;;  %v4157_v3 = vand.u32 7, %v7866_v11 }
0x4219   :  { %v4102_v50 = vpop.permute.xlu0 %4101 }
0x421a   :  { %4106 = vrot.lane.b32.xlu1 %v4098_v47, %s6115_s10  ;;  %v4104_v24 = vmul.f32 %v6055_v1, %v4102_v50  ;;  %v4150_v47 = vand.u32 7, %v7869_v59  ;;  %vm4231_vm11 = vcmp.lt.s32.totalorder %v4157_v3, 2  ;;  %v4978_v59 = vld [vmem:[%s8168_s16 + $0x30] sm:$0xff] }
0x421c   :  { %4111 = vrot.lane.b32.xlu0 %v4104_v24, %s6116_s29  ;;  %v4185_v24 = vand.u32 7, %v7872_v61  ;;  %vm4230_vm12 = vcmp.lt.s32.totalorder %v4150_v47, 2 }
0x421e   :  { %vm4235_vm13 = vcmp.lt.s32.totalorder %v4185_v24, 2 }
0x428c   :  { %v4107_v46 = vpop.permute.xlu1 %4106 }
0x428d   :  { %4109 = vst.msk [vmem:[#allocation2 + $0x38] sm:$0xff] %vm554_vm2, %v4107_v46 }
0x428e   :  { %v4112_v4 = vpop.permute.xlu0 %4111 }
0x428f   :  { %4114 = vst.msk [vmem:[#allocation2] sm:$0xff] %vm560_vm3, %v4112_v4  ;;  %vm4696_vm3 = vcmp.lt.s32.totalorder %v6522_v49, 2 }
0x4294   :  { %v7821_v43 = vld [vmem:[#allocation2 + $0x38] sm:$0xff] }
0x4296   :  { %v7793_v20 = vld [vmem:[#allocation2] sm:$0xff] }
0x4297   :  { %5531 = vmatprep.mubr.msk.f32.mxu0 %vm423_vm4, %v7793_v20 }
0x4298   :  { %5532 = vmatmul.mubr.msk.f32.vlgmr.msra.gmra.mxu0 %vm423_vm4, %v7797_v41 }
0x4299   :  { %5534 = vmatprep.mubr.msk.f32.mxu0 %vm423_vm4, %v7801_v10 }
0x429c   :  { %5535 = vmatmul.mubr.msk.f32.gmra.mxu0 %vm423_vm4, %v7805_v8 }
0x429d   :  { %5537 = vmatprep.mubr.msk.f32.mxu0 %vm423_vm4, %v7809_v38 }
0x42a0   :  { %5538 = vmatmul.mubr.msk.f32.gmra.mxu0 %vm423_vm4, %v7813_v31 }
0x42a1   :  { %5540 = vmatprep.mubr.msk.f32.mxu0 %vm423_vm4, %v7817_v22 }
0x42a4   :  { %5541 = vmatmul.mubr.msk.f32.gmra.mxu0 %vm423_vm4, %v7821_v43 }
0x42a5   :  { %5579 = vmatprep.mubr.msk.f32.mxu0 %vm6118_vm5, %v6113_v7 }
0x4358   :  { %v5533_v14 = vpop.f32.mrf.mxu0 }
0x4359   :  { %v4347_v34 = vadd.f32 %v5533_v14, %v5396_v48 }
0x435a   :  { %v4341_v33 = vpop.f32.mrf.mxu0 }
0x435b   :  { %v4342_v58 = vadd.f32 %v5396_v48, %v4341_v33 }
0x435c   :  { %v5536_v36 = vpop.f32.mrf.mxu0 }
0x435d   :  { %6060 = vtanh.f32 %v4342_v58  ;;  %v4357_v27 = vadd.f32 %v5536_v36, %v5396_v48 }
0x435e   :  { %6062 = vtanh.f32 %v4347_v34  ;;  %v4351_v44 = vpop.f32.mrf.mxu0 }
0x435f   :  { %v4352_v63 = vadd.f32 %v5396_v48, %v4351_v44 }
0x4360   :  { %v5539_v28 = vpop.f32.mrf.mxu0 }
0x4361   :  { %6064 = vtanh.f32 %v4352_v63  ;;  %v4367_v18 = vadd.f32 %v5539_v28, %v5396_v48 }
0x4362   :  { %6066 = vtanh.f32 %v4357_v27  ;;  %v4361_v42 = vpop.f32.mrf.mxu0 }
0x4363   :  { %v4362_v12 = vadd.f32 %v5396_v48, %v4361_v42 }
0x4364   :  { %v5542_v40 = vpop.f32.mrf.mxu0 }
0x4365   :  { %6068 = vtanh.f32 %v4362_v12  ;;  %v4377_v29 = vadd.f32 %v5542_v40, %v5396_v48 }
0x4366   :  { %6070 = vtanh.f32 %v4367_v18  ;;  %v4371_v6 = vpop.f32.mrf.mxu0 }
0x4367   :  { %v4372_v23 = vadd.f32 %v5396_v48, %v4371_v6 }
0x4369   :  { %6072 = vtanh.f32 %v4372_v23 }
0x436a   :  { %v6061_v21 = vpop.eup %6060  ;;  %6074 = vtanh.f32 %v4377_v29 }
0x436b   :  { %v6063_v30 = vpop.eup %6062  ;;  %5551 = vmatprep.mubr.msk.f32.mxu1 %vm554_vm2, %v6061_v21 }
0x436c   :  { %5552 = vmatmul.mubr.msk.f32.vlgmr.msra.gmra.mxu1 %vm554_vm2, %v6063_v30 }
0x436e   :  { %v6065_v55 = vpop.eup %6064 }
0x436f   :  { %v6067_v57 = vpop.eup %6066  ;;  %5554 = vmatprep.mubr.msk.f32.mxu1 %vm554_vm2, %v6065_v55 }
0x4370   :  { %5555 = vmatmul.mubr.msk.f32.gmra.mxu1 %vm554_vm2, %v6067_v57 }
0x4372   :  { %v6069_v15 = vpop.eup %6068 }
0x4373   :  { %v6071_v37 = vpop.eup %6070  ;;  %5557 = vmatprep.mubr.msk.f32.mxu1 %vm554_vm2, %v6069_v15 }
0x4374   :  { %5558 = vmatmul.mubr.msk.f32.gmra.mxu1 %vm554_vm2, %v6071_v37 }
0x4376   :  { %v6073_v1 = vpop.eup %6072 }
0x4377   :  { %v6075_v51 = vpop.eup %6074  ;;  %5560 = vmatprep.mubr.msk.f32.mxu1 %vm554_vm2, %v6073_v1 }
0x4378   :  { %5561 = vmatmul.mubr.msk.f32.gmra.mxu1 %vm554_vm2, %v6075_v51 }
0x4379   :  { %5598 = vmatprep.mubr.msk.f32.mxu1 %vm6118_vm5, %v6113_v7 }
0x442c   :  { %v5553_v26 = vpop.f32.mrf.mxu1 }
0x442d   :  { %v4495_v5 = vadd.f32 %v5553_v26, %v5405_v32 }
0x442e   :  { %v4489_v53 = vpop.f32.mrf.mxu1 }
0x442f   :  { %v4490_v4 = vadd.f32 %v5405_v32, %v4489_v53  ;;  %v4529_v44 = vsel %vm4229_vm9, %v4495_v5, -1e+30 }
0x4430   :  { %v5556_v19 = vpop.f32.mrf.mxu1  ;;  %v4538_v55 = vsel %vm4536_vm10, %v4529_v44, -inf }
0x4431   :  { %v4505_v13 = vadd.f32 %v5556_v19, %v5405_v32  ;;  %v4528_v33 = vsel %vm7886_vm6, %v4490_v4, -1e+30 }
0x4432   :  { %v4499_v16 = vpop.f32.mrf.mxu1  ;;  %v4537_v29 = vsel %vm4536_vm10, %v4528_v33, -inf }
0x4433   :  { %v4500_v48 = vadd.f32 %v5405_v32, %v4499_v16  ;;  %v4531_v18 = vsel %vm4231_vm11, %v4505_v13, -1e+30 }
0x4434   :  { %v5559_v50 = vpop.f32.mrf.mxu1  ;;  %v4540_v57 = vsel %vm4536_vm10, %v4531_v18, -inf }
0x4435   :  { %v4515_v60 = vadd.f32 %v5559_v50, %v5405_v32  ;;  %v4530_v42 = vsel %vm4230_vm12, %v4500_v48, -1e+30 }
0x4436   :  { %v4509_v9 = vpop.f32.mrf.mxu1  ;;  %v4539_v15 = vsel %vm4536_vm10, %v4530_v42, -inf }
0x4437   :  { %v4510_v14 = vadd.f32 %v5405_v32, %v4509_v9  ;;  %v4533_v58 = vsel %vm4233_vm7, %v4515_v60, -1e+30 }
0x4438   :  { %v5562_v34 = vpop.f32.mrf.mxu1  ;;  %v4543_v6 = vsel %vm4536_vm10, %v4533_v58, -inf }
0x4439   :  { %v4532_v36 = vsel %vm4232_vm8, %v4510_v14, -1e+30  ;;  %v4525_v27 = vadd.f32 %v5562_v34, %v5405_v32  ;;  %v4544_v1 = vmax.f32 %v4538_v55, %v4543_v6 }
0x443a   :  { %v4541_v63 = vsel %vm4536_vm10, %v4532_v36, -inf  ;;  %v4519_v28 = vpop.f32.mrf.mxu1 }
0x443b   :  { %v4535_v12 = vsel %vm4235_vm13, %v4525_v27, -1e+30  ;;  %v4520_v40 = vadd.f32 %v5405_v32, %v4519_v28  ;;  %v4542_v21 = vmax.f32 %v4537_v29, %v4541_v63 }
0x443c   :  { %v4547_v23 = vsel %vm4536_vm10, %v4535_v12, -inf }
0x443d   :  { %v4534_v30 = vsel %vm4234_vm14, %v4520_v40, -1e+30  ;;  %v4548_v51 = vmax.f32 %v4540_v57, %v4547_v23  ;;  %v4549_v26 = vmax.f32 %v4542_v21, %v4544_v1 }
0x443e   :  { %v4545_v37 = vsel %vm4536_vm10, %v4534_v30, -inf }
0x443f   :  { %v4546_v56 = vmax.f32 %v4539_v15, %v4545_v37 }
0x4441   :  { %v4550_v53 = vmax.f32 %v4546_v56, %v4548_v51 }
0x4443   :  { %v4551_v19 = vmax.f32 %v4549_v26, %v4550_v53 }
0x4445   :  { %v4552_v16 = vrot.slane %v4551_v19, 4 }
0x4447   :  { %v4553_v32 = vmax.f32 %v4551_v19, %v4552_v16 }
0x4449   :  { %v4554_v50 = vrot.slane %v4553_v32, 2 }
0x444b   :  { %v4555_v46 = vmax.f32 %v4553_v32, %v4554_v50 }
0x444d   :  { %v4556_v4 = vrot.slane %v4555_v46, 1 }
0x444f   :  { %v4557_v60 = vmax.f32 %v4555_v46, %v4556_v4 }
0x4451   :  { %v4564_v5 = vsub.f32 %v4534_v30, %v4557_v60  ;;  %v4565_v9 = vsub.f32 %v4535_v12, %v4557_v60  ;;  %v4563_v13 = vsub.f32 %v4533_v58, %v4557_v60  ;;  %v4562_v14 = vsub.f32 %v4532_v36, %v4557_v60 }
0x4452   :  { %v4561_v27 = vsub.f32 %v4531_v18, %v4557_v60  ;;  %v4560_v28 = vsub.f32 %v4530_v42, %v4557_v60  ;;  %v4559_v29 = vsub.f32 %v4529_v44, %v4557_v60  ;;  %v4558_v23 = vsub.f32 %v4528_v33, %v4557_v60 }
0x4453   :  { %v4578_v48 = vmul.f32 1.442695, %v4564_v5  ;;  %v4580_v34 = vmul.f32 1.442695, %v4565_v9  ;;  %v4576_v63 = vmul.f32 1.442695, %v4563_v13 }
0x4454   :  { %v4574_v40 = vmul.f32 1.442695, %v4562_v14  ;;  %v4572_v6 = vmul.f32 1.442695, %v4561_v27  ;;  %v4570_v21 = vmul.f32 1.442695, %v4560_v28 }
0x4455   :  { %6076 = vpow2.f32 %v4578_v48  ;;  %v4568_v55 = vmul.f32 1.442695, %v4559_v29  ;;  %v4566_v30 = vmul.f32 1.442695, %v4558_v23  ;;  %v7924_v33 = vand.u32 127, %v237_v25 }
0x4456   :  { %6078 = vpow2.f32 %v4580_v34 }
0x4457   :  { %6080 = vpow2.f32 %v4576_v63  ;;  %v4588_v42 = vand.u32 7, %v7924_v33  ;;  %vm4599_vm0 = vcmp.eq.s32.totalorder %v4136_v52, %v7924_v33  ;;  %vm4600_vm6 = vcmp.eq.s32.totalorder %v4143_v0, %v7924_v33 }
0x4458   :  { %6082 = vpow2.f32 %v4574_v40  ;;  %v5415_v1 = vsel %vm4599_vm0, 1.0, %v6113_v7  ;;  %vm4601_vm7 = vcmp.eq.s32.totalorder %v4150_v47, %v7924_v33  ;;  %v5416_v48 = vsel %vm4600_vm6, 1.0, %v6113_v7  ;;  %v4973_v47 = vld [vmem:[%s8168_s16 + $0x8] sm:$0xff] }
0x4459   :  { %6084 = vpow2.f32 %v4572_v6  ;;  %vm4596_vm15 = vcmp.eq.s32.totalorder %v4588_v42, %v6522_v49  ;;  %v5417_v49 = vsel %vm4601_vm7, 1.0, %v6113_v7  ;;  %vm4602_vm8 = vcmp.eq.s32.totalorder %v4157_v3, %v7924_v33  ;;  %v4974_v3 = vld [vmem:[%s8168_s16 + $0x10] sm:$0xff] }
0x445a   :  { %6086 = vpow2.f32 %v4570_v21  ;;  %v5414_v37 = vsel %vm4596_vm15, 1.0, %v6113_v7  ;;  %vm4603_vm9 = vcmp.eq.s32.totalorder %v4164_v54, %v7924_v33  ;;  %v5418_v11 = vsel %vm4602_vm8, 1.0, %v6113_v7 }
0x445b   :  { %6088 = vpow2.f32 %v4568_v55  ;;  %v5419_v0 = vsel %vm4603_vm9, 1.0, %v6113_v7  ;;  %vm4604_vm11 = vcmp.eq.s32.totalorder %v4171_v2, %v7924_v33  ;;  %vm4605_vm12 = vcmp.eq.s32.totalorder %v4178_v17, %v7924_v33 }
0x445c   :  { %6090 = vpow2.f32 %v4566_v30  ;;  %v5420_v2 = vsel %vm4604_vm11, 1.0, %v6113_v7  ;;  %v5421_v54 = vsel %vm4605_vm12, 1.0, %v6113_v7  ;;  %vm4606_vm13 = vcmp.eq.s32.totalorder %v4185_v24, %v7924_v33  ;;  %v4972_v24 = vld [vmem:[%s8168_s16] sm:$0xff] }
0x445d   :  { %v5422_v61 = vsel %vm4606_vm13, 1.0, %v6113_v7 }
0x4462   :  { %v7915_v58 = vpop.eup %6076 }
0x4463   :  { %v7917_v36 = vpop.eup %6078  ;;  %4734 = vperm.xlu1 %5659, %v7915_v58  }
0x4464   :  { %4739 = vperm.xlu0 %5658, %v7917_v36   ;;  %5564 = vmatpush3.msra.mxu0 %v7917_v36  ;;  %v7926_v44 = vpop.eup %6080 }
0x4465   :  { %5565 = vmatprep.subr.mxu0 %v6113_v7  ;;  %v7929_v18 = vpop.eup %6082 }
0x4466   :  { %5566 = vmatpush3.msra.mxu0 %v7915_v58  ;;  %v7937_v25 = vpop.eup %6084 }
0x4467   :  { %5567 = vmatprep.subr.mxu0 %v6113_v7  ;;  %4729 = vperm.xlu1 %5659, %v7926_v44   ;;  %v7940_v12 = vpop.eup %6086 }
0x4468   :  { %5568 = vmatpush3.msra.mxu0 %v7926_v44  ;;  %4724 = vperm.xlu0 %5658, %v7929_v18   ;;  %v7948_v57 = vpop.eup %6088 }
0x4469   :  { %5569 = vmatprep.subr.mxu0 %v6113_v7  ;;  %v7951_v15 = vpop.eup %6090 }
0x446a   :  { %5570 = vmatpush3.msra.mxu0 %v7929_v18 }
0x446b   :  { %5571 = vmatprep.subr.mxu0 %v6113_v7  ;;  %4719 = vperm.xlu1 %5659, %v7937_v25  }
0x446c   :  { %5572 = vmatpush3.msra.mxu0 %v7937_v25  ;;  %4714 = vperm.xlu0 %5658, %v7940_v12  }
0x446d   :  { %5573 = vmatprep.subr.mxu0 %v6113_v7 }
0x446e   :  { %5574 = vmatpush3.msra.mxu0 %v7940_v12 }
0x446f   :  { %5575 = vmatprep.subr.mxu0 %v6113_v7  ;;  %4709 = vperm.xlu1 %5659, %v7948_v57  }
0x4470   :  { %5576 = vmatpush3.msra.mxu0 %v7948_v57  ;;  %4704 = vperm.xlu0 %5658, %v7951_v15  }
0x4471   :  { %5577 = vmatprep.subr.mxu0 %v6113_v7 }
0x4472   :  { %5578 = vmatpush3.msra.mxu0 %v7951_v15 }
0x4473   :  { %5580 = vmatmul.mubr.msk.f32.vlgmr.msra.gmra.mxu0 %vm423_vm4, %v5414_v37 }
0x4474   :  { %5603 = vmatprep.mubr.msk.f32.mxu0 %vm4826_vm1, %v5415_v1 }
0x44de   :  { %v4735_v51 = vpop.permute.xlu1 %4734 }
0x44df   :  { %v4740_v56 = vpop.permute.xlu0 %4739  ;;  %v4748_v53 = vmul.f32 %v4735_v51, %v7817_v22 }
0x44e0   :  { %v4749_v26 = vmul.f32 %v4740_v56, %v7821_v43 }
0x44e2   :  { %5583 = vmatpush3.msra.mxu1 %v4749_v26  ;;  %v4730_v19 = vpop.permute.xlu1 %4729 }
0x44e3   :  { %5584 = vmatprep.subr.mxu1 %v6113_v7  ;;  %v4747_v16 = vmul.f32 %v4730_v19, %v7813_v31  ;;  %v4725_v32 = vpop.permute.xlu0 %4724 }
0x44e4   :  { %5585 = vmatpush3.msra.mxu1 %v4748_v53  ;;  %v4746_v52 = vmul.f32 %v4725_v32, %v7809_v38  ;;  %v5093_v32 = vld [vmem:[%s8171_s20 + $0x10] sm:$0xff] }
0x44e5   :  { %5586 = vmatprep.subr.mxu1 %v6113_v7 }
0x44e6   :  { %5587 = vmatpush3.msra.mxu1 %v4747_v16  ;;  %v4720_v50 = vpop.permute.xlu1 %4719  ;;  %v5094_v16 = vld [vmem:[%s8171_s20 + $0x18] sm:$0xff] }
0x44e7   :  { %5588 = vmatprep.subr.mxu1 %v6113_v7  ;;  %v4745_v43 = vmul.f32 %v4720_v50, %v7805_v8  ;;  %v4715_v46 = vpop.permute.xlu0 %4714  ;;  %v5091_v50 = vld [vmem:[%s8171_s20] sm:$0xff] }
0x44e8   :  { %5589 = vmatpush3.msra.mxu1 %v4746_v52  ;;  %v4744_v22 = vmul.f32 %v4715_v46, %v7801_v10  ;;  %v5092_v52 = vld [vmem:[%s8171_s20 + $0x8] sm:$0xff] }
0x44e9   :  { %5590 = vmatprep.subr.mxu1 %v6113_v7 }
0x44ea   :  { %5591 = vmatpush3.msra.mxu1 %v4745_v43  ;;  %v4710_v31 = vpop.permute.xlu1 %4709 }
0x44eb   :  { %5592 = vmatprep.subr.mxu1 %v6113_v7  ;;  %v4743_v4 = vmul.f32 %v4710_v31, %v7797_v41  ;;  %v4705_v60 = vpop.permute.xlu0 %4704 }
0x44ec   :  { %5593 = vmatpush3.msra.mxu1 %v4744_v22  ;;  %v4742_v38 = vmul.f32 %v4705_v60, %v7793_v20 }
0x44ed   :  { %5594 = vmatprep.subr.mxu1 %v6113_v7 }
0x44ee   :  { %5595 = vmatpush3.msra.mxu1 %v4743_v4  ;;  %v5435_v4 = vld [vmem:[%s8172_s18] ss:$0 sm:$0xff] }
0x44ef   :  { %5596 = vmatprep.subr.mxu1 %v6113_v7 }
0x44f0   :  { %5597 = vmatpush3.msra.mxu1 %v4742_v38  ;;  %v5436_v38 = vld [vmem:[%s8173_s19] ss:$0 sm:$0xff] }
0x44f1   :  { %5599 = vmatmul.mubr.msk.f32.vlgmr.msra.gmra.mxu1 %vm423_vm4, %v5414_v37  ;;  %5634 = vmatprep.subr.mxu1 %v6113_v7 }
0x44f2   :  { %5642 = vmatprep.mubr.msk.f32.mxu1 %vm6118_vm5, %v6113_v7  ;;  %5635 = vmatpush3.msra.mxu1 %v5094_v16 }
0x44f3   :  { %5636 = vmatprep.subr.mxu1 %v6113_v7 }
0x44f4   :  { %5637 = vmatpush3.msra.mxu1 %v5093_v32 }
0x44f5   :  { %5638 = vmatprep.subr.mxu1 %v6113_v7 }
0x44f6   :  { %5639 = vmatpush3.msra.mxu1 %v5092_v52 }
0x44f7   :  { %5640 = vmatprep.subr.mxu1 %v6113_v7 }
0x44f8   :  { %5641 = vmatpush3.msra.mxu1 %v5091_v50 }
0x44f9   :  { %5645 = vmatprep.subr.mxu1 %v6113_v7 }
0x4533   :  { %v4692_v41 = vpop.f32.mrf.mxu0 }
0x4534   :  { %v4697_v10 = vsel %vm4696_vm3, %v4692_v41, 1.0 }
0x4535   :  { %6092 = vrcp.f32 %v4697_v10  ;;  %v5581_v8 = vpop.f32.mrf.mxu0 }
0x4542   :  { %v6093_v5 = vpop.eup %6092 }
0x4543   :  { %v4699_v9 = vmul.f32 %v6093_v5, %v4697_v10 }
0x4545   :  { %v4700_v20 = vsub.f32 2.0, %v4699_v9 }
0x4547   :  { %v4701_v13 = vmul.f32 %v6093_v5, %v4700_v20  ;;  %v5437_v5 = vld [vmem:[%s8174_s21] ss:$0 sm:$0xff] }
0x4549   :  { %4822 = vperm.xlu1 %5659, %v4701_v13   ;;  %5601 = vmatprep.subr.mxu0 %v4701_v13 }
0x454a   :  { %5602 = vmatpush3.msra.mxu0 %v4701_v13 }
0x454b   :  { %5604 = vmatmul.mubr.msk.f32.vlgmr.msra.gmra.mxu0 %vm4826_vm1, %v5416_v48  ;;  %5615 = vmatprep.subr.mxu0 %v6113_v7 }
0x454c   :  { %5606 = vmatprep.mubr.msk.f32.mxu0 %vm4826_vm1, %v5417_v49  ;;  %5616 = vmatpush3.msra.mxu0 %v4979_v39 }
0x454d   :  { %5617 = vmatprep.subr.mxu0 %v6113_v7 }
0x454e   :  { %5618 = vmatpush3.msra.mxu0 %v4978_v59 }
0x454f   :  { %5607 = vmatmul.mubr.msk.f32.gmra.mxu0 %vm4826_vm1, %v5418_v11  ;;  %5619 = vmatprep.subr.mxu0 %v6113_v7 }
0x4550   :  { %5609 = vmatprep.mubr.msk.f32.mxu0 %vm4826_vm1, %v5419_v0  ;;  %5620 = vmatpush3.msra.mxu0 %v4977_v35  ;;  %v5209_v35 = vld [vmem:[%s8175_s24 + $0x8] sm:$0xff] }
0x4551   :  { %5621 = vmatprep.subr.mxu0 %v6113_v7 }
0x4552   :  { %5622 = vmatpush3.msra.mxu0 %v4976_v45  ;;  %v5208_v45 = vld [vmem:[%s8175_s24] sm:$0xff] }
0x4553   :  { %5610 = vmatmul.mubr.msk.f32.gmra.mxu0 %vm4826_vm1, %v5420_v2  ;;  %5623 = vmatprep.subr.mxu0 %v6113_v7  ;;  %v35_v2 = vstv %s8176_s25 }
0x4554   :  { %5612 = vmatprep.mubr.msk.f32.mxu0 %vm4826_vm1, %v5421_v54  ;;  %5624 = vmatpush3.msra.mxu0 %v4975_v62  ;;  %36 = vst [vmem:[#allocation5] sm:$0x1] %v35_v2 }
0x4555   :  { %5625 = vmatprep.subr.mxu0 %v6113_v7 }
0x4556   :  { %5626 = vmatpush3.msra.mxu0 %v4974_v3 }
0x4557   :  { %5613 = vmatmul.mubr.msk.f32.gmra.mxu0 %vm4826_vm1, %v5422_v61  ;;  %5627 = vmatprep.subr.mxu0 %v6113_v7 }
0x4558   :  { %5628 = vmatpush3.msra.mxu0 %v4973_v47  ;;  %5631 = vmatprep.mubr.msk.f32.mxu0 %vm6118_vm5, %v6113_v7  ;;  %v5439_v47 = vld [vmem:[%s8177_s22] ss:$0 sm:$0xff] }
0x4559   :  { %5629 = vmatprep.subr.mxu0 %v6113_v7 }
0x455a   :  { %5630 = vmatpush3.msra.mxu0 %v4972_v24 }
0x45b1   :  { %v4816_v17 = vpop.f32.mrf.mxu1 }
0x45b3   :  { %v5600_v14 = vpop.f32.mrf.mxu1 }
0x45c4   :  { %v4823_v34 = vpop.permute.xlu1 %4822 }
0x45c5   :  { %v4825_v27 = vmul.f32 %v4823_v34, %v4816_v17 }
0x45c7   :  { %5632 = vmatmul.mubr.msk.f32.vlgmr.msra.gmra.mxu0 %vm423_vm4, %v4825_v27  ;;  %vm5175_vm4 = vcmask 130048  }
0x460b   :  { %v5605_v63 = vpop.f32.mrf.mxu0 }
0x460c   :  { %v4957_v28 = vmul.f32 %v7948_v57, %v5605_v63  ;;  %v5441_v63 = vld [vmem:[#allocation5] ss:$0 sm:$0xff] }
0x460d   :  { %v4917_v40 = vpop.f32.mrf.mxu0 }
0x460e   :  { %4965 = vst.msk [vmem:[%s8169_s27 + $0x8] sm:$0xff] %vm4536_vm10, %v4957_v28  ;;  %v4956_v29 = vmul.f32 %v7951_v15, %v4917_v40 }
0x460f   :  { %v5608_v6 = vpop.f32.mrf.mxu0 }
0x4610   :  { %4964 = vst.msk [vmem:[%s8169_s27] sm:$0xff] %vm4536_vm10, %v4956_v29  ;;  %v4959_v23 = vmul.f32 %v7937_v25, %v5608_v6 }
0x4611   :  { %v4927_v21 = vpop.f32.mrf.mxu0 }
0x4612   :  { %4967 = vst.msk [vmem:[%s8169_s27 + $0x18] sm:$0xff] %vm4536_vm10, %v4959_v23  ;;  %v4958_v55 = vmul.f32 %v7940_v12, %v4927_v21 }
0x4613   :  { %v5611_v30 = vpop.f32.mrf.mxu0 }
0x4614   :  { %4966 = vst.msk [vmem:[%s8169_s27 + $0x10] sm:$0xff] %vm4536_vm10, %v4958_v55  ;;  %v4961_v33 = vmul.f32 %v7926_v44, %v5611_v30 }
0x4615   :  { %v4937_v42 = vpop.f32.mrf.mxu0 }
0x4616   :  { %4969 = vst.msk [vmem:[%s8169_s27 + $0x28] sm:$0xff] %vm4536_vm10, %v4961_v33  ;;  %v4960_v25 = vmul.f32 %v7929_v18, %v4937_v42  ;;  %v5433_v18 = vld [vmem:[%s8170_s17] ss:$0 sm:$0xff] }
0x4617   :  { %v5614_v57 = vpop.f32.mrf.mxu0 }
0x4618   :  { %4968 = vst.msk [vmem:[%s8169_s27 + $0x20] sm:$0xff] %vm4536_vm10, %v4960_v25  ;;  %v4963_v12 = vmul.f32 %v7917_v36, %v5614_v57 }
0x4619   :  { %v4947_v15 = vpop.f32.mrf.mxu0 }
0x461a   :  { %4971 = vst.msk [vmem:[%s8169_s27 + $0x38] sm:$0xff] %vm4536_vm10, %v4963_v12  ;;  %v4962_v44 = vmul.f32 %v7915_v58, %v4947_v15 }
0x461c   :  { %4970 = vst.msk [vmem:[%s8169_s27 + $0x30] sm:$0xff] %vm4536_vm10, %v4962_v44 }
0x4687   :  { %v5056_v37 = vpop.f32.mrf.mxu0 }
0x4688   :  { %v5057_v1 = vadd.f32 %v5433_v18, %v5056_v37 }
0x4689   :  { %v5633_v36 = vpop.f32.mrf.mxu0 }
0x468a   :  { %v5060_v51 = vsel %vm554_vm2, %v5057_v1, 0.0 }
0x468b   :  { %5061 = vadd.xlane.f32.xlu0 %v5060_v51 }
0x4714   :  { %v5062_v56 = vpop.xlane.xlu0 %5061 }
0x4715   :  { %v5064_v26 = vmul.f32 0.03125, %v5062_v56 }
0x4717   :  { %v5065_v53 = vsub.f32 %v5057_v1, %v5064_v26 }
0x4719   :  { %v5066_v19 = vmul.f32 %v5065_v53, %v5065_v53 }
0x471b   :  { %v5067_v58 = vsel %vm554_vm2, %v5066_v19, 0.0 }
0x471c   :  { %5068 = vadd.xlane.f32.xlu1 %v5067_v58 }
0x47a5   :  { %v5069_v43 = vpop.xlane.xlu1 %5068 }
0x47a6   :  { %v5070_v46 = vmul.f32 0.03125, %v5069_v43 }
0x47a8   :  { %v5071_v22 = vadd.f32 1e-05, %v5070_v46 }
0x47aa   :  { %6094 = vrsqrt.f32 %v5071_v22 }
0x47b7   :  { %v6095_v31 = vpop.eup %6094 }
0x47b8   :  { %v5073_v60 = vmul.f32 %v6095_v31, %v5065_v53 }
0x47ba   :  { %v5081_v41 = vmul.f32 %v5435_v4, %v5073_v60 }
0x47bc   :  { %v5089_v10 = vadd.f32 %v5436_v38, %v5081_v41 }
0x47be   :  { %v5090_v8 = vmax.f32 %v5089_v10, 0.0 }
0x47c0   :  { %5643 = vmatmul.mubr.msk.f32.vlgmr.msra.gmra.mxu1 %vm554_vm2, %v5090_v8 }
0x47c1   :  { %5649 = vmatprep.mubr.msk.f32.mxu1 %vm6118_vm5, %v6113_v7  ;;  %5646 = vmatpush3.msra.mxu1 %v5209_v35 }
0x47c2   :  { %5647 = vmatprep.subr.mxu1 %v6113_v7  ;;  %v5440_v7 = vld [vmem:[%s8178_s23] ss:$0 sm:$0xff] }
0x47c3   :  { %5648 = vmatpush3.msra.mxu1 %v5208_v45 }
0x4880   :  { %v5171_v9 = vpop.f32.mrf.mxu1 }
0x4881   :  { %v5172_v20 = vadd.f32 %v5437_v5, %v5171_v9 }
0x4882   :  { %v5644_v13 = vpop.f32.mrf.mxu1 }
0x4883   :  { %v5176_v48 = vsel %vm5175_vm4, %v5172_v20, 0.0 }
0x4884   :  { %5177 = vadd.xlane.f32.xlu0 %v5176_v48 }
0x490d   :  { %v5178_v49 = vpop.xlane.xlu0 %5177 }
0x490e   :  { %v5180_v39 = vmul.f32 0.0625, %v5178_v49 }
0x4910   :  { %v5181_v59 = vsub.f32 %v5172_v20, %v5180_v39 }
0x4912   :  { %v5182_v11 = vmul.f32 %v5181_v59, %v5181_v59 }
0x4914   :  { %v5183_v0 = vsel %vm5175_vm4, %v5182_v11, 0.0 }
0x4915   :  { %5184 = vadd.xlane.f32.xlu0 %v5183_v0 }
0x499e   :  { %v5185_v54 = vpop.xlane.xlu0 %5184 }
0x499f   :  { %v5186_v62 = vmul.f32 0.0625, %v5185_v54 }
0x49a1   :  { %v5187_v3 = vadd.f32 1e-05, %v5186_v62 }
0x49a3   :  { %6096 = vrsqrt.f32 %v5187_v3 }
0x49b0   :  { %v6097_v61 = vpop.eup %6096 }
0x49b1   :  { %v5189_v24 = vmul.f32 %v6097_v61, %v5181_v59 }
0x49b3   :  { %v5197_v17 = vmul.f32 %v5439_v47, %v5189_v24 }
0x49b5   :  { %v5205_v14 = vadd.f32 %v5440_v7, %v5197_v17 }
0x49b7   :  { %v5206_v34 = vmax.f32 %v5205_v14, 0.0 }
0x49b9   :  { %v5207_v27 = vadd.f32 %v5206_v34, %v5090_v8 }
0x49bb   :  { %5650 = vmatmul.mubr.msk.f32.vlgmr.msra.gmra.mxu1 %vm5175_vm4, %v5207_v27 }
0x4a7b   :  { %v5286_v28 = vpop.f32.mrf.mxu1 }
0x4a7c   :  { %v5287_v40 = vadd.f32 %v5441_v63, %v5286_v28 }
0x4a7d   :  { %v5651_v29 = vpop.f32.mrf.mxu1 }
0x4a7e   :  { %5290 = vst.msk [vmem:[%s8179_s26] sm:$0xff] %vm4536_vm10, %v5287_v40 }

</bundles_post_ra>
